<compile_context>
chip_gen: v7x
topology: tpu7x:2x2x1
jax: 0.10.0
libtpu: 0.0.40
codegen_flags: <defaults>
</compile_context>

<pallas_src>
import numpy as np

import jax
import jax.numpy as jnp
from jax.experimental import pallas as pl
from jax.experimental.pallas import tpu as pltpu


# Architecture constants (fixed by conv_fc = Linear(16*9*36, 150)).
H_IN, W_IN = 42, 150          # input image
H1, W1 = 40, 148              # conv1 output
HP1, WP1 = 20, 74             # after pool1
H2, W2 = 18, 72               # conv2 output
HP2, WP2 = 9, 36              # after pool2
C1, C2 = 6, 16
FLAT = C2 * HP2 * WP2         # 5184
_BN_EPS = 1e-5


# ------------------------------------------------------------------ kernel 1: conv trunk
def _conv_trunk_kernel(x_ref, l1_ref, l2_ref, s1_ref, t1_ref, s2_ref, t2_ref,
                       selc1_ref, e1_ref, o1_ref, selc2_ref, e2_ref, o2_ref,
                       out_ref):
    x = x_ref[0]                                                    # (42, 150)

    # conv1: 3 lane-shifted matmuls onto a (C1*H1, W1) row-stacked layout.
    a1 = None
    for dw in range(3):
        part = jnp.dot(l1_ref[dw], x[:, dw:dw + W1],
                       preferred_element_type=jnp.float32)          # (240, 148)
        a1 = part if a1 is None else a1 + part
    y1 = jnp.maximum(a1 * s1_ref[...] + t1_ref[...], 0.0)           # folded BN + ReLU

    # pool1 (exact 2x2 max): adjacent-col max + even-col selector, even/odd row selectors.
    mc = jnp.maximum(y1[:, 0:W1 - 1], y1[:, 1:W1])                  # (240, 147)
    mc = jnp.dot(mc, selc1_ref[...], preferred_element_type=jnp.float32)      # (240, 74)
    p1 = jnp.maximum(
        jnp.dot(e1_ref[...], mc, preferred_element_type=jnp.float32),
        jnp.dot(o1_ref[...], mc, preferred_element_type=jnp.float32))         # (120, 74)

    # conv2: 3 lane-shifted matmuls onto (C2*H2, W2).
    a2 = None
    for dw in range(3):
        part = jnp.dot(l2_ref[dw], p1[:, dw:dw + W2],
                       preferred_element_type=jnp.float32)          # (288, 72)
        a2 = part if a2 is None else a2 + part
    y2 = jnp.maximum(a2 * s2_ref[...] + t2_ref[...], 0.0)

    # pool2
    mc2 = jnp.maximum(y2[:, 0:W2 - 1], y2[:, 1:W2])                 # (288, 71)
    mc2 = jnp.dot(mc2, selc2_ref[...], preferred_element_type=jnp.float32)    # (288, 36)
    p2 = jnp.maximum(
        jnp.dot(e2_ref[...], mc2, preferred_element_type=jnp.float32),
        jnp.dot(o2_ref[...], mc2, preferred_element_type=jnp.float32))        # (144, 36)

    out_ref[0] = p2


def conv_trunk(x, prep):
    B = x.shape[0]

    def full(shape):
        return pl.BlockSpec(shape, lambda b, _s=shape: (0,) * len(_s))

    return pl.pallas_call(
        _conv_trunk_kernel,
        out_shape=jax.ShapeDtypeStruct((B, C2 * HP2, WP2), jnp.float32),
        grid=(B,),
        in_specs=[
            pl.BlockSpec((1, H_IN, W_IN), lambda b: (b, 0, 0)),
            full((3, C1 * H1, H_IN)),          # L1
            full((3, C2 * H2, C1 * HP1)),      # L2
            full((C1 * H1, 1)),                # s1
            full((C1 * H1, 1)),                # t1
            full((C2 * H2, 1)),                # s2
            full((C2 * H2, 1)),                # t2
            full((W1 - 1, WP1)),               # selc1
            full((C1 * HP1, C1 * H1)),         # E1
            full((C1 * HP1, C1 * H1)),         # O1
            full((W2 - 1, WP2)),               # selc2
            full((C2 * HP2, C2 * H2)),         # E2
            full((C2 * HP2, C2 * H2)),         # O2
        ],
        out_specs=pl.BlockSpec((1, C2 * HP2, WP2), lambda b: (b, 0, 0)),
        compiler_params=pltpu.CompilerParams(
            dimension_semantics=("parallel",)),
    )(x, prep["L1"], prep["L2"], prep["s1"], prep["t1"], prep["s2"], prep["t2"],
      prep["selc1"], prep["E1"], prep["O1"], prep["selc2"], prep["E2"], prep["O2"])


# ------------------------------------------------------------------ kernel 2: fused heads
def _heads_kernel(flat_ref, mord_ref, mat_ref,
                  wfc_ref, bfc_ref,
                  wd1_ref, bd1_ref, sd1_ref, td1_ref,
                  wd2_ref, bd2_ref, sd2_ref, td2_ref,
                  wd3_ref, bd3_ref, sd3_ref, td3_ref,
                  wa_ref, wf_ref, wm_ref, batt_ref,
                  out_ref):
    flat = flat_ref[...]                                            # (B, 5184)
    mord = mord_ref[...]                                            # (B, dense_dim)
    xmat = mat_ref[...]                                             # (B, 150, 42)

    # conv_fc + sigmoid (use_mat=True branch)
    fc = jax.nn.sigmoid(
        jnp.dot(flat, wfc_ref[...], preferred_element_type=jnp.float32)
        + bfc_ref[...])                                             # (B, 150)

    # mordred dense path: Linear -> ReLU -> BatchNorm(eval) -> Dropout(identity)
    d = jnp.maximum(jnp.dot(mord, wd1_ref[...],
                            preferred_element_type=jnp.float32) + bd1_ref[...], 0.0)
    d = d * sd1_ref[...] + td1_ref[...]
    d = jnp.maximum(jnp.dot(d, wd2_ref[...],
                            preferred_element_type=jnp.float32) + bd2_ref[...], 0.0)
    d = d * sd2_ref[...] + td2_ref[...]
    d = jnp.maximum(jnp.dot(d, wd3_ref[...],
                            preferred_element_type=jnp.float32) + bd3_ref[...], 0.0)
    d = d * sd3_ref[...] + td3_ref[...]                             # (B, 64)

    # attention head: bmm(x_mat^T, fc) then att_fc(Linear(256,1)) on concat([a, fc, d]).
    a = jnp.sum(xmat * fc[:, :, None], axis=1)                      # (B, 42)
    z = (jnp.sum(a * wa_ref[...], axis=-1, keepdims=True)
         + jnp.sum(fc * wf_ref[...], axis=-1, keepdims=True)
         + jnp.sum(d * wm_ref[...], axis=-1, keepdims=True)
         + batt_ref[...])
    out_ref[...] = jax.nn.sigmoid(z)


def heads(flat, x_mord, x_mat, prep):
    B, dense_dim = x_mord.shape

    def full(shape):
        return pl.BlockSpec(shape, lambda i, _s=shape: (0,) * len(_s))

    return pl.pallas_call(
        _heads_kernel,
        out_shape=jax.ShapeDtypeStruct((B, 1), jnp.float32),
        grid=(1,),
        in_specs=[
            full((B, FLAT)),
            full((B, dense_dim)),
            full((B, 150, 42)),
            full((FLAT, 150)), full((1, 150)),
            full((dense_dim, 512)), full((1, 512)), full((1, 512)), full((1, 512)),
            full((512, 128)), full((1, 128)), full((1, 128)), full((1, 128)),
            full((128, 64)), full((1, 64)), full((1, 64)), full((1, 64)),
            full((1, 42)), full((1, 150)), full((1, 64)), full((1, 1)),
        ],
        out_specs=full((B, 1)),
        compiler_params=pltpu.CompilerParams(
            dimension_semantics=("arbitrary",)),
    )(flat, x_mord, x_mat,
      prep["wfc"], prep["bfc"],
      prep["wd1"], prep["bd1"], prep["sd1"], prep["td1"],
      prep["wd2"], prep["bd2"], prep["sd2"], prep["td2"],
      prep["wd3"], prep["bd3"], prep["sd3"], prep["td3"],
      prep["wa"], prep["wf"], prep["wm"], prep["batt"])


# ------------------------------------------------------- host-side weight preprocessing
def _conv_left_factors(w, h_in):
    """Pack conv weight (Co,Ci,3,3) into 3 block-banded left factors so that
       sum_dw L[dw] @ X[:, dw:dw+w_out]  equals the valid 3x3 conv on a row-stacked
       (ci*h_in + row, col) input layout, producing rows co*h_out + h."""
    w = np.asarray(w, np.float32)
    co_n, ci_n, kh, kw = w.shape
    h_out = h_in - kh + 1
    L = np.zeros((kw, co_n * h_out, ci_n * h_in), np.float32)
    h_idx = np.arange(h_out)
    for dw in range(kw):
        for dh in range(kh):
            for co in range(co_n):
                for ci in range(ci_n):
                    L[dw, co * h_out + h_idx, ci * h_in + h_idx + dh] = w[co, ci, dh, dw]
    return jnp.asarray(L)


def _even_col_selector(n_in, n_out):
    S = np.zeros((n_in, n_out), np.float32)
    S[2 * np.arange(n_out), np.arange(n_out)] = 1.0
    return jnp.asarray(S)


def _row_selector(n_ch, h_in, offset):
    h_out = h_in // 2
    E = np.zeros((n_ch * h_out, n_ch * h_in), np.float32)
    ph = np.arange(h_out)
    for c in range(n_ch):
        E[c * h_out + ph, c * h_in + 2 * ph + offset] = 1.0
    return jnp.asarray(E)


def _fold_conv_bn(gamma, beta, bias, h_out):
    inv = np.float32(1.0 / np.sqrt(1.0 + _BN_EPS))        # running_var = 1 (eval mode)
    s = np.asarray(gamma, np.float32) * inv
    t = np.asarray(beta, np.float32) + s * np.asarray(bias, np.float32)
    return (jnp.asarray(np.repeat(s, h_out)[:, None].astype(np.float32)),
            jnp.asarray(np.repeat(t, h_out)[:, None].astype(np.float32)))


def _fold_dense_bn(gamma, beta):
    inv = np.float32(1.0 / np.sqrt(1.0 + _BN_EPS))
    s = (np.asarray(gamma, np.float32) * inv).astype(np.float32)
    t = np.asarray(beta, np.float32)                       # running_mean = 0
    return jnp.asarray(s[None, :]), jnp.asarray(t[None, :])


def init_params(key, dense_dim):
    ks = jax.random.split(key, 24)

    def nrm(k, shape, s=0.05):
        return s * jax.random.normal(k, shape, dtype=jnp.float32)

    p = {}
    p["w1"], p["b1"] = nrm(ks[0], (C1, 1, 3, 3)), nrm(ks[1], (C1,))
    p["g1"], p["beta1"] = 1.0 + nrm(ks[2], (C1,)), nrm(ks[3], (C1,))
    p["w2"], p["b2"] = nrm(ks[4], (C2, C1, 3, 3)), nrm(ks[5], (C2,))
    p["g2"], p["beta2"] = 1.0 + nrm(ks[6], (C2,)), nrm(ks[7], (C2,))
    p["wfc"], p["bfc"] = nrm(ks[8], (150, FLAT)), nrm(ks[9], (150,))
    p["wd1"], p["bd1"] = nrm(ks[10], (512, dense_dim)), nrm(ks[11], (512,))
    p["gd1"], p["betad1"] = 1.0 + nrm(ks[12], (512,)), nrm(ks[13], (512,))
    p["wd2"], p["bd2"] = nrm(ks[14], (128, 512)), nrm(ks[15], (128,))
    p["gd2"], p["betad2"] = 1.0 + nrm(ks[16], (128,)), nrm(ks[17], (128,))
    p["wd3"], p["bd3"] = nrm(ks[18], (64, 128)), nrm(ks[19], (64,))
    p["gd3"], p["betad3"] = 1.0 + nrm(ks[20], (64,)), nrm(ks[21], (64,))
    p["watt"], p["batt"] = nrm(ks[22], (1, 256)), nrm(ks[23], (1,))
    return p


def prepare_kernel_params(p):
    prep = {}
    prep["L1"] = _conv_left_factors(p["w1"], H_IN)         # (3, 240, 42)
    prep["L2"] = _conv_left_factors(p["w2"], HP1)          # (3, 288, 120)
    prep["s1"], prep["t1"] = _fold_conv_bn(p["g1"], p["beta1"], p["b1"], H1)
    prep["s2"], prep["t2"] = _fold_conv_bn(p["g2"], p["beta2"], p["b2"], H2)
    prep["selc1"] = _even_col_selector(W1 - 1, WP1)
    prep["E1"] = _row_selector(C1, H1, 0)
    prep["O1"] = _row_selector(C1, H1, 1)
    prep["selc2"] = _even_col_selector(W2 - 1, WP2)
    prep["E2"] = _row_selector(C2, H2, 0)
    prep["O2"] = _row_selector(C2, H2, 1)
    prep["wfc"] = jnp.transpose(p["wfc"])                  # (5184, 150), NCHW flatten order
    prep["bfc"] = p["bfc"].reshape(1, -1)
    prep["wd1"], prep["bd1"] = jnp.transpose(p["wd1"]), p["bd1"].reshape(1, -1)
    prep["sd1"], prep["td1"] = _fold_dense_bn(p["gd1"], p["betad1"])
    prep["wd2"], prep["bd2"] = jnp.transpose(p["wd2"]), p["bd2"].reshape(1, -1)
    prep["sd2"], prep["td2"] = _fold_dense_bn(p["gd2"], p["betad2"])
    prep["wd3"], prep["bd3"] = jnp.transpose(p["wd3"]), p["bd3"].reshape(1, -1)
    prep["sd3"], prep["td3"] = _fold_dense_bn(p["gd3"], p["betad3"])
    prep["wa"] = p["watt"][:, :42]                         # att_fc split: [bmm | conv_fc | mord]
    prep["wf"] = p["watt"][:, 42:192]
    prep["wm"] = p["watt"][:, 192:256]
    prep["batt"] = p["batt"].reshape(1, 1)
    return prep


# ------------------------------------------------------------------------------ forward
def united_net_forward(prep, x_img, x_mord, x_mat):
    B = x_img.shape[0]
    x2d = x_img.reshape(B, H_IN, W_IN)                     # single input channel
    feats = conv_trunk(x2d, prep)                          # (B, 144, 36)
    flat = feats.reshape(B, FLAT)                          # free reshape; matches NCHW flatten
    return heads(flat, x_mord, x_mat, prep)                # (B, 1)


# --------------------------------------------------------------------------------- main
if __name__ == "__main__":
    key = jax.random.PRNGKey(0)
    k_img, k_mord, k_mat, k_par = jax.random.split(key, 4)

    B = 2
    dense_dim = 256
    # spatial size 42x150 is fixed by the architecture (16*9*36 flatten -> conv_fc)
    x_img = jax.random.normal(k_img, (B, 1, H_IN, W_IN), dtype=jnp.float32)
    x_mord = jax.random.normal(k_mord, (B, dense_dim), dtype=jnp.float32)
    x_mat = jax.random.normal(k_mat, (B, 150, 42), dtype=jnp.float32)

    params = init_params(k_par, dense_dim)
    prep = prepare_kernel_params(params)

    probs = united_net_forward(prep, x_img, x_mord, x_mat)
    probs = jax.block_until_ready(probs)

    assert probs.shape == (B, 1)
    assert bool(jnp.all(jnp.isfinite(probs)))
    assert bool(jnp.all((probs >= 0.0) & (probs <= 1.0)))
    print("KERNEL_OK")
</pallas_src>

<mosaic_0001>
module attributes {stable_mosaic.version = 11 : i64} {
  func.func @_conv_trunk_kernel(%arg0: i32, %arg1: memref<1x42x150xf32, #tpu.memory_space<vmem>>, %arg2: memref<3x240x42xf32, #tpu.memory_space<vmem>>, %arg3: memref<3x288x120xf32, #tpu.memory_space<vmem>>, %arg4: memref<240x1xf32, #tpu.memory_space<vmem>>, %arg5: memref<240x1xf32, #tpu.memory_space<vmem>>, %arg6: memref<288x1xf32, #tpu.memory_space<vmem>>, %arg7: memref<288x1xf32, #tpu.memory_space<vmem>>, %arg8: memref<147x74xf32, #tpu.memory_space<vmem>>, %arg9: memref<120x240xf32, #tpu.memory_space<vmem>>, %arg10: memref<120x240xf32, #tpu.memory_space<vmem>>, %arg11: memref<71x36xf32, #tpu.memory_space<vmem>>, %arg12: memref<144x288xf32, #tpu.memory_space<vmem>>, %arg13: memref<144x288xf32, #tpu.memory_space<vmem>>, %arg14: memref<1x144x36xf32, #tpu.memory_space<vmem>>) attributes {dimension_semantics = [#tpu.dimension_semantics<parallel>], iteration_bounds = array<i64: 2>, scalar_prefetch = 0 : i64, scratch_operands = 0 : i64, tpu.core_type = #tpu.core_type<tc>, window_params = [{transform_indices = @transform_0, window_bounds = array<i64: 1, 42, 150>}, {pipeline_mode = #tpu.pipeline_mode<synchronous>, transform_indices = @transform_1, window_bounds = array<i64: 3, 240, 42>}, {pipeline_mode = #tpu.pipeline_mode<synchronous>, transform_indices = @transform_2, window_bounds = array<i64: 3, 288, 120>}, {pipeline_mode = #tpu.pipeline_mode<synchronous>, transform_indices = @transform_3, window_bounds = array<i64: 240, 1>}, {pipeline_mode = #tpu.pipeline_mode<synchronous>, transform_indices = @transform_4, window_bounds = array<i64: 240, 1>}, {pipeline_mode = #tpu.pipeline_mode<synchronous>, transform_indices = @transform_5, window_bounds = array<i64: 288, 1>}, {pipeline_mode = #tpu.pipeline_mode<synchronous>, transform_indices = @transform_6, window_bounds = array<i64: 288, 1>}, {pipeline_mode = #tpu.pipeline_mode<synchronous>, transform_indices = @transform_7, window_bounds = array<i64: 147, 74>}, {pipeline_mode = #tpu.pipeline_mode<synchronous>, transform_indices = @transform_8, window_bounds = array<i64: 120, 240>}, {pipeline_mode = #tpu.pipeline_mode<synchronous>, transform_indices = @transform_9, window_bounds = array<i64: 120, 240>}, {pipeline_mode = #tpu.pipeline_mode<synchronous>, transform_indices = @transform_10, window_bounds = array<i64: 71, 36>}, {pipeline_mode = #tpu.pipeline_mode<synchronous>, transform_indices = @transform_11, window_bounds = array<i64: 144, 288>}, {pipeline_mode = #tpu.pipeline_mode<synchronous>, transform_indices = @transform_12, window_bounds = array<i64: 144, 288>}, {transform_indices = @transform_13, window_bounds = array<i64: 1, 144, 36>}]} {
    %c0 = arith.constant 0 : index
    %c0_0 = arith.constant 0 : index
    %c0_1 = arith.constant 0 : index
    %0 = vector.load %arg1[%c0, %c0_0, %c0_1] : memref<1x42x150xf32, #tpu.memory_space<vmem>>, vector<1x42x150xf32>
    %1 = vector.shape_cast %0 : vector<1x42x150xf32> to vector<42x150xf32>
    %c0_2 = arith.constant 0 : index
    %c0_3 = arith.constant 0 : index
    %c0_4 = arith.constant 0 : index
    %2 = vector.load %arg2[%c0_2, %c0_3, %c0_4] : memref<3x240x42xf32, #tpu.memory_space<vmem>>, vector<1x240x42xf32>
    %3 = vector.shape_cast %2 : vector<1x240x42xf32> to vector<240x42xf32>
    %4 = vector.extract_strided_slice %1 {offsets = [0, 0], sizes = [42, 148], strides = [1, 1]} : vector<42x150xf32> to vector<42x148xf32>
    %cst = arith.constant dense<0.000000e+00> : vector<240x148xf32>
    %5 = tpu.matmul %3, %4, %cst {dimension_numbers = #tpu.dot_dimension_numbers<[1], [0], [0], [1], [0, 0, 1, 1], [], []>} : vector<240x42xf32>, vector<42x148xf32>, vector<240x148xf32> -> vector<240x148xf32>
    %c1 = arith.constant 1 : index
    %c0_5 = arith.constant 0 : index
    %c0_6 = arith.constant 0 : index
    %6 = vector.load %arg2[%c1, %c0_5, %c0_6] : memref<3x240x42xf32, #tpu.memory_space<vmem>>, vector<1x240x42xf32>
    %7 = vector.shape_cast %6 : vector<1x240x42xf32> to vector<240x42xf32>
    %8 = vector.extract_strided_slice %1 {offsets = [0, 1], sizes = [42, 148], strides = [1, 1]} : vector<42x150xf32> to vector<42x148xf32>
    %cst_7 = arith.constant dense<0.000000e+00> : vector<240x148xf32>
    %9 = tpu.matmul %7, %8, %cst_7 {dimension_numbers = #tpu.dot_dimension_numbers<[1], [0], [0], [1], [0, 0, 1, 1], [], []>} : vector<240x42xf32>, vector<42x148xf32>, vector<240x148xf32> -> vector<240x148xf32>
    %10 = arith.addf %5, %9 : vector<240x148xf32>
    %c2 = arith.constant 2 : index
    %c0_8 = arith.constant 0 : index
    %c0_9 = arith.constant 0 : index
    %11 = vector.load %arg2[%c2, %c0_8, %c0_9] : memref<3x240x42xf32, #tpu.memory_space<vmem>>, vector<1x240x42xf32>
    %12 = vector.shape_cast %11 : vector<1x240x42xf32> to vector<240x42xf32>
    %13 = vector.extract_strided_slice %1 {offsets = [0, 2], sizes = [42, 148], strides = [1, 1]} : vector<42x150xf32> to vector<42x148xf32>
    %cst_10 = arith.constant dense<0.000000e+00> : vector<240x148xf32>
    %14 = tpu.matmul %12, %13, %cst_10 {dimension_numbers = #tpu.dot_dimension_numbers<[1], [0], [0], [1], [0, 0, 1, 1], [], []>} : vector<240x42xf32>, vector<42x148xf32>, vector<240x148xf32> -> vector<240x148xf32>
    %15 = arith.addf %10, %14 : vector<240x148xf32>
    %c0_11 = arith.constant 0 : index
    %c0_12 = arith.constant 0 : index
    %16 = vector.load %arg4[%c0_11, %c0_12] : memref<240x1xf32, #tpu.memory_space<vmem>>, vector<240x1xf32>
    %17 = vector.broadcast %16 : vector<240x1xf32> to vector<240x148xf32>
    %18 = arith.mulf %15, %17 : vector<240x148xf32>
    %c0_13 = arith.constant 0 : index
    %c0_14 = arith.constant 0 : index
    %19 = vector.load %arg5[%c0_13, %c0_14] : memref<240x1xf32, #tpu.memory_space<vmem>>, vector<240x1xf32>
    %20 = vector.broadcast %19 : vector<240x1xf32> to vector<240x148xf32>
    %21 = arith.addf %18, %20 : vector<240x148xf32>
    %cst_15 = arith.constant 0.000000e+00 : f32
    %22 = vector.broadcast %cst_15 : f32 to vector<240x148xf32>
    %23 = arith.maximumf %21, %22 : vector<240x148xf32>
    %24 = vector.extract_strided_slice %23 {offsets = [0, 0], sizes = [240, 147], strides = [1, 1]} : vector<240x148xf32> to vector<240x147xf32>
    %25 = vector.extract_strided_slice %23 {offsets = [0, 1], sizes = [240, 147], strides = [1, 1]} : vector<240x148xf32> to vector<240x147xf32>
    %26 = arith.maximumf %24, %25 : vector<240x147xf32>
    %c0_16 = arith.constant 0 : index
    %c0_17 = arith.constant 0 : index
    %27 = vector.load %arg8[%c0_16, %c0_17] : memref<147x74xf32, #tpu.memory_space<vmem>>, vector<147x74xf32>
    %cst_18 = arith.constant dense<0.000000e+00> : vector<240x74xf32>
    %28 = tpu.matmul %26, %27, %cst_18 {dimension_numbers = #tpu.dot_dimension_numbers<[1], [0], [0], [1], [0, 0, 1, 1], [], []>} : vector<240x147xf32>, vector<147x74xf32>, vector<240x74xf32> -> vector<240x74xf32>
    %c0_19 = arith.constant 0 : index
    %c0_20 = arith.constant 0 : index
    %29 = vector.load %arg9[%c0_19, %c0_20] : memref<120x240xf32, #tpu.memory_space<vmem>>, vector<120x240xf32>
    %cst_21 = arith.constant dense<0.000000e+00> : vector<120x74xf32>
    %30 = tpu.matmul %29, %28, %cst_21 {dimension_numbers = #tpu.dot_dimension_numbers<[1], [0], [0], [1], [0, 0, 1, 1], [], []>} : vector<120x240xf32>, vector<240x74xf32>, vector<120x74xf32> -> vector<120x74xf32>
    %c0_22 = arith.constant 0 : index
    %c0_23 = arith.constant 0 : index
    %31 = vector.load %arg10[%c0_22, %c0_23] : memref<120x240xf32, #tpu.memory_space<vmem>>, vector<120x240xf32>
    %cst_24 = arith.constant dense<0.000000e+00> : vector<120x74xf32>
    %32 = tpu.matmul %31, %28, %cst_24 {dimension_numbers = #tpu.dot_dimension_numbers<[1], [0], [0], [1], [0, 0, 1, 1], [], []>} : vector<120x240xf32>, vector<240x74xf32>, vector<120x74xf32> -> vector<120x74xf32>
    %33 = arith.maximumf %30, %32 : vector<120x74xf32>
    %c0_25 = arith.constant 0 : index
    %c0_26 = arith.constant 0 : index
    %c0_27 = arith.constant 0 : index
    %34 = vector.load %arg3[%c0_25, %c0_26, %c0_27] : memref<3x288x120xf32, #tpu.memory_space<vmem>>, vector<1x288x120xf32>
    %35 = vector.shape_cast %34 : vector<1x288x120xf32> to vector<288x120xf32>
    %36 = vector.extract_strided_slice %33 {offsets = [0, 0], sizes = [120, 72], strides = [1, 1]} : vector<120x74xf32> to vector<120x72xf32>
    %cst_28 = arith.constant dense<0.000000e+00> : vector<288x72xf32>
    %37 = tpu.matmul %35, %36, %cst_28 {dimension_numbers = #tpu.dot_dimension_numbers<[1], [0], [0], [1], [0, 0, 1, 1], [], []>} : vector<288x120xf32>, vector<120x72xf32>, vector<288x72xf32> -> vector<288x72xf32>
    %c1_29 = arith.constant 1 : index
    %c0_30 = arith.constant 0 : index
    %c0_31 = arith.constant 0 : index
    %38 = vector.load %arg3[%c1_29, %c0_30, %c0_31] : memref<3x288x120xf32, #tpu.memory_space<vmem>>, vector<1x288x120xf32>
    %39 = vector.shape_cast %38 : vector<1x288x120xf32> to vector<288x120xf32>
    %40 = vector.extract_strided_slice %33 {offsets = [0, 1], sizes = [120, 72], strides = [1, 1]} : vector<120x74xf32> to vector<120x72xf32>
    %cst_32 = arith.constant dense<0.000000e+00> : vector<288x72xf32>
    %41 = tpu.matmul %39, %40, %cst_32 {dimension_numbers = #tpu.dot_dimension_numbers<[1], [0], [0], [1], [0, 0, 1, 1], [], []>} : vector<288x120xf32>, vector<120x72xf32>, vector<288x72xf32> -> vector<288x72xf32>
    %42 = arith.addf %37, %41 : vector<288x72xf32>
    %c2_33 = arith.constant 2 : index
    %c0_34 = arith.constant 0 : index
    %c0_35 = arith.constant 0 : index
    %43 = vector.load %arg3[%c2_33, %c0_34, %c0_35] : memref<3x288x120xf32, #tpu.memory_space<vmem>>, vector<1x288x120xf32>
    %44 = vector.shape_cast %43 : vector<1x288x120xf32> to vector<288x120xf32>
    %45 = vector.extract_strided_slice %33 {offsets = [0, 2], sizes = [120, 72], strides = [1, 1]} : vector<120x74xf32> to vector<120x72xf32>
    %cst_36 = arith.constant dense<0.000000e+00> : vector<288x72xf32>
    %46 = tpu.matmul %44, %45, %cst_36 {dimension_numbers = #tpu.dot_dimension_numbers<[1], [0], [0], [1], [0, 0, 1, 1], [], []>} : vector<288x120xf32>, vector<120x72xf32>, vector<288x72xf32> -> vector<288x72xf32>
    %47 = arith.addf %42, %46 : vector<288x72xf32>
    %c0_37 = arith.constant 0 : index
    %c0_38 = arith.constant 0 : index
    %48 = vector.load %arg6[%c0_37, %c0_38] : memref<288x1xf32, #tpu.memory_space<vmem>>, vector<288x1xf32>
    %49 = vector.broadcast %48 : vector<288x1xf32> to vector<288x72xf32>
    %50 = arith.mulf %47, %49 : vector<288x72xf32>
    %c0_39 = arith.constant 0 : index
    %c0_40 = arith.constant 0 : index
    %51 = vector.load %arg7[%c0_39, %c0_40] : memref<288x1xf32, #tpu.memory_space<vmem>>, vector<288x1xf32>
    %52 = vector.broadcast %51 : vector<288x1xf32> to vector<288x72xf32>
    %53 = arith.addf %50, %52 : vector<288x72xf32>
    %cst_41 = arith.constant 0.000000e+00 : f32
    %54 = vector.broadcast %cst_41 : f32 to vector<288x72xf32>
    %55 = arith.maximumf %53, %54 : vector<288x72xf32>
    %56 = vector.extract_strided_slice %55 {offsets = [0, 0], sizes = [288, 71], strides = [1, 1]} : vector<288x72xf32> to vector<288x71xf32>
    %57 = vector.extract_strided_slice %55 {offsets = [0, 1], sizes = [288, 71], strides = [1, 1]} : vector<288x72xf32> to vector<288x71xf32>
    %58 = arith.maximumf %56, %57 : vector<288x71xf32>
    %c0_42 = arith.constant 0 : index
    %c0_43 = arith.constant 0 : index
    %59 = vector.load %arg11[%c0_42, %c0_43] : memref<71x36xf32, #tpu.memory_space<vmem>>, vector<71x36xf32>
    %cst_44 = arith.constant dense<0.000000e+00> : vector<288x36xf32>
    %60 = tpu.matmul %58, %59, %cst_44 {dimension_numbers = #tpu.dot_dimension_numbers<[1], [0], [0], [1], [0, 0, 1, 1], [], []>} : vector<288x71xf32>, vector<71x36xf32>, vector<288x36xf32> -> vector<288x36xf32>
    %c0_45 = arith.constant 0 : index
    %c0_46 = arith.constant 0 : index
    %61 = vector.load %arg12[%c0_45, %c0_46] : memref<144x288xf32, #tpu.memory_space<vmem>>, vector<144x288xf32>
    %cst_47 = arith.constant dense<0.000000e+00> : vector<144x36xf32>
    %62 = tpu.matmul %61, %60, %cst_47 {dimension_numbers = #tpu.dot_dimension_numbers<[1], [0], [0], [1], [0, 0, 1, 1], [], []>} : vector<144x288xf32>, vector<288x36xf32>, vector<144x36xf32> -> vector<144x36xf32>
    %c0_48 = arith.constant 0 : index
    %c0_49 = arith.constant 0 : index
    %63 = vector.load %arg13[%c0_48, %c0_49] : memref<144x288xf32, #tpu.memory_space<vmem>>, vector<144x288xf32>
    %cst_50 = arith.constant dense<0.000000e+00> : vector<144x36xf32>
    %64 = tpu.matmul %63, %60, %cst_50 {dimension_numbers = #tpu.dot_dimension_numbers<[1], [0], [0], [1], [0, 0, 1, 1], [], []>} : vector<144x288xf32>, vector<288x36xf32>, vector<144x36xf32> -> vector<144x36xf32>
    %65 = arith.maximumf %62, %64 : vector<144x36xf32>
    %c0_51 = arith.constant 0 : index
    %c0_52 = arith.constant 0 : index
    %c0_53 = arith.constant 0 : index
    %66 = vector.load %arg14[%c0_51, %c0_52, %c0_53] : memref<1x144x36xf32, #tpu.memory_space<vmem>>, vector<1x144x36xf32>
    %67 = vector.shape_cast %66 : vector<1x144x36xf32> to vector<144x36xf32>
    %68 = vector.shape_cast %65 : vector<144x36xf32> to vector<1x144x36xf32>
    tpu.vector_store %arg14[%c0_51, %c0_52, %c0_53], %68 {strides = array<i32>} : memref<1x144x36xf32, #tpu.memory_space<vmem>>, vector<1x144x36xf32>,
    return
  }
  func.func @transform_0(%arg0: i32) -> (i32, i32, i32) {
    %c0_i32 = arith.constant 0 : i32
    %c0_i32_0 = arith.constant 0 : i32
    %c0_i32_1 = arith.constant 0 : i32
    return %arg0, %c0_i32, %c0_i32_0 : i32, i32, i32
  }
  func.func @transform_1(%arg0: i32) -> (i32, i32, i32) {
    %c0_i32 = arith.constant 0 : i32
    %c0_i32_0 = arith.constant 0 : i32
    %c0_i32_1 = arith.constant 0 : i32
    %c0_i32_2 = arith.constant 0 : i32
    return %c0_i32, %c0_i32_0, %c0_i32_1 : i32, i32, i32
  }
  func.func @transform_2(%arg0: i32) -> (i32, i32, i32) {
    %c0_i32 = arith.constant 0 : i32
    %c0_i32_0 = arith.constant 0 : i32
    %c0_i32_1 = arith.constant 0 : i32
    %c0_i32_2 = arith.constant 0 : i32
    return %c0_i32, %c0_i32_0, %c0_i32_1 : i32, i32, i32
  }
  func.func @transform_3(%arg0: i32) -> (i32, i32) {
    %c0_i32 = arith.constant 0 : i32
    %c0_i32_0 = arith.constant 0 : i32
    %c0_i32_1 = arith.constant 0 : i32
    return %c0_i32, %c0_i32_0 : i32, i32
  }
  func.func @transform_4(%arg0: i32) -> (i32, i32) {
    %c0_i32 = arith.constant 0 : i32
    %c0_i32_0 = arith.constant 0 : i32
    %c0_i32_1 = arith.constant 0 : i32
    return %c0_i32, %c0_i32_0 : i32, i32
  }
  func.func @transform_5(%arg0: i32) -> (i32, i32) {
    %c0_i32 = arith.constant 0 : i32
    %c0_i32_0 = arith.constant 0 : i32
    %c0_i32_1 = arith.constant 0 : i32
    return %c0_i32, %c0_i32_0 : i32, i32
  }
  func.func @transform_6(%arg0: i32) -> (i32, i32) {
    %c0_i32 = arith.constant 0 : i32
    %c0_i32_0 = arith.constant 0 : i32
    %c0_i32_1 = arith.constant 0 : i32
    return %c0_i32, %c0_i32_0 : i32, i32
  }
  func.func @transform_7(%arg0: i32) -> (i32, i32) {
    %c0_i32 = arith.constant 0 : i32
    %c0_i32_0 = arith.constant 0 : i32
    %c0_i32_1 = arith.constant 0 : i32
    return %c0_i32, %c0_i32_0 : i32, i32
  }
  func.func @transform_8(%arg0: i32) -> (i32, i32) {
    %c0_i32 = arith.constant 0 : i32
    %c0_i32_0 = arith.constant 0 : i32
    %c0_i32_1 = arith.constant 0 : i32
    return %c0_i32, %c0_i32_0 : i32, i32
  }
  func.func @transform_9(%arg0: i32) -> (i32, i32) {
    %c0_i32 = arith.constant 0 : i32
    %c0_i32_0 = arith.constant 0 : i32
    %c0_i32_1 = arith.constant 0 : i32
    return %c0_i32, %c0_i32_0 : i32, i32
  }
  func.func @transform_10(%arg0: i32) -> (i32, i32) {
    %c0_i32 = arith.constant 0 : i32
    %c0_i32_0 = arith.constant 0 : i32
    %c0_i32_1 = arith.constant 0 : i32
    return %c0_i32, %c0_i32_0 : i32, i32
  }
  func.func @transform_11(%arg0: i32) -> (i32, i32) {
    %c0_i32 = arith.constant 0 : i32
    %c0_i32_0 = arith.constant 0 : i32
    %c0_i32_1 = arith.constant 0 : i32
    return %c0_i32, %c0_i32_0 : i32, i32
  }
  func.func @transform_12(%arg0: i32) -> (i32, i32) {
    %c0_i32 = arith.constant 0 : i32
    %c0_i32_0 = arith.constant 0 : i32
    %c0_i32_1 = arith.constant 0 : i32
    return %c0_i32, %c0_i32_0 : i32, i32
  }
  func.func @transform_13(%arg0: i32) -> (i32, i32, i32) {
    %c0_i32 = arith.constant 0 : i32
    %c0_i32_0 = arith.constant 0 : i32
    %c0_i32_1 = arith.constant 0 : i32
    return %arg0, %c0_i32, %c0_i32_0 : i32, i32, i32
  }
}

</mosaic_0001>

<bundles_post_ra>
// kernel: tpu_custom_call.1
= control target key start
LH: loop header
LB: loop body
LE: loop exit
PB: predicated region body
PF: predicated region fallthrough
CT: control target
= control target key end

     0   :  { %18 = vsyncpa [#allocation3], 0  ;;  %s8717_s25 = smov 0   ;;  %s12360_s0 = inlined_call_operand.vmem [shape: f32[2,42,150], index: 0, kind: input, shape index: {}]   ;;  %s12361_s1 = inlined_call_operand.vmem [shape: f32[3,240,42], index: 1, kind: input, shape index: {}]   ;;  %s12362_s2 = inlined_call_operand.vmem [shape: f32[3,288,120], index: 2, kind: input, shape index: {}]   ;;  %s12363_s3 = inlined_call_operand.vmem [shape: f32[240,1], index: 3, kind: input, shape index: {}]   ;;  %s12364_s4 = inlined_call_operand.vmem [shape: f32[240,1], index: 4, kind: input, shape index: {}]   ;;  %s12365_s5 = inlined_call_operand.vmem [shape: f32[288,1], index: 5, kind: input, shape index: {}]   ;;  %s12366_s6 = inlined_call_operand.vmem [shape: f32[288,1], index: 6, kind: input, shape index: {}]   ;;  %s12367_s7 = inlined_call_operand.hbm [shape: f32[147,74], index: 7, kind: input, shape index: {}]   ;;  %s12368_s8 = inlined_call_operand.vmem [shape: f32[120,240], index: 8, kind: input, shape index: {}]   ;;  %s12369_s9 = inlined_call_operand.vmem [shape: f32[120,240], index: 9, kind: input, shape index: {}]   ;;  %s12370_s10 = inlined_call_operand.vmem [shape: f32[71,36], index: 10, kind: input, shape index: {}]   ;;  %s12371_s11 = inlined_call_operand.vmem [shape: f32[144,288], index: 11, kind: input, shape index: {}]   ;;  %s12372_s12 = inlined_call_operand.vmem [shape: f32[144,288], index: 12, kind: input, shape index: {}]   ;;  %s12373_s13 = inlined_call_operand.vmem [shape: f32[2,144,36], index: 13, kind: output, shape index: {}]  }
   0x1 LB: > { %s8723_s26 = sadd.s32 4294967295, %s8636_s25   ;;  %p6719_p0 = scmp.ge.s32.totalorder %s8636_s25, 1  ;;  %s8636_s25 = sphi %s8717_s25, %s24_s25  }
   0x2   : > { %p333_p1 = scmp.lt.s32.totalorder %s8636_s25, 3  ;;  %s8638_s27 = smov [#allocation2]  }
   0x3   : > { %s363_s28 = sshll.u32 %s8638_s27, 4  ;;  %p12374_p3 = scmp.eq.s32.totalorder %s8723_s26, 0  ;;  %s364_s28 = int_to_ptr.vmem [resolvable:$true] %s363_s28 }
   0x4   : > { %p8727_p2 = pnand %p6719_p0, %p333_p1  ;;  %s8598_s16 = scalar_lea.hbm %s12367_s7, 2432 }
   0x5   : > { %p8599_p6 = scmp.ne.s32.totalorder %s12367_s7, %s8598_s16  ;;  %p8605_p10 = scmp.lt.u32.totalorder %s8598_s16, %s12367_s7 }
   0x6   : > { %s12459_s29 = scalar_select %p8727_p2, 1, 0 }
   0x7   : > { %p8413_p4 = pneg %p8727_p2 }
   0x9   : > { %p8736_p5 = pnand %p12374_p3, %p8413_p4 }
   0xb   : > { %p8600_p7 = pneg %p8736_p5 }
   0xd   : > { %p8601_p8 = pnand %p8600_p7, %p8599_p6 }
   0xf   : > { %p8602_p9 = pneg %p8601_p8 }
  0x11   : > { %p8607_p11 = pnand %p8605_p10, %p8602_p9 }
  0x13   : > { %8610 = shalt.err (!%p8607_p11)
}
  0x14   : > { %s8611_s21 = scalar_lea.vmem %s364_s28, 2432  ;;  %p8619_p1 = scmp.lt.s32.totalorder %s364_s28, %s364_s28 }
  0x15   : > { %p8612_p12 = scmp.ne.s32.totalorder %s364_s28, %s8611_s21  ;;  %p8620_p4 = scmp.lt.s32.totalorder %s8611_s21, %s8611_s21 }
  0x17   : > { %p8614_p13 = pnand %p8612_p12, %p8600_p7  ;;  %p8621_p3 = por %p8620_p4, %p8619_p1 }
  0x19   : > { %p8615_p0 = pneg %p8614_p13 }
  0x1b   : > { %p8622_p2 = pnand %p8621_p3, %p8615_p0 }
  0x1d   : > { %8625 = shalt.err (!%p8622_p2)
}
  0x1e   : > { %s8639_s22 = smov 128   ;;  %s8640_s23 = smov 8  }
  0x1f   : > { %8416 = dma.hbm_to_vmem [thread:$0]  (!%p8736_p5), %s12367_s7, 2432, %s364_s28, [#allocation3], %s8639_s22, %s8639_s22, %s8640_s23  }
  0x20   : > { %p12461_p6 = scmp.ne.s32.totalorder %s12459_s29, 0 }
  0x22   : > { %402 = sbr.rel (%p12461_p6) target bundleno = 2800 (0xaf0), region = 72 }
  0x29   : > { %p12462_p8 = scmp.eq.s32.totalorder %s8723_s26, 0 }
  0x2b   : > { %8631 = dma.done.wait (%p12462_p8), [#allocation3], 2432   ;;  %p12463_p7 = pmov %p12462_p8 }
  0x2c   : > { %p446_p2 = scmp.lt.s32.totalorder %s8723_s26, 1  ;;  %s8641_s29 = smov 127   ;;  %v8642_v20 = vmov 0.0   ;;  %vm565_vm0 = vcmask 1039360   ;;  %vm673_vm1 = vcmask 1041408   ;;  %vm8644_vm2 = vmmov 1  }
  0x2d   : > { %8633 = vsyncadd (%p12463_p7), [#allocation3], 4294964864  ;;  %742 = vmatprep.mubr.f32.mxu0 %v8642_v20  ;;  %s8643_s16 = smov 126   ;;  %vm582_vm4 = vcmask 343040   ;;  %vm1317_vm5 = vcmask 1031168   ;;  %v6726_v56 = vld [vmem:[%s12361_s1 + $0xf0] sm:$0xff] }
  0x2e   : > { %s12559_s26 = smov (!%p446_p2, %s8723_s26), 1  ;;  %vm8834_vm3 = vmpackc.low %vm673_vm1, %vm8644_vm2  ;;  %v1744_v52 = vld [vmem:[%s12363_s3 + $0x58] sm:$0xff]  ;;  %vm2713_vm6 = vcmask 1042432   ;;  %vm2622_vm7 = vcmask 154624   ;;  %vm2962_vm8 = vcmask 916480   ;;  %vm3511_vm9 = vcmask 982016  }
  0x2f   : > { %s8407_s30 = smul.u32 96, %s12559_s26  ;;  %vm5527_vm10 = vcmask 1046528   ;;  %vm5418_vm11 = vcmask 580608   ;;  %vm5830_vm12 = vcmask 261120   ;;  %vm6631_vm13 = vcmask 293888  }
  0x31   : > { %s450_s28 = scalar_lea.vmem %s12360_s0, %s8407_s30  ;;  %s8408_s30 = smul.u32 144, %s12559_s26 }
  0x32   : > { %v8770_v0 = vld [vmem:[%s450_s28 + $0x20] sm:$0xff]  ;;  %v8772_v1 = vld [vmem:[%s450_s28 + $0x28] sm:$0xff]  ;;  %v8774_v2 = vld [vmem:[%s450_s28 + $0x30] sm:$0xff] }
  0x33   : > { %v8446_v3 = vpack.i.bf16 %v8772_v1, %v8770_v0  ;;  %v7854_v4 = vpack.c.bf16 %v8774_v2, %v8770_v0  ;;  %v8780_v5 = vld [vmem:[%s450_s28] sm:$0xff]  ;;  %v8782_v6 = vld [vmem:[%s450_s28 + $0x8] sm:$0xff]  ;;  %v8784_v7 = vld [vmem:[%s450_s28 + $0x10] sm:$0xff] }
  0x34   : > { %v8436_v8 = vpack.i.bf16 %v8782_v6, %v8780_v5  ;;  %v7850_v9 = vpack.c.bf16 %v8784_v7, %v8780_v5  ;;  %v8790_v10 = vld [vmem:[%s450_s28 + $0x38] sm:$0xff]  ;;  %v8800_v14 = vld [vmem:[%s450_s28 + $0x50] sm:$0x3]  ;;  %v8804_v16 = vld [vmem:[%s450_s28 + $0x40] sm:$0xff] }
  0x35   : > { %v8792_v11 = vld [vmem:[%s450_s28 + $0x18] sm:$0xff]  ;;  %8447 = vrot.lane.b32.xlu1 %v8446_v3, %s8641_s29  ;;  %v8451_v12 = vpack.i.bf16 %v8790_v10, %v8774_v2  ;;  %v8806_v17 = vld [vmem:[%s450_s28 + $0x48] sm:$0xff]  ;;  %v7852_v22 = vpack.c.bf16 %v8790_v10, %v8772_v1  ;;  %v6730_v0 = vld [vmem:[%s12361_s1 + $0x110] sm:$0xff] }
  0x36   : > { %8437 = vrot.lane.b32.xlu0 %v8436_v8, %s8641_s29  ;;  %v8441_v13 = vpack.i.bf16 %v8792_v11, %v8784_v7  ;;  %v8802_v15 = vld [vmem:[%s450_s28 + $0x58] sm:$0x3]  ;;  %v8456_v19 = vpack.i.bf16 %v8806_v17, %v8804_v16  ;;  %v7848_v21 = vpack.c.bf16 %v8792_v11, %v8782_v6  ;;  %v7859_v6 = vpack.c.bf16 %v8800_v14, %v8804_v16  ;;  %v6729_v7 = vld [vmem:[%s12361_s1 + $0x108] sm:$0xff]  ;;  %v6734_v10 = vld [vmem:[%s12361_s1 + $0x130] sm:$0xff]  ;;  %s12293_s28 = scalar_lea.vmem %s12373_s13, %s8408_s30 }
  0x37   : > { %v8461_v18 = vpack.i.bf16 %v8802_v15, %v8800_v14  ;;  %v6727_v1 = vld [vmem:[%s12361_s1 + $0xf8] sm:$0xff]  ;;  %v6738_v14 = vld [vmem:[%s12361_s1 + $0x150] sm:$0xff]  ;;  %v6740_v16 = vld [vmem:[%s12361_s1 + $0x160] sm:$0xff] }
  0x38   : > { %v6731_v2 = vld [vmem:[%s12361_s1 + $0x118] sm:$0xff] }
  0x39   : > { %8452 = vrot.lane.b32.xlu1 %v8451_v12, %s8641_s29  ;;  %v6735_v11 = vld [vmem:[%s12361_s1 + $0x138] sm:$0xff] }
  0x3a   : > { %8442 = vrot.lane.b32.xlu0 %v8441_v13, %s8641_s29 }
  0x3d   : > { %8462 = vrot.lane.b32.xlu1 %v8461_v18, %s8641_s29 }
  0x3e   : > { %8457 = vrot.lane.b32.xlu0 %v8456_v19, %s8641_s29 }
  0x41   : > { %8472 = vrot.lane.b32.xlu1 %v8441_v13, %s8643_s16  ;;  %v6737_v13 = vld [vmem:[%s12361_s1 + $0x148] sm:$0xff] }
  0x42   : > { %8467 = vrot.lane.b32.xlu0 %v8436_v8, %s8643_s16  ;;  %v6728_v8 = vld [vmem:[%s12361_s1 + $0x100] sm:$0xff] }
  0x45   : > { %8482 = vrot.lane.b32.xlu1 %v8451_v12, %s8643_s16  ;;  %v6736_v12 = vld [vmem:[%s12361_s1 + $0x140] sm:$0xff] }
  0x46   : > { %8477 = vrot.lane.b32.xlu0 %v8446_v3, %s8643_s16  ;;  %v7856_v3 = vpack.c.bf16 %v8802_v15, %v8806_v17  ;;  %v6739_v15 = vld [vmem:[%s12361_s1 + $0x158] sm:$0xff]  ;;  %v6741_v17 = vld [vmem:[%s12361_s1 + $0x168] sm:$0xff] }
  0x49   : > { %8492 = vrot.lane.b32.xlu1 %v8461_v18, %s8643_s16  ;;  %v6742_v18 = vld [vmem:[%s12361_s1 + $0x170] sm:$0xff] }
  0x4a   : > { %8487 = vrot.lane.b32.xlu0 %v8456_v19, %s8643_s16  ;;  %v6743_v19 = vld [vmem:[%s12361_s1 + $0x178] sm:$0xff] }
  0xa7   : > { %v8448_v23 = vpop.permute.xlu1 %8447 }
  0xa8   : > { %v8438_v24 = vpop.permute.xlu0 %8437  ;;  %v8450_v28 = vunpack.i.h.bf16 %v8448_v23  ;;  %v8449_v29 = vunpack.i.l.bf16 %v8448_v23  ;;  %v6746_v23 = vld [vmem:[%s12361_s1 + $0x190] sm:$0xff] }
  0xa9   : > { %v8439_v25 = vunpack.i.l.bf16 %v8438_v24  ;;  %v8440_v27 = vunpack.i.h.bf16 %v8438_v24  ;;  %v6747_v24 = vld [vmem:[%s12361_s1 + $0x198] sm:$0xff] }
  0xaa   : > { %v568_v43 = vsel %vm565_vm0, %v8449_v29, %v8450_v28  ;;  %v1733_v29 = vld [vmem:[%s12363_s3] sm:$0xff] }
  0xab   : > { %v8453_v26 = vpop.permute.xlu1 %8452  ;;  %v566_v36 = vsel %vm565_vm0, %v8439_v25, %v8440_v27  ;;  %v6748_v25 = vld [vmem:[%s12361_s1 + $0x1a0] sm:$0xff] }
  0xac   : > { %v8443_v30 = vpop.permute.xlu0 %8442  ;;  %v8455_v31 = vunpack.i.h.bf16 %v8453_v26  ;;  %v8454_v32 = vunpack.i.l.bf16 %v8453_v26  ;;  %v6749_v26 = vld [vmem:[%s12361_s1 + $0x1a8] sm:$0xff] }
  0xad   : > { %v8444_v33 = vunpack.i.l.bf16 %v8443_v30  ;;  %v8445_v34 = vunpack.i.h.bf16 %v8443_v30  ;;  %v6750_v30 = vld [vmem:[%s12361_s1 + $0x1b0] sm:$0xff] }
  0xae   : > { %v7838_v44 = vpack.c.bf16 %v8455_v31, %v8450_v28  ;;  %v569_v47 = vsel %vm565_vm0, %v8454_v32, %v8455_v31  ;;  %v1973_v28 = vld [vmem:[%s12364_s4] sm:$0xff]  ;;  %v1734_v31 = vld [vmem:[%s12363_s3 + $0x8] sm:$0xff] }
  0xaf   : > { %v7834_v35 = vpack.c.bf16 %v8445_v34, %v8440_v27  ;;  %v567_v37 = vsel %vm565_vm0, %v8444_v33, %v8445_v34  ;;  %v8463_v38 = vpop.permute.xlu1 %8462  ;;  %v7840_v51 = vpack.c.bf16 %v569_v47, %v568_v43  ;;  %v8645_v27 = vmov 0   ;;  %v1974_v32 = vld [vmem:[%s12364_s4 + $0x8] sm:$0xff]  ;;  %v6751_v33 = vld [vmem:[%s12361_s1 + $0x1b8] sm:$0xff]  ;;  %v1735_v34 = vld [vmem:[%s12363_s3 + $0x10] sm:$0xff] }
  0xb0   : > { %v7836_v39 = vpack.c.bf16 %v567_v37, %v566_v36  ;;  %v8465_v40 = vunpack.i.h.bf16 %v8463_v38  ;;  %v8464_v41 = vunpack.i.l.bf16 %v8463_v38  ;;  %v8458_v42 = vpop.permute.xlu0 %8457  ;;  %8497 = vset.pattern.permute.xlu1 %v8645_v27  ;;  %8496 = vset.pattern.permute.xlu0 %v8645_v27  ;;  %v6752_v36 = vld [vmem:[%s12361_s1 + $0x1c0] sm:$0xff]  ;;  %v1736_v37 = vld [vmem:[%s12363_s3 + $0x18] sm:$0xff]  ;;  %v1747_v27 = vld [vmem:[%s12363_s3 + $0x70] sm:$0xff] }
  0xb1   : > { %7835 = vmatprep.subr.bf16.mxu0 %v7834_v35  ;;  %v8460_v45 = vunpack.i.h.bf16 %v8458_v42  ;;  %v8459_v46 = vunpack.i.l.bf16 %v8458_v42  ;;  %2005 = vperm.xlu1 %8497, %v1973_v28   ;;  %v1975_v35 = vld [vmem:[%s12364_s4 + $0x10] sm:$0xff]  ;;  %v1976_v38 = vld [vmem:[%s12364_s4 + $0x18] sm:$0xff] }
  0xb2   : > { %7837 = vmatpush1.bf16.msra.mxu0 %v7836_v39  ;;  %v571_v48 = vsel %vm565_vm0, %v8464_v41, %v8465_v40  ;;  %1765 = vperm.xlu0 %8496, %v1733_v29   ;;  %v6753_v39 = vld [vmem:[%s12361_s1 + $0x1c8] sm:$0xff]  ;;  %v1977_v41 = vld [vmem:[%s12364_s4 + $0x20] sm:$0xff]  ;;  %v6754_v42 = vld [vmem:[%s12361_s1 + $0x1d0] sm:$0xff] }
  0xb3   : > { %7839 = vmatprep.subr.bf16.mxu0 %v7838_v44  ;;  %v7842_v49 = vpack.c.bf16 %v8465_v40, %v8460_v45  ;;  %v570_v50 = vsel %vm565_vm0, %v8459_v46, %v8460_v45  ;;  %v8473_v54 = vpop.permute.xlu1 %8472  ;;  %v1737_v40 = vld [vmem:[%s12363_s3 + $0x20] sm:$0xff]  ;;  %v1738_v45 = vld [vmem:[%s12363_s3 + $0x28] sm:$0xff]  ;;  %v6755_v47 = vld [vmem:[%s12361_s1 + $0x1d8] sm:$0xff] }
  0xb4   : > { %v7845_v53 = vpack.c.bf16 %v571_v48, %v570_v50  ;;  %v8468_v55 = vpop.permute.xlu0 %8467  ;;  %v8475_v57 = vunpack.i.h.bf16 %v8473_v54  ;;  %v8474_v58 = vunpack.i.l.bf16 %v8473_v54  ;;  %v1978_v46 = vld [vmem:[%s12364_s4 + $0x28] sm:$0xff]  ;;  %v1987_v28 = vld [vmem:[%s12364_s4 + $0x70] sm:$0xff]  ;;  %v476_v29 = vld [vmem:[%s12361_s1 + $0x40] sm:$0xff] }
  0xb5   : > { %v8470_v59 = vunpack.i.h.bf16 %v8468_v55  ;;  %v8469_v60 = vunpack.i.l.bf16 %v8468_v55  ;;  %1770 = vperm.xlu1 %8497, %v1734_v31   ;;  %v1988_v31 = vld [vmem:[%s12364_s4 + $0x78] sm:$0xff] }
  0xb6   : > { %7841 = vmatpush1.bf16.msra.mxu0 %v7840_v51  ;;  %v8846_v61 = vsel %vm1317_vm5, %v8474_v58, %v8475_v57  ;;  %2010 = vperm.xlu0 %8496, %v1974_v32   ;;  %v477_v32 = vld [vmem:[%s12361_s1 + $0x48] sm:$0xff] }
  0xb7   : > { %7844 = vmatprep.subr.msk.bf16.mxu0 %vm8834_vm3, %v7842_v49  ;;  %v8849_v62 = vsel %vm1317_vm5, %v8469_v60, %v8470_v59  ;;  %v7862_v5 = vpack.c.bf16 %v8475_v57, %v8470_v59  ;;  %v8483_v43 = vpop.permute.xlu1 %8482  ;;  %v468_v57 = vld [vmem:[%s12361_s1] sm:$0xff] }
  0xb8   : > { %v7864_v63 = vpack.c.bf16 %v8846_v61, %v8849_v62  ;;  %v8478_v44 = vpop.permute.xlu0 %8477  ;;  %v8485_v48 = vunpack.i.h.bf16 %v8483_v43  ;;  %v8484_v49 = vunpack.i.l.bf16 %v8483_v43  ;;  %v1981_v61 = vld [vmem:[%s12364_s4 + $0x40] sm:$0xff]  ;;  %v470_v62 = vld [vmem:[%s12361_s1 + $0x10] sm:$0xff]  ;;  %v1752_v43 = vld [vmem:[%s12363_s3 + $0x98] sm:$0xff] }
  0xb9   : > { %1775 = vperm.xlu1 %8497, %v1735_v34   ;;  %v8480_v50 = vunpack.i.h.bf16 %v8478_v44  ;;  %v8479_v51 = vunpack.i.l.bf16 %v8478_v44  ;;  %v1989_v34 = vld [vmem:[%s12364_s4 + $0x80] sm:$0xff]  ;;  %v481_v44 = vld [vmem:[%s12361_s1 + $0x68] sm:$0xff] }
  0xba   : > { %7847 = vmatpush1.bf16.msk.msra.mxu0 %vm8834_vm3, %v7845_v53  ;;  %2015 = vperm.xlu0 %8496, %v1975_v35   ;;  %v1739_v53 = vld [vmem:[%s12363_s3 + $0x30] sm:$0xff]  ;;  %v1321_v58 = vsel %vm1317_vm5, %v8484_v49, %v8485_v48  ;;  %v1994_v49 = vld [vmem:[%s12364_s4 + $0xa8] sm:$0xff] }
  0xbb   : > { %7849 = vmatprep.subr.bf16.mxu0 %v7848_v21  ;;  %v6744_v21 = vld [vmem:[%s12361_s1 + $0x180] sm:$0xff]  ;;  %v8493_v54 = vpop.permute.xlu1 %8492  ;;  %v1320_v59 = vsel %vm1317_vm5, %v8479_v51, %v8480_v50  ;;  %v7866_v60 = vpack.c.bf16 %v8485_v48, %v8480_v50  ;;  %v478_v35 = vld [vmem:[%s12361_s1 + $0x50] sm:$0xff]  ;;  %v1754_v48 = vld [vmem:[%s12363_s3 + $0xa8] sm:$0xff] }
  0xbc   : > { %v8488_v55 = vpop.permute.xlu0 %8487  ;;  %v483_v50 = vld [vmem:[%s12361_s1 + $0x78] sm:$0xff]  ;;  %v1755_v51 = vld [vmem:[%s12363_s3 + $0xb0] sm:$0xff] }
  0xbd   : > { %6758 = vmatmul.mubr.msk.f32.vlgmr.msra.gmra.mrb[0].mxu0 %vm582_vm4, %v6726_v56  ;;  %1780 = vperm.xlu1 %8497, %v1736_v37   ;;  %v1979_v56 = vld [vmem:[%s12364_s4 + $0x30] sm:$0xff]  ;;  %v1990_v37 = vld [vmem:[%s12364_s4 + $0x88] sm:$0xff] }
  0xbe   : > { %748 = vmatprep.mubr.f32.mxu0 %v8642_v20  ;;  %7851 = vmatpush1.bf16.msra.mxu0 %v7850_v9  ;;  %v6733_v9 = vld [vmem:[%s12361_s1 + $0x128] sm:$0xff] }
  0xbf   : > { %7853 = vmatprep.subr.bf16.mxu0 %v7852_v22  ;;  %v6745_v22 = vld [vmem:[%s12361_s1 + $0x188] sm:$0xff]  ;;  %2020 = vperm.xlu0 %8496, %v1976_v38   ;;  %v479_v38 = vld [vmem:[%s12361_s1 + $0x58] sm:$0xff] }
  0xc1   : > { %6759 = vmatmul.mubr.msk.f32.gmra.mrb[2].mxu0 %vm582_vm4, %v6727_v1  ;;  %1785 = vperm.xlu1 %8497, %v1737_v40   ;;  %v1740_v1 = vld [vmem:[%s12363_s3 + $0x38] sm:$0xff]  ;;  %v1991_v40 = vld [vmem:[%s12364_s4 + $0x90] sm:$0xff] }
  0xc2   : > { %754 = vmatprep.mubr.f32.mxu0 %v8642_v20  ;;  %7855 = vmatpush1.bf16.msra.mxu0 %v7854_v4  ;;  %v6732_v4 = vld [vmem:[%s12361_s1 + $0x120] sm:$0xff] }
  0xc3   : > { %7858 = vmatprep.subr.msk.bf16.mxu0 %vm8834_vm3, %v7856_v3  ;;  %2025 = vperm.xlu0 %8496, %v1977_v41   ;;  %v8495_v3 = vunpack.i.h.bf16 %v8493_v54  ;;  %v480_v41 = vld [vmem:[%s12361_s1 + $0x60] sm:$0xff] }
  0xc5   : > { %6760 = vmatmul.mubr.msk.f32.gmra.mrb[4].mxu0 %vm582_vm4, %v6728_v8  ;;  %1790 = vperm.xlu1 %8497, %v1738_v45   ;;  %v8490_v8 = vunpack.i.h.bf16 %v8488_v55  ;;  %v1993_v45 = vld [vmem:[%s12364_s4 + $0xa0] sm:$0xff] }
  0xc6   : > { %760 = vmatprep.mubr.f32.mxu0 %v8642_v20  ;;  %7861 = vmatpush1.bf16.msk.msra.mxu0 %vm8834_vm3, %v7859_v6  ;;  %v8494_v6 = vunpack.i.l.bf16 %v8493_v54  ;;  %v484_v54 = vld [vmem:[%s12361_s1 + $0x80] sm:$0xff] }
  0xc7   : > { %7863 = vmatprep.subr.bf16.mxu0 %v7862_v5  ;;  %2030 = vperm.xlu0 %8496, %v1978_v46   ;;  %v8489_v5 = vunpack.i.l.bf16 %v8488_v55  ;;  %v1753_v46 = vld [vmem:[%s12363_s3 + $0xa0] sm:$0xff]  ;;  %v1996_v55 = vld [vmem:[%s12364_s4 + $0xb8] sm:$0xff] }
  0xc9   : > { %6761 = vmatmul.mubr.msk.f32.gmra.mrb[6].mxu0 %vm582_vm4, %v6729_v7  ;;  %1795 = vperm.xlu1 %8497, %v1739_v53   ;;  %v1980_v7 = vld [vmem:[%s12364_s4 + $0x38] sm:$0xff]  ;;  %v1995_v53 = vld [vmem:[%s12364_s4 + $0xb0] sm:$0xff] }
  0xca   : > { %766 = vmatprep.mubr.f32.mxu0 %v8642_v20 }
  0xcb   : > { %2035 = vperm.xlu0 %8496, %v1979_v56   ;;  %v1756_v56 = vld [vmem:[%s12363_s3 + $0xb8] sm:$0xff] }
  0xcd   : > { %6762 = vmatmul.mubr.msk.f32.gmra.mrb[8].mxu0 %vm582_vm4, %v6730_v0  ;;  %1800 = vperm.xlu1 %8497, %v1740_v1   ;;  %v469_v0 = vld [vmem:[%s12361_s1 + $0x8] sm:$0xff] }
  0xce   : > { %772 = vmatprep.mubr.f32.mxu0 %v8642_v20  ;;  %v1758_v1 = vld [vmem:[%s12363_s3 + $0xc8] sm:$0xff] }
  0xcf   : > { %2040 = vperm.xlu0 %8496, %v1980_v7   ;;  %v488_v7 = vld [vmem:[%s12361_s1 + $0xa0] sm:$0xff] }
  0xd1   : > { %6763 = vmatmul.mubr.msk.f32.gmra.mrb[10].mxu0 %vm582_vm4, %v6731_v2  ;;  %v7868_v2 = vpack.c.bf16 %v1321_v58, %v1320_v59  ;;  %v1997_v58 = vld [vmem:[%s12364_s4 + $0xc0] sm:$0xff] }
  0xd2   : > { %778 = vmatprep.mubr.f32.mxu0 %v8642_v20  ;;  %v1757_v59 = vld [vmem:[%s12363_s3 + $0xc0] sm:$0xff] }
  0xd3   : > { %2045 = vperm.xlu0 %8496, %v1981_v61   ;;  %v495_v61 = vld [vmem:[%s12361_s1 + $0xd8] sm:$0xff] }
  0xd5   : > { %6764 = vmatmul.mubr.msk.f32.gmra.mrb[12].mxu0 %vm582_vm4, %v6732_v4  ;;  %v1741_v4 = vld [vmem:[%s12363_s3 + $0x40] sm:$0xff] }
  0xd6   : > { %784 = vmatprep.mubr.f32.mxu0 %v8642_v20  ;;  %1805 = vperm.xlu1 %8497, %v1741_v4   ;;  %v491_v4 = vld [vmem:[%s12361_s1 + $0xb8] sm:$0xff] }
  0xd9   : > { %6765 = vmatmul.mubr.msk.f32.gmra.mrb[14].mxu0 %vm582_vm4, %v6733_v9  ;;  %v1323_v9 = vsel %vm1317_vm5, %v8494_v6, %v8495_v3  ;;  %v487_v6 = vld [vmem:[%s12361_s1 + $0x98] sm:$0xff] }
  0xda   : > { %790 = vmatprep.mubr.f32.mxu0 %v8642_v20 }
  0xdd   : > { %6766 = vmatmul.mubr.msk.f32.gmra.mrb[16].mxu0 %vm582_vm4, %v6734_v10  ;;  %v7870_v10 = vpack.c.bf16 %v8495_v3, %v8490_v8  ;;  %v1998_v3 = vld [vmem:[%s12364_s4 + $0xc8] sm:$0xff] }
  0xde   : > { %796 = vmatprep.mubr.f32.mxu0 %v8642_v20 }
  0xe1   : > { %6767 = vmatmul.mubr.msk.f32.gmra.mrb[18].mxu0 %vm582_vm4, %v6735_v11  ;;  %v1322_v11 = vsel %vm1317_vm5, %v8489_v5, %v8490_v8  ;;  %v1759_v8 = vld [vmem:[%s12363_s3 + $0xd0] sm:$0xff] }
  0xe2   : > { %802 = vmatprep.mubr.f32.mxu0 %v8642_v20  ;;  %v1999_v5 = vld [vmem:[%s12364_s4 + $0xd0] sm:$0xff] }
  0xe5   : > { %6768 = vmatmul.mubr.msk.f32.gmra.mrb[20].mxu0 %vm582_vm4, %v6736_v12  ;;  %v1742_v12 = vld [vmem:[%s12363_s3 + $0x48] sm:$0xff] }
  0xe6   : > { %808 = vmatprep.mubr.f32.mxu0 %v8642_v20  ;;  %1810 = vperm.xlu1 %8497, %v1742_v12   ;;  %v6820_v12 = vld [vmem:[%s12361_s1 + $0x1e0] sm:$0xff] }
  0xe9   : > { %6769 = vmatmul.mubr.msk.f32.gmra.mrb[22].mxu0 %vm582_vm4, %v6737_v13  ;;  %v1982_v13 = vld [vmem:[%s12364_s4 + $0x48] sm:$0xff] }
  0xea   : > { %814 = vmatprep.mubr.f32.mxu0 %v8642_v20  ;;  %2050 = vperm.xlu0 %8496, %v1982_v13   ;;  %v6821_v13 = vld [vmem:[%s12361_s1 + $0x1e8] sm:$0xff] }
  0xed   : > { %6770 = vmatmul.mubr.msk.f32.gmra.mrb[24].mxu0 %vm582_vm4, %v6738_v14  ;;  %v471_v14 = vld [vmem:[%s12361_s1 + $0x18] sm:$0xff] }
  0xee   : > { %820 = vmatprep.mubr.f32.mxu0 %v8642_v20 }
  0xf1   : > { %6771 = vmatmul.mubr.msk.f32.gmra.mrb[26].mxu0 %vm582_vm4, %v6739_v15  ;;  %v1743_v15 = vld [vmem:[%s12363_s3 + $0x50] sm:$0xff] }
  0xf2   : > { %826 = vmatprep.mubr.f32.mxu0 %v8642_v20  ;;  %1815 = vperm.xlu1 %8497, %v1743_v15   ;;  %v6823_v15 = vld [vmem:[%s12361_s1 + $0x1f8] sm:$0xff] }
  0xf5   : > { %6772 = vmatmul.mubr.msk.f32.gmra.mrb[28].mxu0 %vm582_vm4, %v6740_v16  ;;  %v1983_v16 = vld [vmem:[%s12364_s4 + $0x50] sm:$0xff] }
  0xf6   : > { %832 = vmatprep.mubr.f32.mxu0 %v8642_v20  ;;  %2055 = vperm.xlu0 %8496, %v1983_v16   ;;  %v6824_v16 = vld [vmem:[%s12361_s1 + $0x200] sm:$0xff] }
  0xf7   : > { %1820 = vperm.xlu1 %8497, %v1744_v52   ;;  %v6826_v52 = vld [vmem:[%s12361_s1 + $0x210] sm:$0xff] }
  0xf9   : > { %6773 = vmatmul.mubr.msk.f32.gmra.mrb[30].mxu0 %vm582_vm4, %v6741_v17  ;;  %v472_v17 = vld [vmem:[%s12361_s1 + $0x20] sm:$0xff] }
  0xfa   : > { %838 = vmatprep.mubr.f32.mxu0 %v8642_v20 }
  0xfd   : > { %6774 = vmatmul.mubr.msk.f32.gmra.mrb[32].mxu0 %vm582_vm4, %v6742_v18  ;;  %v1984_v18 = vld [vmem:[%s12364_s4 + $0x58] sm:$0xff] }
  0xfe   : > { %844 = vmatprep.mubr.f32.mxu0 %v8642_v20  ;;  %2060 = vperm.xlu0 %8496, %v1984_v18   ;;  %v6827_v18 = vld [vmem:[%s12361_s1 + $0x218] sm:$0xff] }
 0x101   : > { %6775 = vmatmul.mubr.msk.f32.gmra.mrb[34].mxu0 %vm582_vm4, %v6743_v19  ;;  %v473_v19 = vld [vmem:[%s12361_s1 + $0x28] sm:$0xff] }
 0x102   : > { %850 = vmatprep.mubr.f32.mxu0 %v8642_v20 }
 0x105   : > { %6776 = vmatmul.mubr.msk.f32.gmra.mrb[36].mxu0 %vm582_vm4, %v6744_v21  ;;  %v1745_v21 = vld [vmem:[%s12363_s3 + $0x60] sm:$0xff] }
 0x106   : > { %856 = vmatprep.mubr.f32.mxu0 %v8642_v20  ;;  %1825 = vperm.xlu1 %8497, %v1745_v21   ;;  %v6829_v21 = vld [vmem:[%s12361_s1 + $0x228] sm:$0xff] }
 0x109   : > { %6777 = vmatmul.mubr.msk.f32.gmra.mrb[38].mxu0 %vm582_vm4, %v6745_v22  ;;  %v1985_v22 = vld [vmem:[%s12364_s4 + $0x60] sm:$0xff] }
 0x10a   : > { %862 = vmatprep.mubr.f32.mxu0 %v8642_v20  ;;  %2065 = vperm.xlu0 %8496, %v1985_v22   ;;  %v6830_v22 = vld [vmem:[%s12361_s1 + $0x230] sm:$0xff] }
 0x10d   : > { %6778 = vmatmul.mubr.msk.f32.gmra.mrb[40].mxu0 %vm582_vm4, %v6746_v23  ;;  %v474_v23 = vld [vmem:[%s12361_s1 + $0x30] sm:$0xff] }
 0x10e   : > { %868 = vmatprep.mubr.f32.mxu0 %v8642_v20 }
 0x111   : > { %6779 = vmatmul.mubr.msk.f32.gmra.mrb[42].mxu0 %vm582_vm4, %v6747_v24  ;;  %v1746_v24 = vld [vmem:[%s12363_s3 + $0x68] sm:$0xff] }
 0x112   : > { %874 = vmatprep.mubr.f32.mxu0 %v8642_v20  ;;  %1830 = vperm.xlu1 %8497, %v1746_v24   ;;  %v6832_v24 = vld [vmem:[%s12361_s1 + $0x240] sm:$0xff] }
 0x115   : > { %6780 = vmatmul.mubr.msk.f32.gmra.mrb[44].mxu0 %vm582_vm4, %v6748_v25  ;;  %v1986_v25 = vld [vmem:[%s12364_s4 + $0x68] sm:$0xff] }
 0x116   : > { %880 = vmatprep.mubr.f32.mxu0 %v8642_v20  ;;  %2070 = vperm.xlu0 %8496, %v1986_v25   ;;  %v6833_v25 = vld [vmem:[%s12361_s1 + $0x248] sm:$0xff] }
 0x117   : > { %1835 = vperm.xlu1 %8497, %v1747_v27   ;;  %v6835_v27 = vld [vmem:[%s12361_s1 + $0x258] sm:$0xff] }
 0x119   : > { %6781 = vmatmul.mubr.msk.f32.gmra.mrb[46].mxu0 %vm582_vm4, %v6749_v26  ;;  %v475_v26 = vld [vmem:[%s12361_s1 + $0x38] sm:$0xff] }
 0x11a   : > { %886 = vmatprep.mubr.f32.mxu0 %v8642_v20  ;;  %2075 = vperm.xlu0 %8496, %v1987_v28   ;;  %v6836_v28 = vld [vmem:[%s12361_s1 + $0x260] sm:$0xff] }
 0x11d   : > { %6782 = vmatmul.mubr.msk.f32.gmra.mrb[48].mxu0 %vm582_vm4, %v6750_v30  ;;  %v1748_v30 = vld [vmem:[%s12363_s3 + $0x78] sm:$0xff] }
 0x11e   : > { %892 = vmatprep.mubr.f32.mxu0 %v8642_v20  ;;  %1840 = vperm.xlu1 %8497, %v1748_v30   ;;  %v6838_v30 = vld [vmem:[%s12361_s1 + $0x270] sm:$0xff] }
 0x11f   : > { %2080 = vperm.xlu0 %8496, %v1988_v31   ;;  %v6839_v31 = vld [vmem:[%s12361_s1 + $0x278] sm:$0xff] }
 0x121   : > { %6783 = vmatmul.mubr.msk.f32.gmra.mrb[50].mxu0 %vm582_vm4, %v6751_v33  ;;  %v1749_v33 = vld [vmem:[%s12363_s3 + $0x80] sm:$0xff] }
 0x122   : > { %898 = vmatprep.mubr.f32.mxu0 %v8642_v20  ;;  %1845 = vperm.xlu1 %8497, %v1749_v33   ;;  %v6841_v33 = vld [vmem:[%s12361_s1 + $0x288] sm:$0xff] }
 0x123   : > { %2085 = vperm.xlu0 %8496, %v1989_v34   ;;  %v6842_v34 = vld [vmem:[%s12361_s1 + $0x290] sm:$0xff] }
 0x125   : > { %6784 = vmatmul.mubr.msk.f32.gmra.mrb[52].mxu0 %vm582_vm4, %v6752_v36  ;;  %v1750_v36 = vld [vmem:[%s12363_s3 + $0x88] sm:$0xff] }
 0x126   : > { %904 = vmatprep.mubr.f32.mxu0 %v8642_v20  ;;  %1850 = vperm.xlu1 %8497, %v1750_v36   ;;  %v6844_v36 = vld [vmem:[%s12361_s1 + $0x2a0] sm:$0xff] }
 0x127   : > { %2090 = vperm.xlu0 %8496, %v1990_v37   ;;  %v6845_v37 = vld [vmem:[%s12361_s1 + $0x2a8] sm:$0xff] }
 0x129   : > { %6785 = vmatmul.mubr.msk.f32.gmra.mrb[54].mxu0 %vm582_vm4, %v6753_v39  ;;  %v1751_v39 = vld [vmem:[%s12363_s3 + $0x90] sm:$0xff] }
 0x12a   : > { %910 = vmatprep.mubr.f32.mxu0 %v8642_v20  ;;  %1855 = vperm.xlu1 %8497, %v1751_v39   ;;  %v6847_v39 = vld [vmem:[%s12361_s1 + $0x2b8] sm:$0xff] }
 0x12b   : > { %2095 = vperm.xlu0 %8496, %v1991_v40   ;;  %v6848_v40 = vld [vmem:[%s12361_s1 + $0x2c0] sm:$0xff] }
 0x12d   : > { %6786 = vmatmul.mubr.msk.f32.gmra.mrb[56].mxu0 %vm582_vm4, %v6754_v42  ;;  %v1992_v42 = vld [vmem:[%s12364_s4 + $0x98] sm:$0xff] }
 0x12e   : > { %916 = vmatprep.mubr.f32.mxu0 %v8642_v20  ;;  %2100 = vperm.xlu1 %8497, %v1992_v42  }
 0x12f   : > { %1860 = vperm.xlu0 %8496, %v1752_v43  }
 0x130   : > { %v9486_v42 = vpop.permute.xlu1 %2005 }
 0x131   : > { %6787 = vmatmul.mubr.msk.f32.gmra.mrb[58].mxu0 %vm582_vm4, %v6755_v47  ;;  %v482_v47 = vld [vmem:[%s12361_s1 + $0x70] sm:$0xff]  ;;  %v9488_v43 = vpop.permute.xlu0 %1765 }
 0x132   : > { %1081 = vmatprep.mubr.f32.mxu0 %v8642_v20  ;;  %2105 = vperm.xlu1 %8497, %v1993_v45  }
 0x133   : > { %1865 = vperm.xlu0 %8496, %v1753_v46  }
 0x135   : > { %6790 = vmatmul.mubr.msk.f32.vlgmr.msra.gmra.mrb[0].mxu0 %vm582_vm4, %v468_v57  ;;  %v485_v57 = vld [vmem:[%s12361_s1 + $0x88] sm:$0xff]  ;;  %v9492_v45 = vpop.permute.xlu0 %2010 }
 0x136   : > { %1087 = vmatprep.mubr.f32.mxu0 %v8642_v20  ;;  %7865 = vmatpush1.bf16.msra.mxu0 %v7864_v63  ;;  %v7873_v63 = vpack.c.bf16 %v1323_v9, %v1322_v11  ;;  %v492_v9 = vld [vmem:[%s12361_s1 + $0xc0] sm:$0xff]  ;;  %v494_v11 = vld [vmem:[%s12361_s1 + $0xd0] sm:$0xff] }
 0x137   : > { %7867 = vmatprep.subr.bf16.mxu0 %v7866_v60  ;;  %1870 = vperm.xlu1 %8497, %v1754_v48   ;;  %v486_v60 = vld [vmem:[%s12361_s1 + $0x90] sm:$0xff]  ;;  %v2603_v48 = vld [vmem:[#allocation2] sm:$0xff] }
 0x138   : > { %2110 = vperm.xlu0 %8496, %v1994_v49   ;;  %v2604_v49 = vld [vmem:[#allocation2 + $0x8] sm:$0xff] }
 0x139   : > { %6791 = vmatmul.mubr.msk.f32.gmra.mrb[2].mxu0 %vm582_vm4, %v469_v0  ;;  %v489_v0 = vld [vmem:[%s12361_s1 + $0xa8] sm:$0xff] }
 0x13a   : > { %1093 = vmatprep.mubr.f32.mxu0 %v8642_v20  ;;  %7869 = vmatpush1.bf16.msra.mxu0 %v7868_v2  ;;  %v490_v2 = vld [vmem:[%s12361_s1 + $0xb0] sm:$0xff] }
 0x13b   : > { %7872 = vmatprep.subr.msk.bf16.mxu0 %vm8834_vm3, %v7870_v10  ;;  %1875 = vperm.xlu1 %8497, %v1755_v51   ;;  %v493_v10 = vld [vmem:[%s12361_s1 + $0xc8] sm:$0xff]  ;;  %v12376_v51 = vmov 0.0|0.0  }
 0x13c   : > { %2115 = vperm.xlu0 %8496, %v1995_v53   ;;  %7876 = vmatprep.subr.bf16.mxu1 %v12376_v51 }
 0x13d   : > { %6792 = vmatmul.mubr.msk.f32.gmra.mrb[4].mxu0 %vm582_vm4, %v470_v62  ;;  %v496_v62 = vld [vmem:[%s12361_s1 + $0xe0] sm:$0xff] }
 0x13e   : > { %1099 = vmatprep.mubr.f32.mxu0 %v8642_v20  ;;  %7875 = vmatpush1.bf16.msk.msra.mxu0 %vm8834_vm3, %v7873_v63  ;;  %v497_v63 = vld [vmem:[%s12361_s1 + $0xe8] sm:$0xff] }
 0x13f   : > { %2120 = vperm.xlu1 %8497, %v1996_v55   ;;  %v2606_v55 = vld [vmem:[#allocation2 + $0x18] sm:$0xff] }
 0x140   : > { %1880 = vperm.xlu0 %8496, %v1756_v56  }
 0x141   : > { %6793 = vmatmul.mubr.msk.f32.gmra.mrb[6].mxu0 %vm582_vm4, %v471_v14  ;;  %v6822_v14 = vld [vmem:[%s12361_s1 + $0x1f0] sm:$0xff] }
 0x142   : > { %1105 = vmatprep.mubr.f32.mxu0 %v8642_v20 }
 0x143   : > { %2125 = vperm.xlu1 %8497, %v1997_v58   ;;  %v2607_v58 = vld [vmem:[#allocation2 + $0x20] sm:$0xff] }
 0x144   : > { %1885 = vperm.xlu0 %8496, %v1757_v59   ;;  %v2608_v59 = vld [vmem:[#allocation2 + $0x28] sm:$0xff] }
 0x145   : > { %6794 = vmatmul.mubr.msk.f32.gmra.mrb[8].mxu0 %vm582_vm4, %v472_v17  ;;  %v6825_v17 = vld [vmem:[%s12361_s1 + $0x208] sm:$0xff] }
 0x146   : > { %1111 = vmatprep.mubr.f32.mxu0 %v8642_v20 }
 0x147   : > { %1890 = vperm.xlu1 %8497, %v1758_v1   ;;  %v7883_v1 = vpack.c.bf16 %v2608_v59, %v2607_v58 }
 0x148   : > { %2130 = vperm.xlu0 %8496, %v1998_v3  }
 0x149   : > { %6795 = vmatmul.mubr.msk.f32.gmra.mrb[10].mxu0 %vm582_vm4, %v473_v19  ;;  %v6828_v19 = vld [vmem:[%s12361_s1 + $0x220] sm:$0xff] }
 0x14a   : > { %1117 = vmatprep.mubr.f32.mxu0 %v8642_v20 }
 0x14b   : > { %1895 = vperm.xlu1 %8497, %v1759_v8   ;;  %v2610_v8 = vld [vmem:[#allocation2 + $0x38] sm:$0xff] }
 0x14c   : > { %2135 = vperm.xlu0 %8496, %v1999_v5  }
 0x14d   : > { %6796 = vmatmul.mubr.msk.f32.gmra.mrb[12].mxu0 %vm582_vm4, %v474_v23  ;;  %v6831_v23 = vld [vmem:[%s12361_s1 + $0x238] sm:$0xff] }
 0x14e   : > { %1123 = vmatprep.mubr.f32.mxu0 %v8642_v20 }
 0x151   : > { %6797 = vmatmul.mubr.msk.f32.gmra.mrb[14].mxu0 %vm582_vm4, %v475_v26  ;;  %v6834_v26 = vld [vmem:[%s12361_s1 + $0x250] sm:$0xff] }
 0x152   : > { %1129 = vmatprep.mubr.f32.mxu0 %v8642_v20 }
 0x155   : > { %6798 = vmatmul.mubr.msk.f32.gmra.mrb[16].mxu0 %vm582_vm4, %v476_v29  ;;  %v6837_v29 = vld [vmem:[%s12361_s1 + $0x268] sm:$0xff] }
 0x156   : > { %1135 = vmatprep.mubr.f32.mxu0 %v8642_v20 }
 0x159   : > { %6799 = vmatmul.mubr.msk.f32.gmra.mrb[18].mxu0 %vm582_vm4, %v477_v32  ;;  %v6840_v32 = vld [vmem:[%s12361_s1 + $0x280] sm:$0xff] }
 0x15a   : > { %1141 = vmatprep.mubr.f32.mxu0 %v8642_v20 }
 0x15d   : > { %6800 = vmatmul.mubr.msk.f32.gmra.mrb[20].mxu0 %vm582_vm4, %v478_v35  ;;  %v6843_v35 = vld [vmem:[%s12361_s1 + $0x298] sm:$0xff] }
 0x15e   : > { %1147 = vmatprep.mubr.f32.mxu0 %v8642_v20 }
 0x161   : > { %6801 = vmatmul.mubr.msk.f32.gmra.mrb[22].mxu0 %vm582_vm4, %v479_v38  ;;  %v6846_v38 = vld [vmem:[%s12361_s1 + $0x2b0] sm:$0xff] }
 0x162   : > { %1153 = vmatprep.mubr.f32.mxu0 %v8642_v20 }
 0x165   : > { %6802 = vmatmul.mubr.msk.f32.gmra.mrb[24].mxu0 %vm582_vm4, %v480_v41  ;;  %v6849_v41 = vld [vmem:[%s12361_s1 + $0x2c8] sm:$0xff] }
 0x166   : > { %1159 = vmatprep.mubr.f32.mxu0 %v8642_v20 }
 0x169   : > { %6803 = vmatmul.mubr.msk.f32.gmra.mrb[26].mxu0 %vm582_vm4, %v481_v44  ;;  %v9490_v44 = vpop.permute.xlu1 %1770 }
 0x16a   : > { %1165 = vmatprep.mubr.f32.mxu0 %v8642_v20 }
 0x16d   : > { %6804 = vmatmul.mubr.msk.f32.gmra.mrb[28].mxu0 %vm582_vm4, %v482_v47  ;;  %v9494_v46 = vpop.permute.xlu1 %1775  ;;  %v9496_v47 = vpop.permute.xlu0 %2015 }
 0x16e   : > { %1171 = vmatprep.mubr.f32.mxu0 %v8642_v20 }
 0x171   : > { %6805 = vmatmul.mubr.msk.f32.gmra.mrb[30].mxu0 %vm582_vm4, %v483_v50  ;;  %v7877_v50 = vpack.c.bf16 %v2604_v49, %v2603_v48  ;;  %v9499_v53 = vpop.permute.xlu1 %1780  ;;  %v1760_v48 = vld [vmem:[%s12363_s3 + $0xd8] sm:$0xff] }
 0x172   : > { %1177 = vmatprep.mubr.f32.mxu0 %v8642_v20 }
 0x173   : > { %7878 = vmatpush1.bf16.msra.mxu1 %v7877_v50 }
 0x174   : > { %7879 = vmatprep.subr.bf16.mxu1 %v12376_v51 }
 0x175   : > { %6806 = vmatmul.mubr.msk.f32.gmra.mrb[32].mxu0 %vm582_vm4, %v484_v54  ;;  %v2605_v54 = vld [vmem:[#allocation2 + $0x10] sm:$0xff] }
 0x176   : > { %1183 = vmatprep.mubr.f32.mxu0 %v8642_v20  ;;  %v7880_v56 = vpack.c.bf16 %v2606_v55, %v2605_v54 }
 0x178   : > { %7881 = vmatpush1.bf16.msra.mxu1 %v7880_v56 }
 0x179   : > { %6807 = vmatmul.mubr.msk.f32.gmra.mrb[34].mxu0 %vm582_vm4, %v485_v57  ;;  %v9502_v57 = vpop.permute.xlu0 %2020  ;;  %7882 = vmatprep.subr.bf16.mxu1 %v12376_v51 }
 0x17a   : > { %1189 = vmatprep.mubr.f32.mxu0 %v8642_v20 }
 0x17c   : > { %7884 = vmatpush1.bf16.msra.mxu1 %v7883_v1 }
 0x17d   : > { %6808 = vmatmul.mubr.msk.f32.gmra.mrb[36].mxu0 %vm582_vm4, %v486_v60  ;;  %v9505_v60 = vpop.permute.xlu1 %1785  ;;  %v9507_v3 = vpop.permute.xlu0 %2025  ;;  %7885 = vmatprep.subr.bf16.mxu1 %v12376_v51 }
 0x17e   : > { %1195 = vmatprep.mubr.f32.mxu0 %v8642_v20 }
 0x181   : > { %6809 = vmatmul.mubr.msk.f32.gmra.mrb[38].mxu0 %vm582_vm4, %v487_v6  ;;  %v2609_v6 = vld [vmem:[#allocation2 + $0x30] sm:$0xff] }
 0x182   : > { %1201 = vmatprep.mubr.f32.mxu0 %v8642_v20  ;;  %v7886_v5 = vpack.c.bf16 %v2610_v8, %v2609_v6 }
 0x184   : > { %7887 = vmatpush1.bf16.msra.mxu1 %v7886_v5 }
 0x185   : > { %6810 = vmatmul.mubr.msk.f32.gmra.mrb[40].mxu0 %vm582_vm4, %v488_v7  ;;  %v9510_v7 = vpop.permute.xlu1 %1790  ;;  %7888 = vmatprep.subr.bf16.mxu1 %v12376_v51 }
 0x186   : > { %1207 = vmatprep.mubr.f32.mxu0 %v8642_v20 }
 0x189   : > { %6811 = vmatmul.mubr.msk.f32.gmra.mrb[42].mxu0 %vm582_vm4, %v489_v0  ;;  %v2611_v0 = vld [vmem:[#allocation2 + $0x40] sm:$0xff] }
 0x18a   : > { %1213 = vmatprep.mubr.f32.mxu0 %v8642_v20 }
 0x18d   : > { %6812 = vmatmul.mubr.msk.f32.gmra.mrb[44].mxu0 %vm582_vm4, %v490_v2  ;;  %v2612_v2 = vld [vmem:[#allocation2 + $0x48] sm:$0xff] }
 0x18e   : > { %1219 = vmatprep.mubr.f32.mxu0 %v8642_v20 }
 0x191   : > { %6813 = vmatmul.mubr.msk.f32.gmra.mrb[46].mxu0 %vm582_vm4, %v491_v4  ;;  %v7889_v4 = vpack.c.bf16 %v2612_v2, %v2611_v0 }
 0x192   : > { %1225 = vmatprep.mubr.f32.mxu0 %v8642_v20 }
 0x193   : > { %7890 = vmatpush1.bf16.msra.mxu1 %v7889_v4 }
 0x194   : > { %7891 = vmatprep.subr.bf16.mxu1 %v12376_v51 }
 0x195   : > { %6814 = vmatmul.mubr.msk.f32.gmra.mrb[48].mxu0 %vm582_vm4, %v492_v9  ;;  %v9513_v9 = vpop.permute.xlu0 %2030 }
 0x196   : > { %1231 = vmatprep.mubr.f32.mxu0 %v8642_v20 }
 0x199   : > { %6815 = vmatmul.mubr.msk.f32.gmra.mrb[50].mxu0 %vm582_vm4, %v493_v10  ;;  %v2613_v10 = vld [vmem:[#allocation2 + $0x50] sm:$0xff] }
 0x19a   : > { %1237 = vmatprep.mubr.f32.mxu0 %v8642_v20 }
 0x19d   : > { %6816 = vmatmul.mubr.msk.f32.gmra.mrb[52].mxu0 %vm582_vm4, %v494_v11  ;;  %v2614_v11 = vld [vmem:[#allocation2 + $0x58] sm:$0xff] }
 0x19e   : > { %1243 = vmatprep.mubr.f32.mxu0 %v8642_v20 }
 0x1a1   : > { %6817 = vmatmul.mubr.msk.f32.gmra.mrb[54].mxu0 %vm582_vm4, %v495_v61  ;;  %v9516_v61 = vpop.permute.xlu1 %1795 }
 0x1a2   : > { %1249 = vmatprep.mubr.f32.mxu0 %v8642_v20 }
 0x1a5   : > { %6818 = vmatmul.mubr.msk.f32.gmra.mrb[56].mxu0 %vm582_vm4, %v496_v62  ;;  %v7892_v62 = vpack.c.bf16 %v2614_v11, %v2613_v10 }
 0x1a6   : > { %1255 = vmatprep.mubr.f32.mxu0 %v8642_v20 }
 0x1a7   : > { %7893 = vmatpush1.bf16.msra.mxu1 %v7892_v62 }
 0x1a8   : > { %7894 = vmatprep.subr.bf16.mxu1 %v12376_v51 }
 0x1a9   : > { %6819 = vmatmul.mubr.msk.f32.gmra.mrb[58].mxu0 %vm582_vm4, %v497_v63  ;;  %v9518_v63 = vpop.permute.xlu0 %2035 }
 0x1aa   : > { %1492 = vmatprep.mubr.f32.mxu0 %v8642_v20 }
 0x1ad   : > { %6852 = vmatmul.mubr.msk.f32.vlgmr.msra.gmra.mrb[0].mxu0 %vm582_vm4, %v6820_v12  ;;  %v2615_v12 = vld [vmem:[#allocation2 + $0x60] sm:$0xff] }
 0x1ae   : > { %1498 = vmatprep.mubr.f32.mxu0 %v8642_v20 }
 0x1b1   : > { %6853 = vmatmul.mubr.msk.f32.gmra.mrb[2].mxu0 %vm582_vm4, %v6821_v13  ;;  %v2616_v13 = vld [vmem:[#allocation2 + $0x68] sm:$0xff] }
 0x1b2   : > { %1504 = vmatprep.mubr.f32.mxu0 %v8642_v20 }
 0x1b5   : > { %6854 = vmatmul.mubr.msk.f32.gmra.mrb[4].mxu0 %vm582_vm4, %v6822_v14  ;;  %v7895_v14 = vpack.c.bf16 %v2616_v13, %v2615_v12 }
 0x1b6   : > { %1510 = vmatprep.mubr.f32.mxu0 %v8642_v20 }
 0x1b7   : > { %7896 = vmatpush1.bf16.msra.mxu1 %v7895_v14 }
 0x1b8   : > { %7897 = vmatprep.subr.bf16.mxu1 %v12376_v51 }
 0x1b9   : > { %6855 = vmatmul.mubr.msk.f32.gmra.mrb[6].mxu0 %vm582_vm4, %v6823_v15  ;;  %v9521_v15 = vpop.permute.xlu1 %1800 }
 0x1ba   : > { %1516 = vmatprep.mubr.f32.mxu0 %v8642_v20 }
 0x1bd   : > { %6856 = vmatmul.mubr.msk.f32.gmra.mrb[8].mxu0 %vm582_vm4, %v6824_v16  ;;  %v2617_v16 = vld [vmem:[#allocation2 + $0x70] sm:$0xff] }
 0x1be   : > { %1522 = vmatprep.mubr.f32.mxu0 %v8642_v20 }
 0x1c1   : > { %6857 = vmatmul.mubr.msk.f32.gmra.mrb[10].mxu0 %vm582_vm4, %v6825_v17  ;;  %v2618_v17 = vld [vmem:[#allocation2 + $0x78] sm:$0xff] }
 0x1c2   : > { %1528 = vmatprep.mubr.f32.mxu0 %v8642_v20 }
 0x1c5   : > { %6858 = vmatmul.mubr.msk.f32.gmra.mrb[12].mxu0 %vm582_vm4, %v6826_v52  ;;  %v7898_v52 = vpack.c.bf16 %v2618_v17, %v2617_v16 }
 0x1c6   : > { %1534 = vmatprep.mubr.f32.mxu0 %v8642_v20 }
 0x1c7   : > { %7899 = vmatpush1.bf16.msra.mxu1 %v7898_v52 }
 0x1c8   : > { %7900 = vmatprep.subr.bf16.mxu1 %v12376_v51 }
 0x1c9   : > { %6859 = vmatmul.mubr.msk.f32.gmra.mrb[14].mxu0 %vm582_vm4, %v6827_v18  ;;  %v9524_v18 = vpop.permute.xlu0 %2040 }
 0x1ca   : > { %1540 = vmatprep.mubr.f32.mxu0 %v8642_v20 }
 0x1cd   : > { %6860 = vmatmul.mubr.msk.f32.gmra.mrb[16].mxu0 %vm582_vm4, %v6828_v19  ;;  %v2619_v19 = vld [vmem:[#allocation2 + $0x80] sm:$0xff] }
 0x1ce   : > { %1546 = vmatprep.mubr.f32.mxu0 %v8642_v20 }
 0x1d1   : > { %6861 = vmatmul.mubr.msk.f32.gmra.mrb[18].mxu0 %vm582_vm4, %v6829_v21  ;;  %v2620_v21 = vld [vmem:[#allocation2 + $0x88] sm:$0xff] }
 0x1d2   : > { %1552 = vmatprep.mubr.f32.mxu0 %v8642_v20 }
 0x1d5   : > { %6862 = vmatmul.mubr.msk.f32.gmra.mrb[20].mxu0 %vm582_vm4, %v6830_v22  ;;  %v9527_v22 = vpop.permute.xlu1 %1805 }
 0x1d6   : > { %1558 = vmatprep.mubr.f32.mxu0 %v8642_v20 }
 0x1d9   : > { %6863 = vmatmul.mubr.msk.f32.gmra.mrb[22].mxu0 %vm582_vm4, %v6831_v23  ;;  %v7901_v23 = vpack.c.bf16 %v2620_v21, %v2619_v19 }
 0x1da   : > { %1564 = vmatprep.mubr.f32.mxu0 %v8642_v20 }
 0x1db   : > { %7902 = vmatpush1.bf16.msra.mxu1 %v7901_v23 }
 0x1dc   : > { %2753 = vmatprep.subr.mxu1 %v8642_v20 }
 0x1dd   : > { %6864 = vmatmul.mubr.msk.f32.gmra.mrb[24].mxu0 %vm582_vm4, %v6832_v24 }
 0x1de   : > { %1570 = vmatprep.mubr.f32.mxu0 %v8642_v20 }
 0x1e1   : > { %6865 = vmatmul.mubr.msk.f32.gmra.mrb[26].mxu0 %vm582_vm4, %v6833_v25  ;;  %v9529_v25 = vpop.permute.xlu0 %2045 }
 0x1e2   : > { %1576 = vmatprep.mubr.f32.mxu0 %v8642_v20 }
 0x1e5   : > { %6866 = vmatmul.mubr.msk.f32.gmra.mrb[28].mxu0 %vm582_vm4, %v6834_v26 }
 0x1e6   : > { %1582 = vmatprep.mubr.f32.mxu0 %v8642_v20 }
 0x1e9   : > { %6867 = vmatmul.mubr.msk.f32.gmra.mrb[30].mxu0 %vm582_vm4, %v6835_v27 }
 0x1ea   : > { %1588 = vmatprep.mubr.f32.mxu0 %v8642_v20 }
 0x1ed   : > { %6868 = vmatmul.mubr.msk.f32.gmra.mrb[32].mxu0 %vm582_vm4, %v6836_v28 }
 0x1ee   : > { %1594 = vmatprep.mubr.f32.mxu0 %v8642_v20 }
 0x1f1   : > { %6869 = vmatmul.mubr.msk.f32.gmra.mrb[34].mxu0 %vm582_vm4, %v6837_v29  ;;  %v2621_v29 = vld [vmem:[#allocation2 + $0x90] sm:$0x7] }
 0x1f2   : > { %1600 = vmatprep.mubr.f32.mxu0 %v8642_v20  ;;  %6882 = vmatpush1.msk.msra.mxu1 %vm2713_vm6, %v2621_v29 }
 0x1f3   : > { %7903 = vmatprep.subr.bf16.mxu1 %v12376_v51 }
 0x1f5   : > { %6870 = vmatmul.mubr.msk.f32.gmra.mrb[36].mxu0 %vm582_vm4, %v6838_v30  ;;  %v9534_v30 = vpop.permute.xlu1 %1810 }
 0x1f6   : > { %1606 = vmatprep.mubr.f32.mxu0 %v8642_v20 }
 0x1f9   : > { %6871 = vmatmul.mubr.msk.f32.gmra.mrb[38].mxu0 %vm582_vm4, %v6839_v31  ;;  %v9560_v49 = vpop.permute.xlu1 %1815 }
 0x1fa   : > { %1612 = vmatprep.mubr.f32.mxu0 %v8642_v20 }
 0x1fd   : > { %6872 = vmatmul.mubr.msk.f32.gmra.mrb[40].mxu0 %vm582_vm4, %v6840_v32  ;;  %v9585_v5 = vpop.permute.xlu1 %1820 }
 0x1fe   : > { %1618 = vmatprep.mubr.f32.mxu0 %v8642_v20 }
 0x201   : > { %6873 = vmatmul.mubr.msk.f32.gmra.mrb[42].mxu0 %vm582_vm4, %v6841_v33  ;;  %v9612_v52 = vpop.permute.xlu1 %1825 }
 0x202   : > { %1624 = vmatprep.mubr.f32.mxu0 %v8642_v20 }
 0x205   : > { %6874 = vmatmul.mubr.msk.f32.gmra.mrb[44].mxu0 %vm582_vm4, %v6842_v34 }
 0x206   : > { %1630 = vmatprep.mubr.f32.mxu0 %v8642_v20 }
 0x209   : > { %6875 = vmatmul.mubr.msk.f32.gmra.mrb[46].mxu0 %vm582_vm4, %v6843_v35 }
 0x20a   : > { %1636 = vmatprep.mubr.f32.mxu0 %v8642_v20 }
 0x20d   : > { %6876 = vmatmul.mubr.msk.f32.gmra.mrb[48].mxu0 %vm582_vm4, %v6844_v36  ;;  %v9545_v36 = vpop.permute.xlu0 %2050 }
 0x20e   : > { %1642 = vmatprep.mubr.f32.mxu0 %v8642_v20 }
 0x211   : > { %6877 = vmatmul.mubr.msk.f32.gmra.mrb[50].mxu0 %vm582_vm4, %v6845_v37  ;;  %v9570_v56 = vpop.permute.xlu0 %2055 }
 0x212   : > { %1648 = vmatprep.mubr.f32.mxu0 %v8642_v20 }
 0x215   : > { %6878 = vmatmul.mubr.msk.f32.gmra.mrb[52].mxu0 %vm582_vm4, %v6846_v38  ;;  %v9593_v11 = vpop.permute.xlu0 %2060 }
 0x216   : > { %1654 = vmatprep.mubr.f32.mxu0 %v8642_v20 }
 0x219   : > { %6879 = vmatmul.mubr.msk.f32.gmra.mrb[54].mxu0 %vm582_vm4, %v6847_v39 }
 0x21a   : > { %1660 = vmatprep.mubr.f32.mxu0 %v8642_v20 }
 0x21d   : > { %6880 = vmatmul.mubr.msk.f32.gmra.mrb[56].mxu0 %vm582_vm4, %v6848_v40 }
 0x21e   : > { %1666 = vmatprep.mubr.f32.mxu0 %v8642_v20 }
 0x221   : > { %6881 = vmatmul.mubr.msk.f32.gmra.mrb[58].mxu0 %vm582_vm4, %v6849_v41 }
 0x280   : > { %v1494_v24 = vpop.f32.mrb[0].mxu0 }
 0x281   : > { %v1913_v26 = vmul.f32 %v9488_v43, %v1494_v24  ;;  %v1496_v27 = vpop.f32.mrb[1].mxu0 }
 0x282   : > { %v1914_v28 = vmul.f32 %v9488_v43, %v1496_v27  ;;  %v9625_v27 = vpop.permute.xlu0 %2065 }
 0x283   : > { %v9540_v33 = vadd.f32 %v9486_v42, %v1913_v26 }
 0x284   : > { %v9537_v31 = vadd.f32 %v9486_v42, %v1914_v28  ;;  %v1500_v32 = vpop.f32.mrb[2].mxu0 }
 0x285   : > { %v1915_v34 = vmul.f32 %v9490_v44, %v1500_v32  ;;  %v1502_v35 = vpop.f32.mrb[3].mxu0  ;;  %v12418_v40 = vmax.f32 %v9540_v33, 0.0 }
 0x286   : > { %v12421_v20 = vmax.f32 %v9537_v31, 0.0  ;;  %v1916_v38 = vmul.f32 %v9490_v44, %v1502_v35 }
 0x287   : > { %v9548_v37 = vadd.f32 %v9492_v45, %v1915_v34 }
 0x288   : > { %2335 = vrot.lane.b32.xlu0 %v12421_v20, %s8641_s29  ;;  %v1506_v39 = vpop.f32.mrb[4].mxu0  ;;  %v9563_v44 = vadd.f32 %v9492_v45, %v1916_v38 }
 0x289   : > { %v12414_v41 = vmax.f32 %v9548_v37, 0.0  ;;  %v1917_v42 = vmul.f32 %v9494_v46, %v1506_v39  ;;  %v1508_v43 = vpop.f32.mrb[5].mxu0  ;;  %v9642_v39 = vpop.permute.xlu1 %1830 }
 0x28a   : > { %v1918_v50 = vmul.f32 %v9494_v46, %v1508_v43  ;;  %v12415_v1 = vmax.f32 %v9563_v44, 0.0 }
 0x28b   : > { %v8498_v54 = vpack.i.bf16 %v12414_v41, %v12418_v40  ;;  %v9573_v58 = vadd.f32 %v9496_v47, %v1917_v42 }
 0x28c   : > { %1900 = vperm.xlu0 %8496, %v1760_v48   ;;  %v1512_v55 = vpop.f32.mrb[6].mxu0  ;;  %v9579_v46 = vadd.f32 %v9496_v47, %v1918_v50  ;;  %v9655_v50 = vpop.permute.xlu0 %2070 }
 0x28d   : > { %v1919_v59 = vmul.f32 %v9499_v53, %v1512_v55  ;;  %8499 = vrot.lane.b32.xlu1 %v8498_v54, %s8641_s29  ;;  %v1514_v45 = vpop.f32.mrb[7].mxu0  ;;  %v12408_v2 = vmax.f32 %v9573_v58, 0.0 }
 0x28e   : > { %v1920_v8 = vmul.f32 %v9499_v53, %v1514_v45  ;;  %v12411_v62 = vmax.f32 %v9579_v46, 0.0 }
 0x28f   : > { %v9582_v6 = vadd.f32 %v9502_v57, %v1919_v59 }
 0x290   : > { %v1518_v0 = vpop.f32.mrb[8].mxu0  ;;  %v9597_v53 = vadd.f32 %v9502_v57, %v1920_v8 }
 0x291   : > { %v12404_v4 = vmax.f32 %v9582_v6, 0.0  ;;  %v1921_v10 = vmul.f32 %v9505_v60, %v1518_v0  ;;  %2339 = vrot.lane.b32.xlu1 %v12415_v1, %s8641_s29  ;;  %v1520_v47 = vpop.f32.mrb[9].mxu0 }
 0x292   : > { %v1922_v12 = vmul.f32 %v9505_v60, %v1520_v47  ;;  %v2000_v60 = vld [vmem:[%s12364_s4 + $0xd8] sm:$0xff]  ;;  %v12405_v19 = vmax.f32 %v9597_v53, 0.0 }
 0x293   : > { %v8503_v13 = vpack.i.bf16 %v12404_v4, %v12408_v2  ;;  %v9605_v16 = vadd.f32 %v9507_v3, %v1921_v10 }
 0x294   : > { %v1524_v14 = vpop.f32.mrb[10].mxu0  ;;  %v9619_v21 = vadd.f32 %v9507_v3, %v1922_v12 }
 0x295   : > { %v1923_v17 = vmul.f32 %v9510_v7, %v1524_v14  ;;  %2343 = vrot.lane.b32.xlu1 %v12411_v62, %s8641_s29  ;;  %8504 = vrot.lane.b32.xlu0 %v8503_v13, %s8641_s29  ;;  %v1526_v57 = vpop.f32.mrb[11].mxu0  ;;  %v12398_v28 = vmax.f32 %v9605_v16, 0.0 }
 0x296   : > { %v1924_v24 = vmul.f32 %v9510_v7, %v1526_v57  ;;  %v12401_v34 = vmax.f32 %v9619_v21, 0.0 }
 0x297   : > { %v9622_v23 = vadd.f32 %v9513_v9, %v1923_v17 }
 0x298   : > { %v1530_v26 = vpop.f32.mrb[12].mxu0  ;;  %v9635_v35 = vadd.f32 %v9513_v9, %v1924_v24 }
 0x299   : > { %v12394_v29 = vmax.f32 %v9622_v23, 0.0  ;;  %v1925_v32 = vmul.f32 %v9516_v61, %v1530_v26  ;;  %2140 = vperm.xlu1 %8497, %v2000_v60   ;;  %2347 = vrot.lane.b32.xlu0 %v12405_v19, %s8641_s29  ;;  %v1532_v3 = vpop.f32.mrb[13].mxu0  ;;  %v9682_v60 = vpop.permute.xlu0 %2075 }
 0x29a   : > { %v1926_v7 = vmul.f32 %v9516_v61, %v1532_v3  ;;  %v1761_v61 = vld [vmem:[%s12363_s3 + $0xe0] sm:$0xff]  ;;  %v12397_v54 = vmax.f32 %v9635_v35, 0.0 }
 0x29b   : > { %v8508_v38 = vpack.i.bf16 %v12394_v29, %v12398_v28  ;;  %v9645_v43 = vadd.f32 %v9518_v63, %v1925_v32 }
 0x29c   : > { %v1536_v42 = vpop.f32.mrb[14].mxu0  ;;  %v9659_v55 = vadd.f32 %v9518_v63, %v1926_v7  ;;  %v9671_v63 = vpop.permute.xlu1 %1835 }
 0x29d   : > { %v1927_v48 = vmul.f32 %v9521_v15, %v1536_v42  ;;  %2351 = vrot.lane.b32.xlu0 %v12401_v34, %s8641_s29  ;;  %8509 = vrot.lane.b32.xlu1 %v8508_v38, %s8641_s29  ;;  %v1538_v9 = vpop.f32.mrb[15].mxu0  ;;  %v12391_v0 = vmax.f32 %v9645_v43, 0.0 }
 0x29e   : > { %v1928_v45 = vmul.f32 %v9521_v15, %v1538_v9  ;;  %v12393_v13 = vmax.f32 %v9659_v55, 0.0 }
 0x29f   : > { %v9662_v59 = vadd.f32 %v9524_v18, %v1927_v48 }
 0x2a0   : > { %v1542_v8 = vpop.f32.mrb[16].mxu0  ;;  %v9675_v14 = vadd.f32 %v9524_v18, %v1928_v45  ;;  %v9703_v42 = vpop.permute.xlu1 %1840 }
 0x2a1   : > { %v12385_v10 = vmax.f32 %v9662_v59, 0.0  ;;  %v1929_v47 = vmul.f32 %v9527_v22, %v1542_v8  ;;  %1905 = vperm.xlu0 %8496, %v1761_v61   ;;  %2355 = vrot.lane.b32.xlu1 %v12397_v54, %s8641_s29  ;;  %v1544_v12 = vpop.f32.mrb[17].mxu0  ;;  %v9711_v8 = vpop.permute.xlu0 %2080 }
 0x2a2   : > { %v1930_v15 = vmul.f32 %v9527_v22, %v1544_v12  ;;  %v2001_v22 = vld [vmem:[%s12364_s4 + $0xe0] sm:$0xff]  ;;  %v12388_v32 = vmax.f32 %v9675_v14, 0.0 }
 0x2a3   : > { %v8513_v17 = vpack.i.bf16 %v12385_v10, %v12391_v0  ;;  %v9685_v24 = vadd.f32 %v9529_v25, %v1929_v47 }
 0x2a4   : > { %v1548_v57 = vpop.f32.mrb[18].mxu0  ;;  %v9697_v3 = vadd.f32 %v9529_v25, %v1930_v15 }
 0x2a5   : > { %v1931_v26 = vmul.f32 %v9534_v30, %v1548_v57  ;;  %2359 = vrot.lane.b32.xlu1 %v12393_v13, %s8641_s29  ;;  %8514 = vrot.lane.b32.xlu0 %v8513_v17, %s8641_s29  ;;  %v1550_v18 = vpop.f32.mrb[19].mxu0  ;;  %v12379_v9 = vmax.f32 %v9685_v24, 0.0 }
 0x2a6   : > { %v1932_v38 = vmul.f32 %v9534_v30, %v1550_v18  ;;  %v12384_v47 = vmax.f32 %v9697_v3, 0.0  ;;  %v9730_v18 = vpop.permute.xlu1 %1845 }
 0x2a7   : > { %v9700_v7 = vadd.f32 %v9545_v36, %v1931_v26 }
 0x2a8   : > { %v1554_v48 = vpop.f32.mrb[20].mxu0  ;;  %v9715_v30 = vadd.f32 %v9545_v36, %v1932_v38 }
 0x2a9   : > { %v12378_v61 = vmax.f32 %v9700_v7, 0.0  ;;  %v1933_v45 = vmul.f32 %v9560_v49, %v1554_v48  ;;  %2145 = vperm.xlu1 %8497, %v2001_v22   ;;  %2363 = vrot.lane.b32.xlu0 %v12388_v32, %s8641_s29  ;;  %v1556_v25 = vpop.f32.mrb[21].mxu0 }
 0x2aa   : > { %v1934_v12 = vmul.f32 %v9560_v49, %v1556_v25  ;;  %v2002_v49 = vld [vmem:[%s12364_s4 + $0xe8] sm:$0xff]  ;;  %v12383_v22 = vmax.f32 %v9715_v30, 0.0 }
 0x2ab   : > { %v8518_v15 = vpack.i.bf16 %v12378_v61, %v12379_v9  ;;  %v9723_v57 = vadd.f32 %v9570_v56, %v1933_v45 }
 0x2ac   : > { %v1560_v17 = vpop.f32.mrb[22].mxu0  ;;  %v9737_v38 = vadd.f32 %v9570_v56, %v1934_v12 }
 0x2ad   : > { %v1935_v26 = vmul.f32 %v9585_v5, %v1560_v17  ;;  %2367 = vrot.lane.b32.xlu0 %v12384_v47, %s8641_s29  ;;  %8519 = vrot.lane.b32.xlu1 %v8518_v15, %s8641_s29  ;;  %v1562_v36 = vpop.f32.mrb[23].mxu0  ;;  %v9743_v17 = vpop.permute.xlu0 %2085  ;;  %v12381_v15 = vmax.f32 %v9723_v57, 0.0 }
 0x2ae   : > { %v1936_v45 = vmul.f32 %v9585_v5, %v1562_v36 }
 0x2af   : > { %v9740_v48 = vadd.f32 %v9593_v11, %v1935_v26  ;;  %v12382_v26 = vmax.f32 %v9737_v38, 0.0 }
 0x2b0   : > { %v1566_v25 = vpop.f32.mrb[24].mxu0  ;;  %v9754_v5 = vadd.f32 %v9593_v11, %v1936_v45 }
 0x2b1   : > { %v12380_v51 = vmax.f32 %v9740_v48, 0.0  ;;  %2150 = vperm.xlu0 %8496, %v2002_v49   ;;  %2371 = vrot.lane.b32.xlu1 %v12383_v22, %s8641_s29  ;;  %v1568_v61 = vpop.f32.mrb[25].mxu0  ;;  %v1937_v56 = vmul.f32 %v9612_v52, %v1566_v25  ;;  %v1851_v49 = vpop.permute.xlu1 %1850 }
 0x2b2   : > { %v1938_v12 = vmul.f32 %v9612_v52, %v1568_v61  ;;  %v1762_v61 = vld [vmem:[%s12363_s3 + $0xe8] sm:$0xff]  ;;  %v2091_v45 = vpop.permute.xlu0 %2090 }
 0x2b3   : > { %v8523_v36 = vpack.i.bf16 %v12380_v51, %v12381_v15  ;;  %v9765_v52 = vadd.f32 %v9625_v27, %v1937_v56  ;;  %v12386_v51 = vmax.f32 %v9754_v5, 0.0 }
 0x2b4   : > { %v1572_v9 = vpop.f32.mrb[26].mxu0  ;;  %v9768_v11 = vadd.f32 %v9625_v27, %v1938_v12 }
 0x2b5   : > { %2375 = vrot.lane.b32.xlu1 %v12382_v26, %s8641_s29  ;;  %8524 = vrot.lane.b32.xlu0 %v8523_v36, %s8641_s29  ;;  %v1574_v25 = vpop.f32.mrb[27].mxu0  ;;  %v1939_v15 = vmul.f32 %v9642_v39, %v1572_v9  ;;  %v1856_v27 = vpop.permute.xlu1 %1855  ;;  %v12387_v12 = vmax.f32 %v9765_v52, 0.0 }
 0x2b6   : > { %v1940_v26 = vmul.f32 %v9642_v39, %v1574_v25  ;;  %v12389_v36 = vmax.f32 %v9768_v11, 0.0 }
 0x2b7   : > { %v9782_v47 = vadd.f32 %v9655_v50, %v1939_v15 }
 0x2b8   : > { %v1578_v22 = vpop.f32.mrb[28].mxu0  ;;  %v9785_v10 = vadd.f32 %v9655_v50, %v1940_v26 }
 0x2b9   : > { %1910 = vperm.xlu1 %8497, %v1762_v61   ;;  %2379 = vrot.lane.b32.xlu0 %v12386_v51, %s8641_s29  ;;  %v1580_v56 = vpop.f32.mrb[29].mxu0  ;;  %v1941_v39 = vmul.f32 %v9671_v63, %v1578_v22  ;;  %v2096_v61 = vpop.permute.xlu0 %2095  ;;  %v12390_v26 = vmax.f32 %v9782_v47, 0.0 }
 0x2ba   : > { %v1942_v9 = vmul.f32 %v9671_v63, %v1580_v56  ;;  %v12392_v22 = vmax.f32 %v9785_v10, 0.0 }
 0x2bb   : > { %v9800_v63 = vadd.f32 %v9682_v60, %v1941_v39 }
 0x2bc   : > { %v1584_v25 = vpop.f32.mrb[30].mxu0  ;;  %v9803_v56 = vadd.f32 %v9682_v60, %v1942_v9 }
 0x2bd   : > { %2381 = vrot.lane.b32.xlu1 %v12387_v12, %s8641_s29  ;;  %2383 = vrot.lane.b32.xlu0 %v12389_v36, %s8641_s29  ;;  %v1586_v51 = vpop.f32.mrb[31].mxu0  ;;  %v1943_v15 = vmul.f32 %v9703_v42, %v1584_v25  ;;  %v2101_v12 = vpop.permute.xlu1 %2100  ;;  %v12395_v60 = vmax.f32 %v9800_v63, 0.0 }
 0x2be   : > { %v1944_v50 = vmul.f32 %v9703_v42, %v1586_v51  ;;  %v1861_v25 = vpop.permute.xlu0 %1860  ;;  %v12396_v9 = vmax.f32 %v9803_v56, 0.0 }
 0x2bf   : > { %v9812_v42 = vadd.f32 %v9711_v8, %v1943_v15 }
 0x2c0   : > { %v1590_v32 = vpop.f32.mrb[32].mxu0  ;;  %v9815_v39 = vadd.f32 %v9711_v8, %v1944_v50 }
 0x2c1   : > { %2385 = vrot.lane.b32.xlu1 %v12390_v26, %s8641_s29  ;;  %2387 = vrot.lane.b32.xlu0 %v12392_v22, %s8641_s29  ;;  %v1592_v51 = vpop.f32.mrb[33].mxu0  ;;  %v1945_v36 = vmul.f32 %v9730_v18, %v1590_v32  ;;  %v2106_v15 = vpop.permute.xlu1 %2105  ;;  %v12399_v50 = vmax.f32 %v9812_v42, 0.0 }
 0x2c2   : > { %v1946_v26 = vmul.f32 %v9730_v18, %v1592_v51  ;;  %v12400_v22 = vmax.f32 %v9815_v39, 0.0 }
 0x2c3   : > { %v9830_v13 = vadd.f32 %v9743_v17, %v1945_v36 }
 0x2c4   : > { %v1596_v0 = vpop.f32.mrb[34].mxu0  ;;  %v9833_v32 = vadd.f32 %v9743_v17, %v1946_v26 }
 0x2c5   : > { %2389 = vrot.lane.b32.xlu1 %v12395_v60, %s8641_s29  ;;  %2391 = vrot.lane.b32.xlu0 %v12396_v9, %s8641_s29  ;;  %v1598_v8 = vpop.f32.mrb[35].mxu0  ;;  %v1947_v18 = vmul.f32 %v1851_v49, %v1596_v0  ;;  %v1866_v60 = vpop.permute.xlu0 %1865  ;;  %v12402_v36 = vmax.f32 %v9830_v13, 0.0 }
 0x2c6   : > { %v1948_v51 = vmul.f32 %v1851_v49, %v1598_v8  ;;  %v12403_v17 = vmax.f32 %v9833_v32, 0.0  ;;  %v1871_v49 = vpop.permute.xlu1 %1870 }
 0x2c7   : > { %v9843_v26 = vadd.f32 %v2091_v45, %v1947_v18 }
 0x2c8   : > { %v1602_v29 = vpop.f32.mrb[36].mxu0  ;;  %v9845_v0 = vadd.f32 %v2091_v45, %v1948_v51 }
 0x2c9   : > { %2393 = vrot.lane.b32.xlu1 %v12399_v50, %s8641_s29  ;;  %2395 = vrot.lane.b32.xlu0 %v12400_v22, %s8641_s29  ;;  %v1604_v9 = vpop.f32.mrb[37].mxu0  ;;  %v1949_v54 = vmul.f32 %v1856_v27, %v1602_v29  ;;  %v2111_v50 = vpop.permute.xlu0 %2110  ;;  %v12406_v18 = vmax.f32 %v9843_v26, 0.0 }
 0x2ca   : > { %v1950_v28 = vmul.f32 %v1856_v27, %v1604_v9  ;;  %v12407_v45 = vmax.f32 %v9845_v0, 0.0 }
 0x2cb   : > { %v9853_v27 = vadd.f32 %v2096_v61, %v1949_v54 }
 0x2cc   : > { %v1608_v8 = vpop.f32.mrb[38].mxu0  ;;  %v9855_v9 = vadd.f32 %v2096_v61, %v1950_v28 }
 0x2cd   : > { %2397 = vrot.lane.b32.xlu1 %v12402_v36, %s8641_s29  ;;  %2399 = vrot.lane.b32.xlu0 %v12403_v17, %s8641_s29  ;;  %v1610_v29 = vpop.f32.mrb[39].mxu0  ;;  %v1951_v51 = vmul.f32 %v1861_v25, %v1608_v8  ;;  %v1876_v36 = vpop.permute.xlu1 %1875  ;;  %v12409_v28 = vmax.f32 %v9853_v27, 0.0 }
 0x2ce   : > { %v1952_v22 = vmul.f32 %v1861_v25, %v1610_v29  ;;  %v12410_v61 = vmax.f32 %v9855_v9, 0.0  ;;  %v2116_v19 = vpop.permute.xlu0 %2115 }
 0x2cf   : > { %v9867_v17 = vadd.f32 %v2101_v12, %v1951_v51 }
 0x2d0   : > { %v1614_v34 = vpop.f32.mrb[40].mxu0  ;;  %v9869_v4 = vadd.f32 %v2101_v12, %v1952_v22 }
 0x2d1   : > { %2401 = vrot.lane.b32.xlu1 %v12406_v18, %s8641_s29  ;;  %2403 = vrot.lane.b32.xlu0 %v12407_v45, %s8641_s29  ;;  %v1616_v54 = vpop.f32.mrb[41].mxu0  ;;  %v1953_v25 = vmul.f32 %v1866_v60, %v1614_v34  ;;  %v12412_v51 = vmax.f32 %v9867_v17, 0.0 }
 0x2d2   : > { %v1954_v8 = vmul.f32 %v1866_v60, %v1616_v54  ;;  %v12413_v12 = vmax.f32 %v9869_v4, 0.0  ;;  %v2121_v60 = vpop.permute.xlu1 %2120 }
 0x2d3   : > { %v9879_v22 = vadd.f32 %v2106_v15, %v1953_v25 }
 0x2d4   : > { %v1620_v29 = vpop.f32.mrb[42].mxu0  ;;  %v9881_v34 = vadd.f32 %v2106_v15, %v1954_v8 }
 0x2d5   : > { %2405 = vrot.lane.b32.xlu1 %v12409_v28, %s8641_s29  ;;  %2407 = vrot.lane.b32.xlu0 %v12410_v61, %s8641_s29  ;;  %v1622_v18 = vpop.f32.mrb[43].mxu0  ;;  %v1955_v45 = vmul.f32 %v1871_v49, %v1620_v29  ;;  %v1881_v28 = vpop.permute.xlu0 %1880  ;;  %v12416_v25 = vmax.f32 %v9879_v22, 0.0 }
 0x2d6   : > { %v1956_v2 = vmul.f32 %v1871_v49, %v1622_v18  ;;  %v12417_v15 = vmax.f32 %v9881_v34, 0.0 }
 0x2d7   : > { %v9889_v49 = vadd.f32 %v2111_v50, %v1955_v45 }
 0x2d8   : > { %v1626_v54 = vpop.f32.mrb[44].mxu0  ;;  %v9891_v18 = vadd.f32 %v2111_v50, %v1956_v2 }
 0x2d9   : > { %2409 = vrot.lane.b32.xlu1 %v12412_v51, %s8641_s29  ;;  %2411 = vrot.lane.b32.xlu0 %v12413_v12, %s8641_s29  ;;  %v1628_v29 = vpop.f32.mrb[45].mxu0  ;;  %v1957_v8 = vmul.f32 %v1876_v36, %v1626_v54  ;;  %v2126_v51 = vpop.permute.xlu1 %2125  ;;  %v12419_v2 = vmax.f32 %v9889_v49, 0.0 }
 0x2da   : > { %v1958_v61 = vmul.f32 %v1876_v36, %v1628_v29  ;;  %v12420_v50 = vmax.f32 %v9891_v18, 0.0  ;;  %v1886_v1 = vpop.permute.xlu0 %1885 }
 0x2db   : > { %v9903_v12 = vadd.f32 %v2116_v19, %v1957_v8 }
 0x2dc   : > { %v1632_v62 = vpop.f32.mrb[46].mxu0  ;;  %v9905_v41 = vadd.f32 %v2116_v19, %v1958_v61 }
 0x2dd   : > { %2413 = vrot.lane.b32.xlu1 %v12416_v25, %s8641_s29  ;;  %2415 = vrot.lane.b32.xlu0 %v12417_v15, %s8641_s29  ;;  %v1634_v45 = vpop.f32.mrb[47].mxu0  ;;  %12466 = vst [vmem:[#allocation5_spill] sm:$0xff] %v9903_v12  ;;  %v1959_v36 = vmul.f32 %v1881_v28, %v1632_v62  ;;  %v12422_v8 = vmax.f32 %v9903_v12, 0.0 }
 0x2de   : > { %12467 = vst [vmem:[#allocation6_spill] sm:$0xff] %v9905_v41  ;;  %v1960_v54 = vmul.f32 %v1881_v28, %v1634_v45  ;;  %v12423_v19 = vmax.f32 %v9905_v41, 0.0  ;;  %v1891_v28 = vpop.permute.xlu1 %1890 }
 0x2df   : > { %v9915_v61 = vadd.f32 %v2121_v60, %v1959_v36 }
 0x2e0   : > { %v1638_v29 = vpop.f32.mrb[48].mxu0  ;;  %v9917_v62 = vadd.f32 %v2121_v60, %v1960_v54 }
 0x2e1   : > { %2417 = vrot.lane.b32.xlu1 %v12419_v2, %s8641_s29  ;;  %2419 = vrot.lane.b32.xlu0 %v12420_v50, %s8641_s29  ;;  %v1640_v25 = vpop.f32.mrb[49].mxu0  ;;  %v1961_v15 = vmul.f32 %v1886_v1, %v1638_v29  ;;  %12468 = vst [vmem:[#allocation7_spill] sm:$0xff] %v9915_v61  ;;  %v12425_v36 = vmax.f32 %v9915_v61, 0.0  ;;  %v2131_v50 = vpop.permute.xlu0 %2130 }
 0x2e2   : > { %v1962_v40 = vmul.f32 %v1886_v1, %v1640_v25  ;;  %12469 = vst [vmem:[#allocation8_spill] sm:$0xff] %v9917_v62  ;;  %v12426_v60 = vmax.f32 %v9917_v62, 0.0 }
 0x2e3   : > { %v9925_v1 = vadd.f32 %v2126_v51, %v1961_v15 }
 0x2e4   : > { %v1644_v45 = vpop.f32.mrb[50].mxu0  ;;  %v9927_v25 = vadd.f32 %v2126_v51, %v1962_v40 }
 0x2e5   : > { %2421 = vrot.lane.b32.xlu1 %v12422_v8, %s8641_s29  ;;  %2423 = vrot.lane.b32.xlu0 %v12423_v19, %s8641_s29  ;;  %v1646_v29 = vpop.f32.mrb[51].mxu0  ;;  %12470 = vst [vmem:[#allocation9_spill] sm:$0xff] %v9925_v1  ;;  %v1963_v54 = vmul.f32 %v1891_v28, %v1644_v45  ;;  %v1896_v8 = vpop.permute.xlu1 %1895  ;;  %v12431_v40 = vmax.f32 %v9925_v1, 0.0 }
 0x2e6   : > { %12471 = vst [vmem:[#allocation10_spill] sm:$0xff] %v9927_v25  ;;  %v1964_v2 = vmul.f32 %v1891_v28, %v1646_v29  ;;  %v12432_v51 = vmax.f32 %v9927_v25, 0.0 }
 0x2e7   : > { %v9939_v19 = vadd.f32 %v2131_v50, %v1963_v54 }
 0x2e8   : > { %v1650_v20 = vpop.f32.mrb[52].mxu0  ;;  %v9941_v45 = vadd.f32 %v2131_v50, %v1964_v2 }
 0x2e9   : > { %2425 = vrot.lane.b32.xlu1 %v12425_v36, %s8641_s29  ;;  %2427 = vrot.lane.b32.xlu0 %v12426_v60, %s8641_s29  ;;  %v1652_v15 = vpop.f32.mrb[53].mxu0  ;;  %12472 = vst [vmem:[#allocation11_spill] sm:$0xff] %v9939_v19  ;;  %v1965_v28 = vmul.f32 %v1896_v8, %v1650_v20  ;;  %v2136_v60 = vpop.permute.xlu0 %2135  ;;  %v12429_v61 = vmax.f32 %v9939_v19, 0.0 }
 0x2ea   : > { %12473 = vst [vmem:[#allocation12_spill] sm:$0xff] %v9941_v45  ;;  %v1966_v29 = vmul.f32 %v1896_v8, %v1652_v15  ;;  %v12430_v54 = vmax.f32 %v9941_v45, 0.0 }
 0x2eb   : > { %v9951_v62 = vadd.f32 %v2136_v60, %v1965_v28 }
 0x2ec   : > { %v1656_v12 = vpop.f32.mrb[54].mxu0  ;;  %v9953_v2 = vadd.f32 %v2136_v60, %v1966_v29 }
 0x2ed   : > { %2429 = vrot.lane.b32.xlu1 %v12431_v40, %s8641_s29  ;;  %2431 = vrot.lane.b32.xlu0 %v12432_v51, %s8641_s29  ;;  %v1658_v36 = vpop.f32.mrb[55].mxu0  ;;  %12474 = vst [vmem:[#allocation13_spill] sm:$0xff] %v9951_v62  ;;  %v12436_v8 = vmax.f32 %v9951_v62, 0.0 }
 0x2ee   : > { %12475 = vst [vmem:[#allocation14_spill] sm:$0xff] %v9953_v2  ;;  %v12438_v15 = vmax.f32 %v9953_v2, 0.0  ;;  %v12478_v2 = vmax.f32 %v9563_v44, 0.0 }
 0x2f0   : > { %v9955_v20 = vpop.f32.mrb[56].mxu0 }
 0x2f1   : > { %2433 = vrot.lane.b32.xlu1 %v12429_v61, %s8641_s29  ;;  %2435 = vrot.lane.b32.xlu0 %v12430_v54, %s8641_s29  ;;  %v9963_v50 = vpop.f32.mrb[57].mxu0  ;;  %v12476_v61 = vmax.f32 %v9537_v31, 0.0 }
 0x2f4   : > { %v9967_v28 = vpop.f32.mrb[58].mxu0 }
 0x2f5   : > { %2437 = vrot.lane.b32.xlu1 %v12436_v8, %s8641_s29  ;;  %2439 = vrot.lane.b32.xlu0 %v12438_v15, %s8641_s29  ;;  %v9975_v60 = vpop.f32.mrb[59].mxu0  ;;  %v12477_v8 = vmax.f32 %v9540_v33, 0.0 }
 0x2fa   : > { %v2336_v29 = vpop.permute.xlu0 %2335 }
 0x2fb   : > { %v2544_v54 = vmax.f32 %v12476_v61, %v2336_v29  ;;  %v12479_v61 = vmax.f32 %v9548_v37, 0.0  ;;  %v12482_v37 = vmax.f32 %v9597_v53, 0.0 }
 0x2fd   : > { %6883 = vmatprep.mubr.msk.f32.mxu1 %vm2622_vm7, %v2544_v54 }
 0x2ff   : > { %v8500_v40 = vpop.permute.xlu1 %8499 }
 0x300   : > { %v8501_v51 = vunpack.i.l.bf16 %v8500_v40  ;;  %v8502_v19 = vunpack.i.h.bf16 %v8500_v40  ;;  %v12480_v40 = vmax.f32 %v9579_v46, 0.0 }
 0x302   : > { %v2453_v45 = vsel %vm565_vm0, %v8501_v51, %v2336_v29  ;;  %v12483_v29 = vmax.f32 %v9582_v6, 0.0 }
 0x303   : > { %v2340_v62 = vpop.permute.xlu1 %2339  ;;  %v2543_v1 = vmax.f32 %v12477_v8, %v2453_v45 }
 0x304   : > { %v2454_v15 = vsel %vm565_vm0, %v8502_v19, %v2340_v62  ;;  %v2546_v25 = vmax.f32 %v12478_v2, %v2340_v62 }
 0x305   : > { %2782 = vmatmul.mubr.f32.vlgmr.msra.gmra.mrb[0].mxu1 %v2543_v1  ;;  %v2545_v54 = vmax.f32 %v12479_v61, %v2454_v15  ;;  %v12481_v1 = vmax.f32 %v9573_v58, 0.0 }
 0x306   : > { %6884 = vmatprep.mubr.msk.f32.mxu1 %vm2622_vm7, %v2546_v25 }
 0x307   : > { %v2344_v31 = vpop.permute.xlu1 %2343 }
 0x308   : > { %v2548_v41 = vmax.f32 %v12480_v40, %v2344_v31 }
 0x309   : > { %2787 = vmatmul.mubr.f32.gmra.mrb[2].mxu1 %v2545_v54 }
 0x30a   : > { %6885 = vmatprep.mubr.msk.f32.mxu1 %vm2622_vm7, %v2548_v41 }
 0x30b   : > { %v1901_v33 = vpop.permute.xlu0 %1900 }
 0x30c   : > { %v1967_v46 = vmul.f32 %v1901_v33, %v1656_v12  ;;  %v1968_v41 = vmul.f32 %v1901_v33, %v1658_v36 }
 0x30f   : > { %v8505_v51 = vpop.permute.xlu0 %8504 }
 0x310   : > { %v8506_v45 = vunpack.i.l.bf16 %v8505_v51  ;;  %v8507_v19 = vunpack.i.h.bf16 %v8505_v51 }
 0x312   : > { %v2455_v44 = vsel %vm565_vm0, %v8506_v45, %v2344_v31  ;;  %v12484_v31 = vmax.f32 %v9619_v21, 0.0 }
 0x313   : > { %v2348_v62 = vpop.permute.xlu0 %2347  ;;  %v2547_v25 = vmax.f32 %v12481_v1, %v2455_v44  ;;  %v12485_v44 = vmax.f32 %v9605_v16, 0.0 }
 0x314   : > { %v2456_v2 = vsel %vm565_vm0, %v8507_v19, %v2348_v62  ;;  %v2550_v8 = vmax.f32 %v12482_v37, %v2348_v62 }
 0x315   : > { %2792 = vmatmul.mubr.f32.gmra.mrb[4].mxu1 %v2547_v25  ;;  %v2549_v61 = vmax.f32 %v12483_v29, %v2456_v2  ;;  %v12486_v25 = vmax.f32 %v9635_v35, 0.0 }
 0x316   : > { %6886 = vmatprep.mubr.msk.f32.mxu1 %vm2622_vm7, %v2550_v8 }
 0x317   : > { %v2352_v15 = vpop.permute.xlu0 %2351 }
 0x318   : > { %v2552_v54 = vmax.f32 %v12484_v31, %v2352_v15  ;;  %v2141_v40 = vpop.permute.xlu1 %2140 }
 0x319   : > { %v10003_v58 = vadd.f32 %v2141_v40, %v1967_v46  ;;  %v10005_v51 = vadd.f32 %v2141_v40, %v1968_v41  ;;  %2797 = vmatmul.mubr.f32.gmra.mrb[6].mxu1 %v2549_v61  ;;  %v12487_v46 = vmax.f32 %v9622_v23, 0.0 }
 0x31a   : > { %6887 = vmatprep.mubr.msk.f32.mxu1 %vm2622_vm7, %v2552_v54 }
 0x31b   : > { %v2267_v53 = vmax.f32 %v10003_v58, 0.0  ;;  %v2268_v12 = vmax.f32 %v10005_v51, 0.0 }
 0x31c   : > { %v8510_v36 = vpop.permute.xlu1 %8509 }
 0x31d   : > { %v8511_v33 = vunpack.i.l.bf16 %v8510_v36  ;;  %2441 = vrot.lane.b32.xlu1 %v2267_v53, %s8641_s29  ;;  %2443 = vrot.lane.b32.xlu0 %v2268_v12, %s8641_s29  ;;  %v8512_v6 = vunpack.i.h.bf16 %v8510_v36 }
 0x31f   : > { %v2457_v21 = vsel %vm565_vm0, %v8511_v33, %v2352_v15  ;;  %v12488_v15 = vmax.f32 %v9659_v55, 0.0  ;;  %v12489_v33 = vmax.f32 %v9645_v43, 0.0  ;;  %v12491_v43 = vmax.f32 %v9662_v59, 0.0 }
 0x320   : > { %v1906_v45 = vpop.permute.xlu0 %1905  ;;  %v2356_v19 = vpop.permute.xlu1 %2355  ;;  %v2551_v62 = vmax.f32 %v12485_v44, %v2457_v21 }
 0x321   : > { %v2458_v1 = vsel %vm565_vm0, %v8512_v6, %v2356_v19  ;;  %v2554_v2 = vmax.f32 %v12486_v25, %v2356_v19  ;;  %v1969_v16 = vmul.f32 %v1906_v45, %v9955_v20  ;;  %v1970_v31 = vmul.f32 %v1906_v45, %v9963_v50 }
 0x322   : > { %2802 = vmatmul.mubr.f32.gmra.mrb[8].mxu1 %v2551_v62  ;;  %v2553_v41 = vmax.f32 %v12487_v46, %v2458_v1  ;;  %v12490_v20 = vmax.f32 %v9675_v14, 0.0  ;;  %v12492_v25 = vmax.f32 %v9697_v3, 0.0  ;;  %v12493_v3 = vmax.f32 %v9685_v24, 0.0 }
 0x323   : > { %6888 = vmatprep.mubr.msk.f32.mxu1 %vm2622_vm7, %v2554_v2 }
 0x324   : > { %v2360_v37 = vpop.permute.xlu1 %2359  ;;  %v8515_v8 = vpop.permute.xlu0 %8514 }
 0x325   : > { %v2556_v29 = vmax.f32 %v12488_v15, %v2360_v37  ;;  %v8516_v61 = vunpack.i.l.bf16 %v8515_v8  ;;  %v8517_v54 = vunpack.i.h.bf16 %v8515_v8 }
 0x326   : > { %2807 = vmatmul.mubr.f32.gmra.mrb[10].mxu1 %v2553_v41 }
 0x327   : > { %6889 = vmatprep.mubr.msk.f32.mxu1 %vm2622_vm7, %v2556_v29  ;;  %v2459_v35 = vsel %vm565_vm0, %v8516_v61, %v2360_v37  ;;  %v12494_v29 = vmax.f32 %v9715_v30, 0.0 }
 0x328   : > { %v2146_v40 = vpop.permute.xlu1 %2145  ;;  %v2364_v36 = vpop.permute.xlu0 %2363  ;;  %v2555_v23 = vmax.f32 %v12489_v33, %v2459_v35 }
 0x329   : > { %v10033_v6 = vadd.f32 %v2146_v40, %v1969_v16  ;;  %v10035_v55 = vadd.f32 %v2146_v40, %v1970_v31  ;;  %v2460_v21 = vsel %vm565_vm0, %v8517_v54, %v2364_v36  ;;  %v2558_v19 = vmax.f32 %v12490_v20, %v2364_v36 }
 0x32a   : > { %2812 = vmatmul.mubr.f32.gmra.mrb[12].mxu1 %v2555_v23  ;;  %v2557_v1 = vmax.f32 %v12491_v43, %v2460_v21  ;;  %v12495_v54 = vmax.f32 %v9700_v7, 0.0  ;;  %v12496_v40 = vmax.f32 %v9737_v38, 0.0  ;;  %v12497_v20 = vmax.f32 %v9723_v57, 0.0 }
 0x32b   : > { %v2269_v50 = vmax.f32 %v10033_v6, 0.0  ;;  %v2270_v45 = vmax.f32 %v10035_v55, 0.0  ;;  %6890 = vmatprep.mubr.msk.f32.mxu1 %vm2622_vm7, %v2558_v19  ;;  %v12498_v38 = vmax.f32 %v9754_v5, 0.0  ;;  %v12499_v57 = vmax.f32 %v9740_v48, 0.0 }
 0x32c   : > { %v2368_v44 = vpop.permute.xlu0 %2367  ;;  %v8520_v62 = vpop.permute.xlu1 %8519  ;;  %v12500_v5 = vmax.f32 %v9768_v11, 0.0  ;;  %v12502_v11 = vmax.f32 %v9785_v10, 0.0  ;;  %v12505_v10 = vmax.f32 %v9800_v63, 0.0 }
 0x32d   : > { %v2560_v2 = vmax.f32 %v12492_v25, %v2368_v44  ;;  %v8521_v37 = vunpack.i.l.bf16 %v8520_v62  ;;  %2445 = vrot.lane.b32.xlu1 %v2269_v50, %s8641_s29  ;;  %2447 = vrot.lane.b32.xlu0 %v2270_v45, %s8641_s29  ;;  %v8522_v14 = vunpack.i.h.bf16 %v8520_v62 }
 0x32e   : > { %2817 = vmatmul.mubr.f32.gmra.mrb[14].mxu1 %v2557_v1 }
 0x32f   : > { %6891 = vmatprep.mubr.msk.f32.mxu1 %vm2622_vm7, %v2560_v2  ;;  %v2461_v8 = vsel %vm565_vm0, %v8521_v37, %v2368_v44 }
 0x330   : > { %v2151_v59 = vpop.permute.xlu0 %2150  ;;  %v2372_v46 = vpop.permute.xlu1 %2371  ;;  %v2559_v41 = vmax.f32 %v12493_v3, %v2461_v8  ;;  %v12501_v3 = vmax.f32 %v9765_v52, 0.0 }
 0x331   : > { %v2462_v15 = vsel %vm565_vm0, %v8522_v14, %v2372_v46  ;;  %v2562_v61 = vmax.f32 %v12494_v29, %v2372_v46 }
 0x332   : > { %2822 = vmatmul.mubr.f32.gmra.mrb[16].mxu1 %v2559_v41  ;;  %v2561_v35 = vmax.f32 %v12495_v54, %v2462_v15 }
 0x333   : > { %6892 = vmatprep.mubr.msk.f32.mxu1 %vm2622_vm7, %v2562_v61 }
 0x334   : > { %v2376_v16 = vpop.permute.xlu1 %2375  ;;  %v8525_v31 = vpop.permute.xlu0 %8524 }
 0x335   : > { %v2564_v36 = vmax.f32 %v12496_v40, %v2376_v16  ;;  %v8526_v33 = vunpack.i.l.bf16 %v8525_v31  ;;  %v8527_v24 = vunpack.i.h.bf16 %v8525_v31  ;;  %v12503_v31 = vmax.f32 %v9782_v47, 0.0 }
 0x336   : > { %2827 = vmatmul.mubr.f32.gmra.mrb[18].mxu1 %v2561_v35  ;;  %v12504_v40 = vmax.f32 %v9803_v56, 0.0  ;;  %v12507_v56 = vmax.f32 %v9812_v42, 0.0 }
 0x337   : > { %6893 = vmatprep.mubr.msk.f32.mxu1 %vm2622_vm7, %v2564_v36  ;;  %v2463_v23 = vsel %vm565_vm0, %v8526_v33, %v2376_v16 }
 0x338   : > { %v1911_v30 = vpop.permute.xlu1 %1910  ;;  %v2380_v21 = vpop.permute.xlu0 %2379  ;;  %v2563_v19 = vmax.f32 %v12497_v20, %v2463_v23 }
 0x339   : > { %v1971_v44 = vmul.f32 %v1911_v30, %v9967_v28  ;;  %v1972_v7 = vmul.f32 %v1911_v30, %v9975_v60  ;;  %v2464_v62 = vsel %vm565_vm0, %v8527_v24, %v2380_v21  ;;  %v2566_v43 = vmax.f32 %v12498_v38, %v2380_v21 }
 0x33a   : > { %2832 = vmatmul.mubr.f32.gmra.mrb[20].mxu1 %v2563_v19  ;;  %v2565_v14 = vmax.f32 %v12499_v57, %v2464_v62  ;;  %v12506_v30 = vmax.f32 %v9815_v39, 0.0  ;;  %v12509_v39 = vmax.f32 %v9830_v13, 0.0 }
 0x33b   : > { %v10074_v1 = vadd.f32 %v2151_v59, %v1971_v44  ;;  %v10076_v25 = vadd.f32 %v2151_v59, %v1972_v7  ;;  %6894 = vmatprep.mubr.msk.f32.mxu1 %vm2622_vm7, %v2566_v43  ;;  %v12508_v7 = vmax.f32 %v9833_v32, 0.0  ;;  %v12511_v32 = vmax.f32 %v9843_v26, 0.0 }
 0x33c   : > { %v2382_v2 = vpop.permute.xlu1 %2381  ;;  %v2384_v37 = vpop.permute.xlu0 %2383 }
 0x33d   : > { %v2271_v28 = vmax.f32 %v10074_v1, 0.0  ;;  %v2272_v60 = vmax.f32 %v10076_v25, 0.0  ;;  %v2465_v8 = vsel %vm565_vm0, %v2382_v2, %v2384_v37  ;;  %v2568_v46 = vmax.f32 %v12500_v5, %v2384_v37 }
 0x33e   : > { %2837 = vmatmul.mubr.f32.gmra.mrb[22].mxu1 %v2565_v14  ;;  %v2567_v41 = vmax.f32 %v12501_v3, %v2465_v8  ;;  %v12510_v37 = vmax.f32 %v9845_v0, 0.0  ;;  %v12513_v0 = vmax.f32 %v9853_v27, 0.0 }
 0x33f   : > { %6895 = vmatprep.mubr.msk.f32.mxu1 %vm2622_vm7, %v2568_v46  ;;  %2449 = vrot.lane.b32.xlu1 %v2271_v28, %s8641_s29  ;;  %v12512_v46 = vmax.f32 %v9855_v9, 0.0  ;;  %v12515_v9 = vmax.f32 %v9867_v17, 0.0 }
 0x340   : > { %2451 = vrot.lane.b32.xlu0 %v2272_v60, %s8641_s29  ;;  %v2386_v48 = vpop.permute.xlu1 %2385  ;;  %v2388_v59 = vpop.permute.xlu0 %2387 }
 0x341   : > { %v2466_v15 = vsel %vm565_vm0, %v2386_v48, %v2388_v59  ;;  %v2570_v29 = vmax.f32 %v12502_v11, %v2388_v59 }
 0x342   : > { %2842 = vmatmul.mubr.f32.gmra.mrb[24].mxu1 %v2567_v41  ;;  %v2569_v54 = vmax.f32 %v12503_v31, %v2466_v15  ;;  %v12514_v15 = vmax.f32 %v9869_v4, 0.0  ;;  %v12516_v31 = vmax.f32 %v9881_v34, 0.0  ;;  %v12517_v4 = vmax.f32 %v9879_v22, 0.0 }
 0x343   : > { %6896 = vmatprep.mubr.msk.f32.mxu1 %vm2622_vm7, %v2570_v29  ;;  %v12519_v34 = vmax.f32 %v9889_v49, 0.0 }
 0x344   : > { %v2390_v61 = vpop.permute.xlu1 %2389  ;;  %v2392_v16 = vpop.permute.xlu0 %2391 }
 0x345   : > { %v2467_v35 = vsel %vm565_vm0, %v2390_v61, %v2392_v16  ;;  %v2572_v36 = vmax.f32 %v12504_v40, %v2392_v16 }
 0x346   : > { %2847 = vmatmul.mubr.f32.gmra.mrb[26].mxu1 %v2569_v54  ;;  %v2571_v24 = vmax.f32 %v12505_v10, %v2467_v35 }
 0x347   : > { %6897 = vmatprep.mubr.msk.f32.mxu1 %vm2622_vm7, %v2572_v36 }
 0x348   : > { %v2394_v52 = vpop.permute.xlu1 %2393  ;;  %v2396_v33 = vpop.permute.xlu0 %2395 }
 0x349   : > { %v2468_v23 = vsel %vm565_vm0, %v2394_v52, %v2396_v33  ;;  %v2574_v21 = vmax.f32 %v12506_v30, %v2396_v33  ;;  %v12518_v52 = vmax.f32 %v9891_v18, 0.0  ;;  %v12520_v30 = vld [vmem:[#allocation6_spill] sm:$0xff]  ;;  %v12522_v18 = vld [vmem:[#allocation5_spill] sm:$0xff] }
 0x34a   : > { %2852 = vmatmul.mubr.f32.gmra.mrb[28].mxu1 %v2571_v24  ;;  %v2573_v19 = vmax.f32 %v12507_v56, %v2468_v23  ;;  %v12523_v56 = vmax.f32 %v12522_v18, 0.0 }
 0x34b   : > { %6898 = vmatprep.mubr.msk.f32.mxu1 %vm2622_vm7, %v2574_v21  ;;  %v12521_v21 = vmax.f32 %v12520_v30, 0.0 }
 0x34c   : > { %v2398_v47 = vpop.permute.xlu1 %2397  ;;  %v2400_v20 = vpop.permute.xlu0 %2399 }
 0x34d   : > { %v2469_v44 = vsel %vm565_vm0, %v2398_v47, %v2400_v20  ;;  %v2576_v62 = vmax.f32 %v12508_v7, %v2400_v20  ;;  %v12524_v7 = vld [vmem:[#allocation8_spill] sm:$0xff] }
 0x34e   : > { %2857 = vmatmul.mubr.f32.gmra.mrb[30].mxu1 %v2573_v19  ;;  %v2575_v43 = vmax.f32 %v12509_v39, %v2469_v44  ;;  %v12526_v39 = vld [vmem:[#allocation7_spill] sm:$0xff] }
 0x34f   : > { %6899 = vmatprep.mubr.msk.f32.mxu1 %vm2622_vm7, %v2576_v62  ;;  %v12525_v62 = vmax.f32 %v12524_v7, 0.0 }
 0x350   : > { %v2402_v63 = vpop.permute.xlu1 %2401  ;;  %v2404_v38 = vpop.permute.xlu0 %2403 }
 0x351   : > { %v2470_v2 = vsel %vm565_vm0, %v2402_v63, %v2404_v38  ;;  %v2578_v57 = vmax.f32 %v12510_v37, %v2404_v38 }
 0x352   : > { %2862 = vmatmul.mubr.f32.gmra.mrb[32].mxu1 %v2575_v43  ;;  %v2577_v8 = vmax.f32 %v12511_v32, %v2470_v2  ;;  %v12527_v43 = vmax.f32 %v12526_v39, 0.0 }
 0x353   : > { %6900 = vmatprep.mubr.msk.f32.mxu1 %vm2622_vm7, %v2578_v57  ;;  %v12528_v57 = vld [vmem:[#allocation10_spill] sm:$0xff] }
 0x354   : > { %v2406_v42 = vpop.permute.xlu1 %2405  ;;  %v2408_v14 = vpop.permute.xlu0 %2407 }
 0x355   : > { %v2471_v5 = vsel %vm565_vm0, %v2406_v42, %v2408_v14  ;;  %v2580_v48 = vmax.f32 %v12512_v46, %v2408_v14  ;;  %v12529_v42 = vmax.f32 %v12528_v57, 0.0 }
 0x356   : > { %2867 = vmatmul.mubr.f32.gmra.mrb[34].mxu1 %v2577_v8  ;;  %v2579_v3 = vmax.f32 %v12513_v0, %v2471_v5  ;;  %v12530_v5 = vld [vmem:[#allocation9_spill] sm:$0xff] }
 0x357   : > { %6901 = vmatprep.mubr.msk.f32.mxu1 %vm2622_vm7, %v2580_v48  ;;  %v12531_v46 = vmax.f32 %v12530_v5, 0.0 }
 0x358   : > { %v2410_v13 = vpop.permute.xlu1 %2409  ;;  %v2412_v59 = vpop.permute.xlu0 %2411 }
 0x359   : > { %v2472_v41 = vsel %vm565_vm0, %v2410_v13, %v2412_v59  ;;  %v2582_v11 = vmax.f32 %v12514_v15, %v2412_v59  ;;  %v12532_v59 = vld [vmem:[#allocation12_spill] sm:$0xff] }
 0x35a   : > { %2872 = vmatmul.mubr.f32.gmra.mrb[36].mxu1 %v2579_v3  ;;  %v2581_v61 = vmax.f32 %v12515_v9, %v2472_v41  ;;  %v12533_v0 = vmax.f32 %v12532_v59, 0.0 }
 0x35b   : > { %6902 = vmatprep.mubr.msk.f32.mxu1 %vm2622_vm7, %v2582_v11  ;;  %v12534_v11 = vld [vmem:[#allocation11_spill] sm:$0xff] }
 0x35c   : > { %v2414_v26 = vpop.permute.xlu1 %2413  ;;  %v2416_v29 = vpop.permute.xlu0 %2415 }
 0x35d   : > { %v2473_v16 = vsel %vm565_vm0, %v2414_v26, %v2416_v29  ;;  %v2584_v54 = vmax.f32 %v12516_v31, %v2416_v29  ;;  %v12535_v26 = vmax.f32 %v12534_v11, 0.0 }
 0x35e   : > { %2877 = vmatmul.mubr.f32.gmra.mrb[38].mxu1 %v2581_v61  ;;  %v2583_v40 = vmax.f32 %v12517_v4, %v2473_v16  ;;  %v12536_v61 = vld [vmem:[#allocation14_spill] sm:$0xff] }
 0x35f   : > { %6903 = vmatprep.mubr.msk.f32.mxu1 %vm2622_vm7, %v2584_v54  ;;  %v12537_v16 = vmax.f32 %v12536_v61, 0.0  ;;  %v12538_v54 = vld [vmem:[#allocation13_spill] sm:$0xff] }
 0x360   : > { %v2418_v27 = vpop.permute.xlu1 %2417  ;;  %v2420_v35 = vpop.permute.xlu0 %2419 }
 0x361   : > { %v2474_v36 = vsel %vm565_vm0, %v2418_v27, %v2420_v35  ;;  %v2586_v33 = vmax.f32 %v12518_v52, %v2420_v35  ;;  %v12539_v27 = vmax.f32 %v12538_v54, 0.0 }
 0x362   : > { %2882 = vmatmul.mubr.f32.gmra.mrb[40].mxu1 %v2583_v40  ;;  %v2585_v24 = vmax.f32 %v12519_v34, %v2474_v36 }
 0x363   : > { %6904 = vmatprep.mubr.msk.f32.mxu1 %vm2622_vm7, %v2586_v33 }
 0x364   : > { %v2422_v17 = vpop.permute.xlu1 %2421  ;;  %v2424_v10 = vpop.permute.xlu0 %2423 }
 0x365   : > { %v2475_v23 = vsel %vm565_vm0, %v2422_v17, %v2424_v10  ;;  %v2588_v47 = vmax.f32 %v12521_v21, %v2424_v10 }
 0x366   : > { %2887 = vmatmul.mubr.f32.gmra.mrb[42].mxu1 %v2585_v24  ;;  %v2587_v19 = vmax.f32 %v12523_v56, %v2475_v23 }
 0x367   : > { %6905 = vmatprep.mubr.msk.f32.mxu1 %vm2622_vm7, %v2588_v47  ;;  %v12540_v47 = vmov 0.0|0.0  }
 0x368   : > { %v2426_v22 = vpop.permute.xlu1 %2425  ;;  %v2428_v20 = vpop.permute.xlu0 %2427 }
 0x369   : > { %v2476_v44 = vsel %vm565_vm0, %v2426_v22, %v2428_v20  ;;  %v2590_v63 = vmax.f32 %v12525_v62, %v2428_v20 }
 0x36a   : > { %2892 = vmatmul.mubr.f32.gmra.mrb[44].mxu1 %v2587_v19  ;;  %v2589_v2 = vmax.f32 %v12527_v43, %v2476_v44 }
 0x36b   : > { %6906 = vmatprep.mubr.msk.f32.mxu1 %vm2622_vm7, %v2590_v63 }
 0x36c   : > { %v2430_v49 = vpop.permute.xlu1 %2429  ;;  %v2432_v38 = vpop.permute.xlu0 %2431 }
 0x36d   : > { %v2477_v37 = vsel %vm565_vm0, %v2430_v49, %v2432_v38  ;;  %v2592_v14 = vmax.f32 %v12529_v42, %v2432_v38  ;;  %v2933_v42 = vld [vmem:[%s12368_s8 + $0x8] sm:$0xff] }
 0x36e   : > { %2897 = vmatmul.mubr.f32.gmra.mrb[46].mxu1 %v2589_v2  ;;  %v2591_v48 = vmax.f32 %v12531_v46, %v2477_v37 }
 0x36f   : > { %6907 = vmatprep.mubr.msk.f32.mxu1 %vm2622_vm7, %v2592_v14 }
 0x370   : > { %v2434_v32 = vpop.permute.xlu1 %2433  ;;  %v2436_v8 = vpop.permute.xlu0 %2435 }
 0x371   : > { %v2478_v13 = vsel %vm565_vm0, %v2434_v32, %v2436_v8  ;;  %v2594_v3 = vmax.f32 %v12533_v0, %v2436_v8 }
 0x372   : > { %2902 = vmatmul.mubr.f32.gmra.mrb[48].mxu1 %v2591_v48  ;;  %v2593_v29 = vmax.f32 %v12535_v26, %v2478_v13 }
 0x373   : > { %6908 = vmatprep.mubr.msk.f32.mxu1 %vm2622_vm7, %v2594_v3 }
 0x374   : > { %v2438_v41 = vpop.permute.xlu1 %2437  ;;  %v2440_v15 = vpop.permute.xlu0 %2439 }
 0x375   : > { %v2479_v9 = vsel %vm565_vm0, %v2438_v41, %v2440_v15  ;;  %v2596_v31 = vmax.f32 %v12537_v16, %v2440_v15 }
 0x376   : > { %2907 = vmatmul.mubr.f32.gmra.mrb[50].mxu1 %v2593_v29  ;;  %v2595_v35 = vmax.f32 %v12539_v27, %v2479_v9 }
 0x377   : > { %6909 = vmatprep.mubr.msk.f32.mxu1 %vm2622_vm7, %v2596_v31 }
 0x37a   : > { %2912 = vmatmul.mubr.f32.gmra.mrb[52].mxu1 %v2595_v35 }
 0x38f   : > { %v2442_v4 = vpop.permute.xlu1 %2441  ;;  %v2444_v40 = vpop.permute.xlu0 %2443 }
 0x390   : > { %v2480_v36 = vsel %vm565_vm0, %v2442_v4, %v2444_v40  ;;  %v2598_v52 = vmax.f32 %v2268_v12, %v2444_v40 }
 0x391   : > { %v2597_v33 = vmax.f32 %v2267_v53, %v2480_v36 }
 0x392   : > { %6910 = vmatprep.mubr.msk.f32.mxu1 %vm2622_vm7, %v2598_v52 }
 0x393   : > { %2917 = vmatmul.mubr.f32.gmra.mrb[54].mxu1 %v2597_v33 }
 0x39f   : > { %v2446_v17 = vpop.permute.xlu1 %2445  ;;  %v2448_v10 = vpop.permute.xlu0 %2447 }
 0x3a0   : > { %v2481_v34 = vsel %vm565_vm0, %v2446_v17, %v2448_v10  ;;  %v2600_v24 = vmax.f32 %v2270_v45, %v2448_v10 }
 0x3a1   : > { %v2599_v23 = vmax.f32 %v2269_v50, %v2481_v34 }
 0x3a2   : > { %6911 = vmatprep.mubr.msk.f32.mxu1 %vm2622_vm7, %v2600_v24 }
 0x3a3   : > { %2922 = vmatmul.mubr.f32.gmra.mrb[56].mxu1 %v2599_v23 }
 0x3b1   : > { %v2450_v51 = vpop.permute.xlu1 %2449 }
 0x3b2   : > { %v2452_v12 = vpop.permute.xlu0 %2451 }
 0x3b3   : > { %v2482_v58 = vsel %vm565_vm0, %v2450_v51, %v2452_v12  ;;  %v2602_v53 = vmax.f32 %v2272_v60, %v2452_v12 }
 0x3b4   : > { %v2601_v30 = vmax.f32 %v2271_v28, %v2482_v58 }
 0x3b5   : > { %6912 = vmatprep.mubr.msk.f32.mxu1 %vm2622_vm7, %v2602_v53 }
 0x3b6   : > { %2927 = vmatmul.mubr.f32.gmra.mrb[58].mxu1 %v2601_v30 }
 0x3b7   : > { %6913 = vmatprep.mubr.msk.f32.mxu1 %vm2962_vm8, %v2933_v42  ;;  %v2945_v42 = vld [vmem:[%s12368_s8 + $0x68] sm:$0xff] }
 0x3d8   : > { %v2783_v55 = vpop.f32.mrb[0].mxu1 }
 0x3d9   : > { %v2785_v45 = vpop.f32.mrb[1].mxu1 }
 0x3dc   : > { %v2788_v6 = vpop.f32.mrb[2].mxu1 }
 0x3dd   : > { %v10197_v50 = vpack.c.bf16 %v2788_v6, %v2783_v55  ;;  %v2790_v21 = vpop.f32.mrb[3].mxu1 }
 0x3df   : > { %7905 = vmatpush1.bf16.msra.mxu1 %v10197_v50 }
 0x3e0   : > { %7906 = vmatprep.subr.bf16.mxu1 %v12540_v47 }
 0x3e8   : > { %v2793_v22 = vpop.f32.mrb[4].mxu1 }
 0x3e9   : > { %v2795_v20 = vpop.f32.mrb[5].mxu1 }
 0x3ec   : > { %v2798_v25 = vpop.f32.mrb[6].mxu1 }
 0x3ed   : > { %v10201_v60 = vpack.c.bf16 %v2798_v25, %v2793_v22  ;;  %v2800_v1 = vpop.f32.mrb[7].mxu1 }
 0x3ef   : > { %7908 = vmatpush1.bf16.msra.mxu1 %v10201_v60 }
 0x3f0   : > { %7909 = vmatprep.subr.bf16.mxu1 %v12540_v47 }
 0x3f5   : > { %v2803_v28 = vpop.f32.mrb[8].mxu1 }
 0x3f6   : > { %v2805_v18 = vpop.f32.mrb[9].mxu1 }
 0x3f9   : > { %v2808_v56 = vpop.f32.mrb[10].mxu1 }
 0x3fa   : > { %v10205_v19 = vpack.c.bf16 %v2808_v56, %v2803_v28  ;;  %v2810_v44 = vpop.f32.mrb[11].mxu1 }
 0x3fc   : > { %7911 = vmatpush1.bf16.msra.mxu1 %v10205_v19 }
 0x3fd   : > { %v2813_v7 = vpop.f32.mrb[12].mxu1  ;;  %7912 = vmatprep.subr.bf16.mxu1 %v12540_v47 }
 0x3fe   : > { %v2815_v62 = vpop.f32.mrb[13].mxu1 }
 0x3ff   : > { %v2932_v62 = vld [vmem:[%s12368_s8] sm:$0xff] }
 0x401   : > { %v2818_v63 = vpop.f32.mrb[14].mxu1 }
 0x402   : > { %v10209_v49 = vpack.c.bf16 %v2818_v63, %v2813_v7  ;;  %v2820_v38 = vpop.f32.mrb[15].mxu1  ;;  %v2935_v63 = vld [vmem:[%s12368_s8 + $0x18] sm:$0xff] }
 0x403   : > { %v2934_v38 = vld [vmem:[%s12368_s8 + $0x10] sm:$0xff] }
 0x404   : > { %7914 = vmatpush1.bf16.msra.mxu1 %v10209_v49 }
 0x405   : > { %v2823_v39 = vpop.f32.mrb[16].mxu1  ;;  %7915 = vmatprep.subr.bf16.mxu1 %v12540_v47 }
 0x406   : > { %v2825_v43 = vpop.f32.mrb[17].mxu1 }
 0x407   : > { %v2939_v43 = vld [vmem:[%s12368_s8 + $0x38] sm:$0xff] }
 0x409   : > { %v2828_v2 = vpop.f32.mrb[18].mxu1 }
 0x40a   : > { %v10213_v37 = vpack.c.bf16 %v2828_v2, %v2823_v39  ;;  %v2830_v57 = vpop.f32.mrb[19].mxu1  ;;  %v2937_v39 = vld [vmem:[%s12368_s8 + $0x28] sm:$0xff] }
 0x40b   : > { %v2941_v2 = vld [vmem:[%s12368_s8 + $0x48] sm:$0xff]  ;;  %v2943_v57 = vld [vmem:[%s12368_s8 + $0x58] sm:$0xff] }
 0x40c   : > { %7917 = vmatpush1.bf16.msra.mxu1 %v10213_v37 }
 0x40d   : > { %v2833_v14 = vpop.f32.mrb[20].mxu1  ;;  %7918 = vmatprep.subr.bf16.mxu1 %v12540_v47 }
 0x40e   : > { %v2835_v32 = vpop.f32.mrb[21].mxu1 }
 0x40f   : > { %v2946_v32 = vld [vmem:[%s12368_s8 + $0x70] sm:$0xff] }
 0x411   : > { %v2838_v8 = vpop.f32.mrb[22].mxu1 }
 0x412   : > { %v10221_v5 = vpack.c.bf16 %v2838_v8, %v2833_v14  ;;  %v2840_v46 = vpop.f32.mrb[23].mxu1  ;;  %v2947_v14 = vld [vmem:[%s12368_s8 + $0x78] sm:$0xff]  ;;  %v2949_v8 = vld [vmem:[%s12368_s8 + $0x88] sm:$0xff] }
 0x413   : > { %v2951_v46 = vld [vmem:[%s12368_s8 + $0x98] sm:$0xff] }
 0x414   : > { %7920 = vmatpush1.bf16.msra.mxu1 %v10221_v5 }
 0x415   : > { %v2843_v48 = vpop.f32.mrb[24].mxu1  ;;  %7921 = vmatprep.subr.bf16.mxu1 %v12540_v47 }
 0x416   : > { %v2845_v13 = vpop.f32.mrb[25].mxu1 }
 0x417   : > { %v2953_v13 = vld [vmem:[%s12368_s8 + $0xa8] sm:$0xff] }
 0x419   : > { %v2848_v59 = vpop.f32.mrb[26].mxu1 }
 0x41a   : > { %v10225_v0 = vpack.c.bf16 %v2848_v59, %v2843_v48  ;;  %v2850_v3 = vpop.f32.mrb[27].mxu1  ;;  %v2950_v48 = vld [vmem:[%s12368_s8 + $0x90] sm:$0xff]  ;;  %v2952_v59 = vld [vmem:[%s12368_s8 + $0xa0] sm:$0xff] }
 0x41b   : > { %v2954_v3 = vld [vmem:[%s12368_s8 + $0xb0] sm:$0xff] }
 0x41c   : > { %7923 = vmatpush1.bf16.msra.mxu1 %v10225_v0 }
 0x41d   : > { %v2853_v41 = vpop.f32.mrb[28].mxu1  ;;  %7924 = vmatprep.subr.bf16.mxu1 %v12540_v47 }
 0x41e   : > { %v2855_v15 = vpop.f32.mrb[29].mxu1 }
 0x41f   : > { %v2956_v15 = vld [vmem:[%s12368_s8 + $0xc0] sm:$0xff] }
 0x421   : > { %v2858_v11 = vpop.f32.mrb[30].mxu1 }
 0x422   : > { %v10229_v26 = vpack.c.bf16 %v2858_v11, %v2853_v41  ;;  %v2860_v29 = vpop.f32.mrb[31].mxu1  ;;  %v2957_v41 = vld [vmem:[%s12368_s8 + $0xc8] sm:$0xff]  ;;  %v2959_v11 = vld [vmem:[%s12368_s8 + $0xd8] sm:$0xff] }
 0x423   : > { %v2961_v29 = vld [vmem:[%s12368_s8 + $0xe8] sm:$0xff] }
 0x424   : > { %7926 = vmatpush1.bf16.msra.mxu1 %v10229_v26 }
 0x425   : > { %v2863_v9 = vpop.f32.mrb[32].mxu1  ;;  %7927 = vmatprep.subr.bf16.mxu1 %v12540_v47 }
 0x426   : > { %v2865_v61 = vpop.f32.mrb[33].mxu1 }
 0x427   : > { %v3149_v61 = vld [vmem:[%s12369_s9 + $0x8] sm:$0xff] }
 0x429   : > { %v2868_v16 = vpop.f32.mrb[34].mxu1 }
 0x42a   : > { %v10233_v31 = vpack.c.bf16 %v2868_v16, %v2863_v9  ;;  %v2870_v54 = vpop.f32.mrb[35].mxu1  ;;  %v2960_v9 = vld [vmem:[%s12368_s8 + $0xe0] sm:$0xff] }
 0x42b   : > { %v3148_v16 = vld [vmem:[%s12369_s9] sm:$0xff]  ;;  %v3150_v54 = vld [vmem:[%s12369_s9 + $0x10] sm:$0xff] }
 0x42c   : > { %7929 = vmatpush1.bf16.msra.mxu1 %v10233_v31 }
 0x42d   : > { %v2873_v27 = vpop.f32.mrb[36].mxu1  ;;  %7930 = vmatprep.subr.bf16.mxu1 %v12540_v47 }
 0x42e   : > { %v2875_v35 = vpop.f32.mrb[37].mxu1 }
 0x42f   : > { %v3152_v35 = vld [vmem:[%s12369_s9 + $0x20] sm:$0xff] }
 0x431   : > { %v2878_v4 = vpop.f32.mrb[38].mxu1 }
 0x432   : > { %v10237_v40 = vpack.c.bf16 %v2878_v4, %v2873_v27  ;;  %v2880_v36 = vpop.f32.mrb[39].mxu1  ;;  %v3153_v27 = vld [vmem:[%s12369_s9 + $0x28] sm:$0xff]  ;;  %v3155_v4 = vld [vmem:[%s12369_s9 + $0x38] sm:$0xff] }
 0x433   : > { %v3157_v36 = vld [vmem:[%s12369_s9 + $0x48] sm:$0xff] }
 0x434   : > { %7932 = vmatpush1.bf16.msra.mxu1 %v10237_v40 }
 0x435   : > { %v2883_v52 = vpop.f32.mrb[40].mxu1  ;;  %7933 = vmatprep.subr.bf16.mxu1 %v12540_v47 }
 0x436   : > { %v2885_v33 = vpop.f32.mrb[41].mxu1 }
 0x437   : > { %v3159_v33 = vld [vmem:[%s12369_s9 + $0x58] sm:$0xff] }
 0x439   : > { %v2888_v17 = vpop.f32.mrb[42].mxu1 }
 0x43a   : > { %v10241_v10 = vpack.c.bf16 %v2888_v17, %v2883_v52  ;;  %v2890_v34 = vpop.f32.mrb[43].mxu1  ;;  %v3156_v52 = vld [vmem:[%s12369_s9 + $0x40] sm:$0xff]  ;;  %v3158_v17 = vld [vmem:[%s12369_s9 + $0x50] sm:$0xff] }
 0x43b   : > { %v3160_v34 = vld [vmem:[%s12369_s9 + $0x60] sm:$0xff] }
 0x43c   : > { %7935 = vmatpush1.bf16.msra.mxu1 %v10241_v10 }
 0x43d   : > { %v2893_v24 = vpop.f32.mrb[44].mxu1  ;;  %7936 = vmatprep.subr.bf16.mxu1 %v12540_v47 }
 0x43e   : > { %v2895_v23 = vpop.f32.mrb[45].mxu1 }
 0x43f   : > { %v3162_v23 = vld [vmem:[%s12369_s9 + $0x70] sm:$0xff] }
 0x441   : > { %v2898_v51 = vpop.f32.mrb[46].mxu1 }
 0x442   : > { %v10245_v12 = vpack.c.bf16 %v2898_v51, %v2893_v24  ;;  %v2900_v58 = vpop.f32.mrb[47].mxu1  ;;  %v3163_v24 = vld [vmem:[%s12369_s9 + $0x78] sm:$0xff]  ;;  %v3165_v51 = vld [vmem:[%s12369_s9 + $0x88] sm:$0xff] }
 0x443   : > { %v3167_v58 = vld [vmem:[%s12369_s9 + $0x98] sm:$0xff] }
 0x444   : > { %7938 = vmatpush1.bf16.msra.mxu1 %v10245_v12 }
 0x445   : > { %v2903_v53 = vpop.f32.mrb[48].mxu1  ;;  %7939 = vmatprep.subr.bf16.mxu1 %v12540_v47 }
 0x446   : > { %v2905_v30 = vpop.f32.mrb[49].mxu1 }
 0x447   : > { %v3169_v30 = vld [vmem:[%s12369_s9 + $0xa8] sm:$0xff] }
 0x449   : > { %v2908_v55 = vpop.f32.mrb[50].mxu1 }
 0x44a   : > { %v10249_v45 = vpack.c.bf16 %v2908_v55, %v2903_v53  ;;  %v2910_v6 = vpop.f32.mrb[51].mxu1  ;;  %v3166_v53 = vld [vmem:[%s12369_s9 + $0x90] sm:$0xff]  ;;  %v3168_v55 = vld [vmem:[%s12369_s9 + $0xa0] sm:$0xff] }
 0x44b   : > { %v3170_v6 = vld [vmem:[%s12369_s9 + $0xb0] sm:$0xff] }
 0x44c   : > { %7941 = vmatpush1.bf16.msra.mxu1 %v10249_v45 }
 0x44d   : > { %v2913_v21 = vpop.f32.mrb[52].mxu1  ;;  %7942 = vmatprep.subr.bf16.mxu1 %v12540_v47 }
 0x44e   : > { %v2915_v22 = vpop.f32.mrb[53].mxu1 }
 0x44f   : > { %v3172_v22 = vld [vmem:[%s12369_s9 + $0xc0] sm:$0xff] }
 0x466   : > { %v2918_v20 = vpop.f32.mrb[54].mxu1 }
 0x467   : > { %v10253_v25 = vpack.c.bf16 %v2918_v20, %v2913_v21  ;;  %v2920_v1 = vpop.f32.mrb[55].mxu1  ;;  %v3173_v21 = vld [vmem:[%s12369_s9 + $0xc8] sm:$0xff]  ;;  %v3175_v20 = vld [vmem:[%s12369_s9 + $0xd8] sm:$0xff] }
 0x468   : > { %v3177_v1 = vld [vmem:[%s12369_s9 + $0xe8] sm:$0xff] }
 0x469   : > { %7944 = vmatpush1.bf16.msra.mxu1 %v10253_v25 }
 0x46a   : > { %7945 = vmatprep.subr.bf16.mxu1 %v12540_v47 }
 0x476   : > { %v2923_v28 = vpop.f32.mrb[56].mxu1 }
 0x477   : > { %v2925_v18 = vpop.f32.mrb[57].mxu1 }
 0x489   : > { %v2928_v56 = vpop.f32.mrb[58].mxu1 }
 0x48a   : > { %v10257_v44 = vpack.c.bf16 %v2928_v56, %v2923_v28  ;;  %v2930_v7 = vpop.f32.mrb[59].mxu1  ;;  %v3176_v28 = vld [vmem:[%s12369_s9 + $0xe0] sm:$0xff] }
 0x48c   : > { %7947 = vmatpush1.bf16.msra.mxu1 %v10257_v44 }
 0x48d   : > { %7948 = vmatprep.subr.bf16.mxu1 %v12540_v47 }
 0x48f   : > { %3073 = vmatmul.mubr.f32.vlgmr.msra.gmra.mrb[60].mxu1 %v2932_v62 }
 0x490   : > { %7950 = vmatpush1.bf16.msra.mxu1 %v10197_v50  ;;  %6914 = vmatprep.mubr.msk.f32.mxu1 %vm2962_vm8, %v2935_v63  ;;  %v2936_v50 = vld [vmem:[%s12368_s8 + $0x20] sm:$0xff] }
 0x491   : > { %7951 = vmatprep.subr.bf16.mxu1 %v12540_v47 }
 0x493   : > { %3078 = vmatmul.mubr.f32.gmra.mrb[62].mxu1 %v2934_v38 }
 0x494   : > { %7953 = vmatpush1.bf16.msra.mxu1 %v10201_v60  ;;  %6915 = vmatprep.mubr.msk.f32.mxu1 %vm2962_vm8, %v2937_v39  ;;  %v2938_v60 = vld [vmem:[%s12368_s8 + $0x30] sm:$0xff] }
 0x495   : > { %7954 = vmatprep.subr.bf16.mxu1 %v12540_v47 }
 0x497   : > { %3083 = vmatmul.mubr.f32.gmra.mrb[64].mxu1 %v2936_v50 }
 0x498   : > { %7956 = vmatpush1.bf16.msra.mxu1 %v10205_v19  ;;  %6916 = vmatprep.mubr.msk.f32.mxu1 %vm2962_vm8, %v2939_v43  ;;  %v2940_v19 = vld [vmem:[%s12368_s8 + $0x40] sm:$0xff] }
 0x499   : > { %7957 = vmatprep.subr.bf16.mxu1 %v12540_v47 }
 0x49b   : > { %3088 = vmatmul.mubr.f32.gmra.mrb[66].mxu1 %v2938_v60 }
 0x49c   : > { %7959 = vmatpush1.bf16.msra.mxu1 %v10209_v49  ;;  %6917 = vmatprep.mubr.msk.f32.mxu1 %vm2962_vm8, %v2941_v2  ;;  %v2942_v49 = vld [vmem:[%s12368_s8 + $0x50] sm:$0xff] }
 0x49d   : > { %7960 = vmatprep.subr.bf16.mxu1 %v12540_v47 }
 0x49f   : > { %3093 = vmatmul.mubr.f32.gmra.mrb[68].mxu1 %v2940_v19 }
 0x4a0   : > { %7962 = vmatpush1.bf16.msra.mxu1 %v10213_v37  ;;  %6918 = vmatprep.mubr.msk.f32.mxu1 %vm2962_vm8, %v2943_v57  ;;  %v2944_v37 = vld [vmem:[%s12368_s8 + $0x60] sm:$0xff] }
 0x4a1   : > { %7963 = vmatprep.subr.bf16.mxu1 %v12540_v47 }
 0x4a3   : > { %3098 = vmatmul.mubr.f32.gmra.mrb[70].mxu1 %v2942_v49 }
 0x4a4   : > { %7965 = vmatpush1.bf16.msra.mxu1 %v10221_v5  ;;  %6919 = vmatprep.mubr.msk.f32.mxu1 %vm2962_vm8, %v2945_v42  ;;  %v2948_v5 = vld [vmem:[%s12368_s8 + $0x80] sm:$0xff] }
 0x4a5   : > { %7966 = vmatprep.subr.bf16.mxu1 %v12540_v47 }
 0x4a7   : > { %3103 = vmatmul.mubr.f32.gmra.mrb[72].mxu1 %v2944_v37 }
 0x4a8   : > { %7968 = vmatpush1.bf16.msra.mxu1 %v10225_v0  ;;  %6920 = vmatprep.mubr.msk.f32.mxu1 %vm2962_vm8, %v2947_v14  ;;  %v2955_v0 = vld [vmem:[%s12368_s8 + $0xb8] sm:$0xff] }
 0x4a9   : > { %7969 = vmatprep.subr.bf16.mxu1 %v12540_v47 }
 0x4ab   : > { %3108 = vmatmul.mubr.f32.gmra.mrb[74].mxu1 %v2946_v32 }
 0x4ac   : > { %7971 = vmatpush1.bf16.msra.mxu1 %v10229_v26  ;;  %6921 = vmatprep.mubr.msk.f32.mxu1 %vm2962_vm8, %v2949_v8  ;;  %v2958_v26 = vld [vmem:[%s12368_s8 + $0xd0] sm:$0xff] }
 0x4ad   : > { %7972 = vmatprep.subr.bf16.mxu1 %v12540_v47 }
 0x4af   : > { %3113 = vmatmul.mubr.f32.gmra.mrb[76].mxu1 %v2948_v5 }
 0x4b0   : > { %7974 = vmatpush1.bf16.msra.mxu1 %v10233_v31  ;;  %6922 = vmatprep.mubr.msk.f32.mxu1 %vm2962_vm8, %v2951_v46  ;;  %v3151_v31 = vld [vmem:[%s12369_s9 + $0x18] sm:$0xff] }
 0x4b1   : > { %7975 = vmatprep.subr.bf16.mxu1 %v12540_v47 }
 0x4b3   : > { %3118 = vmatmul.mubr.f32.gmra.mrb[78].mxu1 %v2950_v48 }
 0x4b4   : > { %7977 = vmatpush1.bf16.msra.mxu1 %v10237_v40  ;;  %6923 = vmatprep.mubr.msk.f32.mxu1 %vm2962_vm8, %v2953_v13  ;;  %v3154_v40 = vld [vmem:[%s12369_s9 + $0x30] sm:$0xff] }
 0x4b5   : > { %7978 = vmatprep.subr.bf16.mxu1 %v12540_v47 }
 0x4b7   : > { %3123 = vmatmul.mubr.f32.gmra.mrb[80].mxu1 %v2952_v59 }
 0x4b8   : > { %7980 = vmatpush1.bf16.msra.mxu1 %v10241_v10  ;;  %6924 = vmatprep.mubr.msk.f32.mxu1 %vm2962_vm8, %v2955_v0  ;;  %v3161_v10 = vld [vmem:[%s12369_s9 + $0x68] sm:$0xff] }
 0x4b9   : > { %7981 = vmatprep.subr.bf16.mxu1 %v12540_v47 }
 0x4bb   : > { %3128 = vmatmul.mubr.f32.gmra.mrb[82].mxu1 %v2954_v3 }
 0x4bc   : > { %7983 = vmatpush1.bf16.msra.mxu1 %v10245_v12  ;;  %6925 = vmatprep.mubr.msk.f32.mxu1 %vm2962_vm8, %v2957_v41  ;;  %v3164_v12 = vld [vmem:[%s12369_s9 + $0x80] sm:$0xff] }
 0x4bd   : > { %7984 = vmatprep.subr.bf16.mxu1 %v12540_v47 }
 0x4bf   : > { %3133 = vmatmul.mubr.f32.gmra.mrb[84].mxu1 %v2956_v15 }
 0x4c0   : > { %7986 = vmatpush1.bf16.msra.mxu1 %v10249_v45  ;;  %6926 = vmatprep.mubr.msk.f32.mxu1 %vm2962_vm8, %v2959_v11  ;;  %v3171_v45 = vld [vmem:[%s12369_s9 + $0xb8] sm:$0xff] }
 0x4c1   : > { %7987 = vmatprep.subr.bf16.mxu1 %v12540_v47 }
 0x4c3   : > { %3138 = vmatmul.mubr.f32.gmra.mrb[86].mxu1 %v2958_v26 }
 0x4c4   : > { %7989 = vmatpush1.bf16.msra.mxu1 %v10253_v25  ;;  %6927 = vmatprep.mubr.msk.f32.mxu1 %vm2962_vm8, %v2961_v29  ;;  %v3174_v25 = vld [vmem:[%s12369_s9 + $0xd0] sm:$0xff] }
 0x4c5   : > { %7990 = vmatprep.subr.bf16.mxu1 %v12540_v47 }
 0x4c7   : > { %3143 = vmatmul.mubr.f32.gmra.mrb[88].mxu1 %v2960_v9 }
 0x4c8   : > { %7992 = vmatpush1.bf16.msra.mxu1 %v10257_v44  ;;  %6928 = vmatprep.mubr.msk.f32.mxu1 %vm2962_vm8, %v3149_v61 }
 0x4cb   : > { %3288 = vmatmul.mubr.f32.vlgmr.msra.gmra.mrb[90].mxu1 %v3148_v16 }
 0x4cc   : > { %6929 = vmatprep.mubr.msk.f32.mxu1 %vm2962_vm8, %v3151_v31 }
 0x4cf   : > { %3293 = vmatmul.mubr.f32.gmra.mrb[92].mxu1 %v3150_v54 }
 0x4d0   : > { %6930 = vmatprep.mubr.msk.f32.mxu1 %vm2962_vm8, %v3153_v27 }
 0x4d3   : > { %3298 = vmatmul.mubr.f32.gmra.mrb[94].mxu1 %v3152_v35 }
 0x4d4   : > { %6931 = vmatprep.mubr.msk.f32.mxu1 %vm2962_vm8, %v3155_v4 }
 0x4d7   : > { %3303 = vmatmul.mubr.f32.gmra.mrb[96].mxu1 %v3154_v40 }
 0x4d8   : > { %6932 = vmatprep.mubr.msk.f32.mxu1 %vm2962_vm8, %v3157_v36 }
 0x4db   : > { %3308 = vmatmul.mubr.f32.gmra.mrb[98].mxu1 %v3156_v52 }
 0x4dc   : > { %6933 = vmatprep.mubr.msk.f32.mxu1 %vm2962_vm8, %v3159_v33 }
 0x4df   : > { %3313 = vmatmul.mubr.f32.gmra.mrb[100].mxu1 %v3158_v17 }
 0x4e0   : > { %6934 = vmatprep.mubr.msk.f32.mxu1 %vm2962_vm8, %v3161_v10 }
 0x4e3   : > { %3318 = vmatmul.mubr.f32.gmra.mrb[102].mxu1 %v3160_v34 }
 0x4e4   : > { %6935 = vmatprep.mubr.msk.f32.mxu1 %vm2962_vm8, %v3163_v24 }
 0x4e7   : > { %3323 = vmatmul.mubr.f32.gmra.mrb[104].mxu1 %v3162_v23 }
 0x4e8   : > { %6936 = vmatprep.mubr.msk.f32.mxu1 %vm2962_vm8, %v3165_v51 }
 0x4eb   : > { %3328 = vmatmul.mubr.f32.gmra.mrb[106].mxu1 %v3164_v12 }
 0x4ec   : > { %6937 = vmatprep.mubr.msk.f32.mxu1 %vm2962_vm8, %v3167_v58 }
 0x4ef   : > { %3333 = vmatmul.mubr.f32.gmra.mrb[108].mxu1 %v3166_v53 }
 0x4f0   : > { %6938 = vmatprep.mubr.msk.f32.mxu1 %vm2962_vm8, %v3169_v30 }
 0x4f3   : > { %3338 = vmatmul.mubr.f32.gmra.mrb[110].mxu1 %v3168_v55 }
 0x4f4   : > { %6939 = vmatprep.mubr.msk.f32.mxu1 %vm2962_vm8, %v3171_v45 }
 0x4f7   : > { %3343 = vmatmul.mubr.f32.gmra.mrb[112].mxu1 %v3170_v6 }
 0x4f8   : > { %6940 = vmatprep.mubr.msk.f32.mxu1 %vm2962_vm8, %v3173_v21 }
 0x4fb   : > { %3348 = vmatmul.mubr.f32.gmra.mrb[114].mxu1 %v3172_v22 }
 0x4fc   : > { %6941 = vmatprep.mubr.msk.f32.mxu1 %vm2962_vm8, %v3175_v20 }
 0x4ff   : > { %3353 = vmatmul.mubr.f32.gmra.mrb[116].mxu1 %v3174_v25 }
 0x500   : > { %6942 = vmatprep.mubr.msk.f32.mxu1 %vm2962_vm8, %v3177_v1 }
 0x503   : > { %3358 = vmatmul.mubr.f32.gmra.mrb[118].mxu1 %v3176_v28 }
 0x562   : > { %v3074_v18 = vpop.f32.mrb[60].mxu1 }
 0x563   : > { %v3076_v56 = vpop.f32.mrb[61].mxu1 }
 0x566   : > { %v3079_v44 = vpop.f32.mrb[62].mxu1 }
 0x567   : > { %v3081_v7 = vpop.f32.mrb[63].mxu1 }
 0x56a   : > { %v3084_v62 = vpop.f32.mrb[64].mxu1 }
 0x56b   : > { %v3086_v63 = vpop.f32.mrb[65].mxu1 }
 0x56e   : > { %v3089_v38 = vpop.f32.mrb[66].mxu1 }
 0x56f   : > { %v3091_v39 = vpop.f32.mrb[67].mxu1 }
 0x572   : > { %v3094_v50 = vpop.f32.mrb[68].mxu1 }
 0x573   : > { %v3096_v43 = vpop.f32.mrb[69].mxu1 }
 0x576   : > { %v3099_v60 = vpop.f32.mrb[70].mxu1 }
 0x577   : > { %v3101_v2 = vpop.f32.mrb[71].mxu1 }
 0x57a   : > { %v3104_v19 = vpop.f32.mrb[72].mxu1 }
 0x57b   : > { %v3106_v57 = vpop.f32.mrb[73].mxu1 }
 0x57e   : > { %v3109_v49 = vpop.f32.mrb[74].mxu1 }
 0x57f   : > { %v3111_v42 = vpop.f32.mrb[75].mxu1 }
 0x582   : > { %v3114_v37 = vpop.f32.mrb[76].mxu1 }
 0x583   : > { %v3116_v14 = vpop.f32.mrb[77].mxu1 }
 0x586   : > { %v3119_v32 = vpop.f32.mrb[78].mxu1 }
 0x587   : > { %v3121_v8 = vpop.f32.mrb[79].mxu1 }
 0x588   : > { %v6943_v8 = vld [vmem:[%s12362_s2 + $0x120] sm:$0xff] }
 0x589   : > { %7470 = vmatprep.mubr.msk.f32.mxu1 %vm3511_vm9, %v6943_v8 }
 0x58a   : > { %v3124_v5 = vpop.f32.mrb[80].mxu1 }
 0x58b   : > { %v3126_v46 = vpop.f32.mrb[81].mxu1 }
 0x58e   : > { %v3129_v48 = vpop.f32.mrb[82].mxu1 }
 0x58f   : > { %v3131_v13 = vpop.f32.mrb[83].mxu1 }
 0x592   : > { %v3134_v59 = vpop.f32.mrb[84].mxu1 }
 0x593   : > { %v3136_v0 = vpop.f32.mrb[85].mxu1 }
 0x596   : > { %v10496_v3 = vpop.f32.mrb[86].mxu1 }
 0x597   : > { %v3141_v41 = vpop.f32.mrb[87].mxu1 }
 0x59a   : > { %v10498_v15 = vpop.f32.mrb[88].mxu1 }
 0x59b   : > { %v3146_v11 = vpop.f32.mrb[89].mxu1 }
 0x59c   : > { %v4941_v11 = vld [vmem:[%s12366_s6] sm:$0xff] }
 0x59e   : > { %v3289_v26 = vpop.f32.mrb[90].mxu1 }
 0x59f   : > { %v3363_v29 = vmax.f32 %v3074_v18, %v3289_v26  ;;  %v3291_v9 = vpop.f32.mrb[91].mxu1  ;;  %v4942_v26 = vld [vmem:[%s12366_s6 + $0x8] sm:$0xff] }
 0x5a0   : > { %v4692_v9 = vld [vmem:[%s12365_s5 + $0x18] sm:$0xff] }
 0x5a2   : > { %v3294_v61 = vpop.f32.mrb[92].mxu1 }
 0x5a3   : > { %v3364_v16 = vmax.f32 %v3079_v44, %v3294_v61  ;;  %v3296_v31 = vpop.f32.mrb[93].mxu1  ;;  %v4943_v61 = vld [vmem:[%s12366_s6 + $0x10] sm:$0xff] }
 0x5a4   : > { %v4693_v31 = vld [vmem:[%s12365_s5 + $0x20] sm:$0xff] }
 0x5a5   : > { %v10500_v54 = vpack.i.bf16 %v3364_v16, %v3363_v29  ;;  %v10502_v27 = vpack.c.bf16 %v3364_v16, %v3363_v29  ;;  %v4691_v29 = vld [vmem:[%s12365_s5 + $0x10] sm:$0xff]  ;;  %v4944_v16 = vld [vmem:[%s12366_s6 + $0x18] sm:$0xff] }
 0x5a6   : > { %v3299_v35 = vpop.f32.mrb[94].mxu1 }
 0x5a7   : > { %v3365_v4 = vmax.f32 %v3084_v62, %v3299_v35  ;;  %8529 = vrot.lane.b32.xlu1 %v10500_v54, %s8641_s29  ;;  %v3301_v40 = vpop.f32.mrb[95].mxu1  ;;  %v4945_v35 = vld [vmem:[%s12366_s6 + $0x20] sm:$0xff] }
 0x5a8   : > { %v4695_v40 = vld [vmem:[%s12365_s5 + $0x30] sm:$0xff] }
 0x5aa   : > { %v3304_v36 = vpop.f32.mrb[96].mxu1 }
 0x5ab   : > { %v3366_v52 = vmax.f32 %v3089_v38, %v3304_v36  ;;  %v3306_v33 = vpop.f32.mrb[97].mxu1  ;;  %v4696_v36 = vld [vmem:[%s12365_s5 + $0x38] sm:$0xff] }
 0x5ac   : > { %v4948_v33 = vld [vmem:[%s12366_s6 + $0x38] sm:$0xff] }
 0x5ad   : > { %v8568_v17 = vpack.i.bf16 %v3366_v52, %v3365_v4  ;;  %v10506_v10 = vpack.c.bf16 %v3366_v52, %v3365_v4  ;;  %v4946_v4 = vld [vmem:[%s12366_s6 + $0x28] sm:$0xff]  ;;  %v4947_v52 = vld [vmem:[%s12366_s6 + $0x30] sm:$0xff] }
 0x5ae   : > { %v3309_v34 = vpop.f32.mrb[98].mxu1 }
 0x5af   : > { %v3367_v24 = vmax.f32 %v3094_v50, %v3309_v34  ;;  %8534 = vrot.lane.b32.xlu0 %v8568_v17, %s8641_s29  ;;  %v3311_v23 = vpop.f32.mrb[99].mxu1  ;;  %v4698_v34 = vld [vmem:[%s12365_s5 + $0x48] sm:$0xff] }
 0x5b0   : > { %v4950_v23 = vld [vmem:[%s12366_s6 + $0x48] sm:$0xff] }
 0x5b2   : > { %v3314_v51 = vpop.f32.mrb[100].mxu1 }
 0x5b3   : > { %v3368_v12 = vmax.f32 %v3099_v60, %v3314_v51  ;;  %v3316_v58 = vpop.f32.mrb[101].mxu1  ;;  %v4699_v51 = vld [vmem:[%s12365_s5 + $0x50] sm:$0xff] }
 0x5b4   : > { %v4951_v58 = vld [vmem:[%s12366_s6 + $0x50] sm:$0xff] }
 0x5b5   : > { %v8573_v53 = vpack.i.bf16 %v3368_v12, %v3367_v24  ;;  %v10509_v30 = vpack.c.bf16 %v3368_v12, %v3367_v24  ;;  %v4949_v24 = vld [vmem:[%s12366_s6 + $0x40] sm:$0xff]  ;;  %v4700_v12 = vld [vmem:[%s12365_s5 + $0x58] sm:$0xff] }
 0x5b6   : > { %v3319_v55 = vpop.f32.mrb[102].mxu1 }
 0x5b7   : > { %v3369_v45 = vmax.f32 %v3104_v19, %v3319_v55  ;;  %8539 = vrot.lane.b32.xlu1 %v8573_v53, %s8641_s29  ;;  %v3321_v6 = vpop.f32.mrb[103].mxu1  ;;  %v4701_v55 = vld [vmem:[%s12365_s5 + $0x60] sm:$0xff] }
 0x5ba   : > { %v3324_v21 = vpop.f32.mrb[104].mxu1 }
 0x5bb   : > { %v3370_v22 = vmax.f32 %v3109_v49, %v3324_v21  ;;  %v3326_v20 = vpop.f32.mrb[105].mxu1 }
 0x5bd   : > { %v8578_v25 = vpack.i.bf16 %v3370_v22, %v3369_v45  ;;  %v10512_v1 = vpack.c.bf16 %v3370_v22, %v3369_v45  ;;  %v4702_v22 = vld [vmem:[%s12365_s5 + $0x68] sm:$0xff] }
 0x5be   : > { %v3329_v28 = vpop.f32.mrb[106].mxu1 }
 0x5bf   : > { %v3371_v18 = vmax.f32 %v3114_v37, %v3329_v28  ;;  %8544 = vrot.lane.b32.xlu0 %v8578_v25, %s8641_s29  ;;  %v3331_v56 = vpop.f32.mrb[107].mxu1  ;;  %v4954_v28 = vld [vmem:[%s12366_s6 + $0x68] sm:$0xff] }
 0x5c2   : > { %v3334_v44 = vpop.f32.mrb[108].mxu1 }
 0x5c3   : > { %v3372_v7 = vmax.f32 %v3119_v32, %v3334_v44  ;;  %v3336_v62 = vpop.f32.mrb[109].mxu1 }
 0x5c4   : > { %v4704_v62 = vld [vmem:[%s12365_s5 + $0x78] sm:$0xff] }
 0x5c5   : > { %v8583_v63 = vpack.i.bf16 %v3372_v7, %v3371_v18  ;;  %v10515_v38 = vpack.c.bf16 %v3372_v7, %v3371_v18  ;;  %v4703_v18 = vld [vmem:[%s12365_s5 + $0x70] sm:$0xff] }
 0x5c6   : > { %v3339_v39 = vpop.f32.mrb[110].mxu1 }
 0x5c7   : > { %v3373_v50 = vmax.f32 %v3124_v5, %v3339_v39  ;;  %8549 = vrot.lane.b32.xlu1 %v8583_v63, %s8641_s29  ;;  %v3341_v43 = vpop.f32.mrb[111].mxu1  ;;  %v4955_v39 = vld [vmem:[%s12366_s6 + $0x70] sm:$0xff] }
 0x5c8   : > { %v4705_v43 = vld [vmem:[%s12365_s5 + $0x80] sm:$0xff] }
 0x5ca   : > { %v3344_v60 = vpop.f32.mrb[112].mxu1 }
 0x5cb   : > { %v3374_v2 = vmax.f32 %v3129_v48, %v3344_v60  ;;  %v3346_v19 = vpop.f32.mrb[113].mxu1 }
 0x5cd   : > { %v8588_v57 = vpack.i.bf16 %v3374_v2, %v3373_v50  ;;  %v10518_v49 = vpack.c.bf16 %v3374_v2, %v3373_v50  ;;  %v4956_v50 = vld [vmem:[%s12366_s6 + $0x78] sm:$0xff] }
 0x5ce   : > { %v3349_v42 = vpop.f32.mrb[114].mxu1 }
 0x5cf   : > { %v3375_v37 = vmax.f32 %v3134_v59, %v3349_v42  ;;  %8554 = vrot.lane.b32.xlu0 %v8588_v57, %s8641_s29  ;;  %v3351_v14 = vpop.f32.mrb[115].mxu1 }
 0x5d0   : > { %v4958_v14 = vld [vmem:[%s12366_s6 + $0x88] sm:$0xff] }
 0x5d2   : > { %v3354_v32 = vpop.f32.mrb[116].mxu1 }
 0x5d3   : > { %v3376_v5 = vmax.f32 %v10496_v3, %v3354_v32  ;;  %v3356_v46 = vpop.f32.mrb[117].mxu1  ;;  %v4689_v3 = vld [vmem:[%s12365_s5] sm:$0xff]  ;;  %v4707_v32 = vld [vmem:[%s12365_s5 + $0x90] sm:$0xff] }
 0x5d5   : > { %v8593_v48 = vpack.i.bf16 %v3376_v5, %v3375_v37  ;;  %v10526_v13 = vpack.c.bf16 %v3376_v5, %v3375_v37  ;;  %v4957_v37 = vld [vmem:[%s12366_s6 + $0x80] sm:$0xff] }
 0x5d6   : > { %v3359_v0 = vpop.f32.mrb[118].mxu1 }
 0x5d7   : > { %v10529_v59 = vmax.f32 %v10498_v15, %v3359_v0  ;;  %8559 = vrot.lane.b32.xlu1 %v8593_v48, %s8641_s29  ;;  %v3361_v41 = vpop.f32.mrb[119].mxu1  ;;  %v4690_v15 = vld [vmem:[%s12365_s5 + $0x8] sm:$0xff] }
 0x5d8   : > { %v4959_v41 = vld [vmem:[%s12366_s6 + $0x90] sm:$0xff] }
 0x5d9   : > { %3494 = vrot.lane.b32.xlu0 %v10529_v59, %s8641_s29 }
 0x5db   : > { %8564 = vrot.lane.b32.xlu1 %v10500_v54, %s8643_s16  ;;  %v4694_v54 = vld [vmem:[%s12365_s5 + $0x28] sm:$0xff] }
 0x5dd   : > { %8569 = vrot.lane.b32.xlu0 %v8568_v17, %s8643_s16  ;;  %v4697_v17 = vld [vmem:[%s12365_s5 + $0x40] sm:$0xff] }
 0x5df   : > { %8574 = vrot.lane.b32.xlu1 %v8573_v53, %s8643_s16  ;;  %v4952_v53 = vld [vmem:[%s12366_s6 + $0x58] sm:$0xff] }
 0x5e1   : > { %8579 = vrot.lane.b32.xlu0 %v8578_v25, %s8643_s16  ;;  %v4953_v25 = vld [vmem:[%s12366_s6 + $0x60] sm:$0xff] }
 0x5e3   : > { %8584 = vrot.lane.b32.xlu1 %v8583_v63, %s8643_s16 }
 0x5e5   : > { %8589 = vrot.lane.b32.xlu0 %v8588_v57, %s8643_s16  ;;  %v4706_v57 = vld [vmem:[%s12365_s5 + $0x88] sm:$0xff] }
 0x5e7   : > { %8594 = vrot.lane.b32.xlu1 %v8593_v48, %s8643_s16  ;;  %v4708_v48 = vld [vmem:[%s12365_s5 + $0x98] sm:$0xff] }
 0x5e9   : > { %4283 = vrot.lane.b32.xlu0 %v10529_v59, %s8643_s16 }
 0x5eb   : > { %4727 = vperm.xlu1 %8497, %v4689_v3   ;;  %v4960_v3 = vld [vmem:[%s12366_s6 + $0x98] sm:$0xff] }
 0x5ed   : > { %4732 = vperm.xlu0 %8496, %v4690_v15   ;;  %v4709_v15 = vld [vmem:[%s12365_s5 + $0xa0] sm:$0xff] }
 0x5ef   : > { %4979 = vperm.xlu1 %8497, %v4941_v11  }
 0x5f1   : > { %4984 = vperm.xlu0 %8496, %v4942_v26  }
 0x5f3   : > { %4737 = vperm.xlu1 %8497, %v4691_v29  }
 0x5f5   : > { %4742 = vperm.xlu0 %8496, %v4692_v9   ;;  %v4710_v9 = vld [vmem:[%s12365_s5 + $0xa8] sm:$0xff] }
 0x5f7   : > { %4989 = vperm.xlu1 %8497, %v4943_v61  }
 0x5f9   : > { %4994 = vperm.xlu0 %8496, %v4944_v16   ;;  %v4961_v16 = vld [vmem:[%s12366_s6 + $0xa0] sm:$0xff] }
 0x5fb   : > { %4747 = vperm.xlu1 %8497, %v4693_v31   ;;  %v4962_v31 = vld [vmem:[%s12366_s6 + $0xa8] sm:$0xff] }
 0x5fd   : > { %4752 = vperm.xlu0 %8496, %v4694_v54   ;;  %v4711_v54 = vld [vmem:[%s12365_s5 + $0xb0] sm:$0xff] }
 0x5ff   : > { %4999 = vperm.xlu1 %8497, %v4945_v35  }
 0x601   : > { %5004 = vperm.xlu0 %8496, %v4946_v4  }
 0x603   : > { %4757 = vperm.xlu1 %8497, %v4695_v40  }
 0x605   : > { %4762 = vperm.xlu0 %8496, %v4696_v36   ;;  %v4712_v36 = vld [vmem:[%s12365_s5 + $0xb8] sm:$0xff] }
 0x607   : > { %5009 = vperm.xlu1 %8497, %v4947_v52  }
 0x609   : > { %5014 = vperm.xlu0 %8496, %v4948_v33   ;;  %v4963_v33 = vld [vmem:[%s12366_s6 + $0xb0] sm:$0xff] }
 0x60b   : > { %4767 = vperm.xlu1 %8497, %v4697_v17   ;;  %v4964_v17 = vld [vmem:[%s12366_s6 + $0xb8] sm:$0xff] }
 0x60d   : > { %4772 = vperm.xlu0 %8496, %v4698_v34   ;;  %v4713_v34 = vld [vmem:[%s12365_s5 + $0xc0] sm:$0xff] }
 0x60f   : > { %5019 = vperm.xlu1 %8497, %v4949_v24  }
 0x611   : > { %5024 = vperm.xlu0 %8496, %v4950_v23  }
 0x613   : > { %4777 = vperm.xlu1 %8497, %v4699_v51  }
 0x615   : > { %4782 = vperm.xlu0 %8496, %v4700_v12   ;;  %v4714_v12 = vld [vmem:[%s12365_s5 + $0xc8] sm:$0xff] }
 0x617   : > { %5029 = vperm.xlu1 %8497, %v4951_v58  }
 0x619   : > { %v8530_v45 = vpop.permute.xlu1 %8529  ;;  %5034 = vperm.xlu0 %8496, %v4952_v53   ;;  %v4965_v53 = vld [vmem:[%s12366_s6 + $0xc0] sm:$0xff] }
 0x61a   : > { %v8532_v6 = vunpack.i.h.bf16 %v8530_v45  ;;  %v8531_v21 = vunpack.i.l.bf16 %v8530_v45 }
 0x61b   : > { %4787 = vperm.xlu1 %8497, %v4701_v55   ;;  %v4966_v55 = vld [vmem:[%s12366_s6 + $0xc8] sm:$0xff] }
 0x61c   : > { %v7993_v20 = vpack.c.bf16 %v8532_v6, %v8531_v21  ;;  %v4715_v6 = vld [vmem:[%s12365_s5 + $0xd0] sm:$0xff]  ;;  %v6944_v21 = vld [vmem:[%s12362_s2 + $0x128] sm:$0xff] }
 0x61d   : > { %4792 = vperm.xlu0 %8496, %v4702_v22   ;;  %v4716_v22 = vld [vmem:[%s12365_s5 + $0xd8] sm:$0xff] }
 0x61e   : > { %7994 = vmatprep.subr.bf16.mxu1 %v7993_v20 }
 0x61f   : > { %7996 = vmatpush3.bf16.msra.mxu1 %v7993_v20  ;;  %5039 = vperm.xlu1 %8497, %v4953_v25   ;;  %v6945_v20 = vld [vmem:[%s12362_s2 + $0x130] sm:$0xff] }
 0x620   : > { %v4967_v25 = vld [vmem:[%s12366_s6 + $0xd0] sm:$0xff] }
 0x621   : > { %v8535_v56 = vpop.permute.xlu0 %8534  ;;  %5044 = vperm.xlu0 %8496, %v4954_v28   ;;  %v6946_v28 = vld [vmem:[%s12362_s2 + $0x138] sm:$0xff] }
 0x622   : > { %v8537_v44 = vunpack.i.h.bf16 %v8535_v56  ;;  %v8536_v7 = vunpack.i.l.bf16 %v8535_v56  ;;  %v6947_v56 = vld [vmem:[%s12362_s2 + $0x140] sm:$0xff] }
 0x623   : > { %4797 = vperm.xlu1 %8497, %v4703_v18   ;;  %v4968_v18 = vld [vmem:[%s12366_s6 + $0xd8] sm:$0xff] }
 0x624   : > { %v7997_v63 = vpack.c.bf16 %v8537_v44, %v8536_v7  ;;  %v6948_v44 = vld [vmem:[%s12362_s2 + $0x148] sm:$0xff] }
 0x625   : > { %4802 = vperm.xlu0 %8496, %v4704_v62   ;;  %v4718_v7 = vld [vmem:[%s12365_s5 + $0xe8] sm:$0xff]  ;;  %v6949_v62 = vld [vmem:[%s12362_s2 + $0x150] sm:$0xff] }
 0x626   : > { %7998 = vmatprep.subr.bf16.mxu1 %v7997_v63 }
 0x627   : > { %8000 = vmatpush3.bf16.msra.mxu1 %v7997_v63  ;;  %5049 = vperm.xlu1 %8497, %v4955_v39   ;;  %v6950_v63 = vld [vmem:[%s12362_s2 + $0x158] sm:$0xff]  ;;  %v4970_v39 = vld [vmem:[%s12366_s6 + $0xe8] sm:$0xff] }
 0x629   : > { %v8540_v60 = vpop.permute.xlu1 %8539  ;;  %5054 = vperm.xlu0 %8496, %v4956_v50   ;;  %v6951_v50 = vld [vmem:[%s12362_s2 + $0x160] sm:$0xff] }
 0x62a   : > { %v8542_v2 = vunpack.i.h.bf16 %v8540_v60  ;;  %v8541_v19 = vunpack.i.l.bf16 %v8540_v60  ;;  %v4720_v60 = vld [vmem:[%s12365_s5 + $0xf8] sm:$0xff] }
 0x62b   : > { %4807 = vperm.xlu1 %8497, %v4705_v43   ;;  %v6952_v43 = vld [vmem:[%s12362_s2 + $0x168] sm:$0xff] }
 0x62c   : > { %v8001_v42 = vpack.c.bf16 %v8542_v2, %v8541_v19  ;;  %v6953_v2 = vld [vmem:[%s12362_s2 + $0x170] sm:$0xff]  ;;  %v6954_v19 = vld [vmem:[%s12362_s2 + $0x178] sm:$0xff] }
 0x62d   : > { %4812 = vperm.xlu0 %8496, %v4706_v57   ;;  %v4972_v57 = vld [vmem:[%s12366_s6 + $0xf8] sm:$0xff] }
 0x62e   : > { %8002 = vmatprep.subr.bf16.mxu1 %v8001_v42 }
 0x62f   : > { %8004 = vmatpush3.bf16.msra.mxu1 %v8001_v42  ;;  %5059 = vperm.xlu1 %8497, %v4957_v37   ;;  %v6955_v42 = vld [vmem:[%s12362_s2 + $0x180] sm:$0xff] }
 0x631   : > { %v8545_v8 = vpop.permute.xlu0 %8544  ;;  %5064 = vperm.xlu0 %8496, %v4958_v14   ;;  %v6956_v14 = vld [vmem:[%s12362_s2 + $0x188] sm:$0xff] }
 0x632   : > { %v8547_v5 = vunpack.i.h.bf16 %v8545_v8  ;;  %v8546_v46 = vunpack.i.l.bf16 %v8545_v8  ;;  %v6957_v8 = vld [vmem:[%s12362_s2 + $0x190] sm:$0xff] }
 0x633   : > { %4817 = vperm.xlu1 %8497, %v4707_v32   ;;  %v4722_v32 = vld [vmem:[%s12365_s5 + $0x108] sm:$0xff] }
 0x634   : > { %v8005_v0 = vpack.c.bf16 %v8547_v5, %v8546_v46 }
 0x635   : > { %4822 = vperm.xlu0 %8496, %v4708_v48   ;;  %v6958_v48 = vld [vmem:[%s12362_s2 + $0x198] sm:$0xff] }
 0x636   : > { %8006 = vmatprep.subr.bf16.mxu1 %v8005_v0 }
 0x637   : > { %8008 = vmatpush3.bf16.msra.mxu1 %v8005_v0  ;;  %5069 = vperm.xlu1 %8497, %v4959_v41   ;;  %v4973_v0 = vld [vmem:[%s12366_s6 + $0x100] sm:$0xff] }
 0x638   : > { %v6959_v41 = vld [vmem:[%s12362_s2 + $0x1a0] sm:$0xff] }
 0x639   : > { %v8550_v11 = vpop.permute.xlu1 %8549  ;;  %5074 = vperm.xlu0 %8496, %v4960_v3   ;;  %v6960_v3 = vld [vmem:[%s12362_s2 + $0x1a8] sm:$0xff] }
 0x63a   : > { %v8552_v26 = vunpack.i.h.bf16 %v8550_v11  ;;  %v8551_v29 = vunpack.i.l.bf16 %v8550_v11  ;;  %v6961_v11 = vld [vmem:[%s12362_s2 + $0x1b0] sm:$0xff] }
 0x63b   : > { %4827 = vperm.xlu1 %8497, %v4709_v15   ;;  %v4974_v15 = vld [vmem:[%s12366_s6 + $0x108] sm:$0xff] }
 0x63c   : > { %v8009_v61 = vpack.c.bf16 %v8552_v26, %v8551_v29  ;;  %v6963_v26 = vld [vmem:[%s12362_s2 + $0x1c0] sm:$0xff]  ;;  %v6964_v29 = vld [vmem:[%s12362_s2 + $0x1c8] sm:$0xff] }
 0x63d   : > { %4832 = vperm.xlu0 %8496, %v4710_v9   ;;  %v6965_v9 = vld [vmem:[%s12362_s2 + $0x1d0] sm:$0xff] }
 0x63e   : > { %8010 = vmatprep.subr.bf16.mxu1 %v8009_v61 }
 0x63f   : > { %8012 = vmatpush3.bf16.msra.mxu1 %v8009_v61  ;;  %5079 = vperm.xlu1 %8497, %v4961_v16   ;;  %v6966_v61 = vld [vmem:[%s12362_s2 + $0x1d8] sm:$0xff]  ;;  %v6967_v16 = vld [vmem:[%s12362_s2 + $0x1e0] sm:$0xff] }
 0x641   : > { %v8555_v35 = vpop.permute.xlu0 %8554  ;;  %5084 = vperm.xlu0 %8496, %v4962_v31   ;;  %v6968_v31 = vld [vmem:[%s12362_s2 + $0x1e8] sm:$0xff] }
 0x642   : > { %v8557_v4 = vunpack.i.h.bf16 %v8555_v35  ;;  %v8556_v40 = vunpack.i.l.bf16 %v8555_v35  ;;  %v6970_v35 = vld [vmem:[%s12362_s2 + $0x1f8] sm:$0xff] }
 0x643   : > { %4837 = vperm.xlu1 %8497, %v4711_v54   ;;  %v6969_v54 = vld [vmem:[%s12362_s2 + $0x1f0] sm:$0xff] }
 0x644   : > { %v8013_v52 = vpack.c.bf16 %v8557_v4, %v8556_v40  ;;  %v6971_v4 = vld [vmem:[%s12362_s2 + $0x200] sm:$0xff]  ;;  %v6972_v40 = vld [vmem:[%s12362_s2 + $0x208] sm:$0xff] }
 0x645   : > { %4842 = vperm.xlu0 %8496, %v4712_v36   ;;  %v6973_v36 = vld [vmem:[%s12362_s2 + $0x210] sm:$0xff] }
 0x646   : > { %8014 = vmatprep.subr.bf16.mxu1 %v8013_v52 }
 0x647   : > { %8016 = vmatpush3.bf16.msra.mxu1 %v8013_v52  ;;  %5089 = vperm.xlu1 %8497, %v4963_v33   ;;  %v6974_v52 = vld [vmem:[%s12362_s2 + $0x218] sm:$0xff]  ;;  %v6975_v33 = vld [vmem:[%s12362_s2 + $0x220] sm:$0xff] }
 0x649   : > { %v8560_v24 = vpop.permute.xlu1 %8559  ;;  %5094 = vperm.xlu0 %8496, %v4964_v17   ;;  %v6976_v17 = vld [vmem:[%s12362_s2 + $0x228] sm:$0xff] }
 0x64a   : > { %v8562_v23 = vunpack.i.h.bf16 %v8560_v24  ;;  %v8561_v51 = vunpack.i.l.bf16 %v8560_v24 }
 0x64b   : > { %4847 = vperm.xlu1 %8497, %v4713_v34   ;;  %v3495_v45 = vpop.permute.xlu0 %3494  ;;  %v6977_v34 = vld [vmem:[%s12362_s2 + $0x230] sm:$0xff] }
 0x64c   : > { %v8017_v58 = vpack.c.bf16 %v8562_v23, %v8561_v51  ;;  %v6978_v23 = vld [vmem:[%s12362_s2 + $0x238] sm:$0xff]  ;;  %v3378_v51 = vld [vmem:[%s12362_s2] sm:$0xff] }
 0x64d   : > { %4852 = vperm.xlu0 %8496, %v4714_v12   ;;  %v8565_v37 = vpop.permute.xlu1 %8564 }
 0x64e   : > { %8018 = vmatprep.subr.bf16.mxu1 %v8017_v58  ;;  %v8567_v5 = vunpack.i.h.bf16 %v8565_v37  ;;  %v8566_v46 = vunpack.i.l.bf16 %v8565_v37 }
 0x64f   : > { %5099 = vperm.xlu1 %8497, %v4965_v53   ;;  %8020 = vmatpush3.bf16.msra.mxu1 %v8017_v58  ;;  %v8570_v24 = vpop.permute.xlu0 %8569 }
 0x650   : > { %7468 = vmatprep.subr.mxu1 %v3495_v45  ;;  %v8572_v12 = vunpack.i.h.bf16 %v8570_v24  ;;  %v8571_v58 = vunpack.i.l.bf16 %v8570_v24  ;;  %v7052_v24 = vld [vmem:[%s12362_s2 + $0x248] sm:$0xff] }
 0x651   : > { %5104 = vperm.xlu0 %8496, %v4966_v55   ;;  %v8575_v53 = vpop.permute.xlu1 %8574  ;;  %v3379_v55 = vld [vmem:[%s12362_s2 + $0x8] sm:$0xff] }
 0x653   : > { %4857 = vperm.xlu1 %8497, %v4715_v6   ;;  %7469 = vmatpush3.msra.mxu1 %v3495_v45  ;;  %v3380_v45 = vld [vmem:[%s12362_s2 + $0x10] sm:$0xff]  ;;  %v8577_v6 = vunpack.i.h.bf16 %v8575_v53 }
 0x654   : > { %7471 = vmatmul.mubr.msk.f32.vlgmr.msra.gmra.mrb[120].mxu1 %vm3511_vm9, %v6944_v21  ;;  %8022 = vmatprep.subr.bf16.mxu1 %v10502_v27  ;;  %v8576_v21 = vunpack.i.l.bf16 %v8575_v53  ;;  %v7057_v53 = vld [vmem:[%s12362_s2 + $0x270] sm:$0xff] }
 0x655   : > { %4862 = vperm.xlu0 %8496, %v4716_v22   ;;  %8024 = vmatpush3.bf16.msra.mxu1 %v10502_v27  ;;  %v4717_v27 = vld [vmem:[%s12365_s5 + $0xe0] sm:$0xff]  ;;  %v8053_v22 = vpack.c.bf16 %v8572_v12, %v8571_v58  ;;  %v7056_v58 = vld [vmem:[%s12362_s2 + $0x268] sm:$0xff] }
 0x656   : > { %8026 = vmatprep.subr.bf16.mxu1 %v10506_v10  ;;  %7473 = vmatprep.mubr.msk.f32.mxu1 %vm3511_vm9, %v6945_v20  ;;  %v8580_v20 = vpop.permute.xlu0 %8579  ;;  %v7055_v12 = vld [vmem:[%s12362_s2 + $0x260] sm:$0xff] }
 0x657   : > { %5109 = vperm.xlu1 %8497, %v4967_v25   ;;  %v3381_v25 = vld [vmem:[%s12362_s2 + $0x18] sm:$0xff] }
 0x658   : > { %7474 = vmatmul.mubr.msk.f32.gmra.mrb[122].mxu1 %vm3511_vm9, %v6946_v28  ;;  %v3382_v28 = vld [vmem:[%s12362_s2 + $0x20] sm:$0xff] }
 0x659   : > { %5114 = vperm.xlu0 %8496, %v4968_v18   ;;  %8028 = vmatpush3.bf16.msra.mxu1 %v10506_v10  ;;  %v4969_v10 = vld [vmem:[%s12366_s6 + $0xe0] sm:$0xff]  ;;  %v8582_v18 = vunpack.i.h.bf16 %v8580_v20 }
 0x65a   : > { %8030 = vmatprep.subr.bf16.mxu1 %v10509_v30  ;;  %7476 = vmatprep.mubr.msk.f32.mxu1 %vm3511_vm9, %v6947_v56  ;;  %v8581_v56 = vunpack.i.l.bf16 %v8580_v20  ;;  %v7063_v20 = vld [vmem:[%s12362_s2 + $0x2a0] sm:$0xff] }
 0x65b   : > { %4867 = vperm.xlu1 %8497, %v4717_v27   ;;  %v8057_v27 = vpack.c.bf16 %v8577_v6, %v8576_v21  ;;  %v7060_v6 = vld [vmem:[%s12362_s2 + $0x288] sm:$0xff]  ;;  %v7061_v21 = vld [vmem:[%s12362_s2 + $0x290] sm:$0xff] }
 0x65c   : > { %7477 = vmatmul.mubr.msk.f32.gmra.mrb[124].mxu1 %vm3511_vm9, %v6948_v44  ;;  %v8585_v44 = vpop.permute.xlu1 %8584 }
 0x65d   : > { %4872 = vperm.xlu0 %8496, %v4718_v7   ;;  %8032 = vmatpush3.bf16.msra.mxu1 %v10509_v30  ;;  %v4719_v30 = vld [vmem:[%s12365_s5 + $0xf0] sm:$0xff]  ;;  %v3383_v7 = vld [vmem:[%s12362_s2 + $0x28] sm:$0xff] }
 0x65e   : > { %8034 = vmatprep.subr.bf16.mxu1 %v10512_v1  ;;  %7479 = vmatprep.mubr.msk.f32.mxu1 %vm3511_vm9, %v6949_v62  ;;  %v3384_v62 = vld [vmem:[%s12362_s2 + $0x30] sm:$0xff] }
 0x65f   : > { %5119 = vperm.xlu1 %8497, %v4969_v10   ;;  %v8587_v10 = vunpack.i.h.bf16 %v8585_v44 }
 0x660   : > { %7480 = vmatmul.mubr.msk.f32.gmra.mrb[126].mxu1 %vm3511_vm9, %v6950_v63  ;;  %v8586_v63 = vunpack.i.l.bf16 %v8585_v44  ;;  %v7069_v44 = vld [vmem:[%s12362_s2 + $0x2d0] sm:$0xff] }
 0x661   : > { %5124 = vperm.xlu0 %8496, %v4970_v39   ;;  %8036 = vmatpush3.bf16.msra.mxu1 %v10512_v1  ;;  %v4971_v1 = vld [vmem:[%s12366_s6 + $0xf0] sm:$0xff]  ;;  %v8061_v39 = vpack.c.bf16 %v8582_v18, %v8581_v56  ;;  %v7066_v18 = vld [vmem:[%s12362_s2 + $0x2b8] sm:$0xff]  ;;  %v7067_v56 = vld [vmem:[%s12362_s2 + $0x2c0] sm:$0xff] }
 0x662   : > { %8038 = vmatprep.subr.bf16.mxu1 %v10515_v38  ;;  %7482 = vmatprep.mubr.msk.f32.mxu1 %vm3511_vm9, %v6951_v50  ;;  %v8590_v50 = vpop.permute.xlu0 %8589 }
 0x663   : > { %4877 = vperm.xlu1 %8497, %v4719_v30   ;;  %v3385_v30 = vld [vmem:[%s12362_s2 + $0x38] sm:$0xff] }
 0x664   : > { %7483 = vmatmul.mubr.msk.f32.gmra.mrb[128].mxu1 %vm3511_vm9, %v6952_v43  ;;  %v3386_v43 = vld [vmem:[%s12362_s2 + $0x40] sm:$0xff] }
 0x665   : > { %4882 = vperm.xlu0 %8496, %v4720_v60   ;;  %8040 = vmatpush3.bf16.msra.mxu1 %v10515_v38  ;;  %v4721_v38 = vld [vmem:[%s12365_s5 + $0x100] sm:$0xff]  ;;  %v8592_v60 = vunpack.i.h.bf16 %v8590_v50 }
 0x666   : > { %8042 = vmatprep.subr.bf16.mxu1 %v10518_v49  ;;  %7485 = vmatprep.mubr.msk.f32.mxu1 %vm3511_vm9, %v6953_v2  ;;  %v8591_v2 = vunpack.i.l.bf16 %v8590_v50  ;;  %v7075_v50 = vld [vmem:[%s12362_s2 + $0x300] sm:$0xff] }
 0x667   : > { %5129 = vperm.xlu1 %8497, %v4971_v1   ;;  %v8065_v1 = vpack.c.bf16 %v8587_v10, %v8586_v63  ;;  %v7072_v10 = vld [vmem:[%s12362_s2 + $0x2e8] sm:$0xff]  ;;  %v7073_v63 = vld [vmem:[%s12362_s2 + $0x2f0] sm:$0xff] }
 0x668   : > { %7486 = vmatmul.mubr.msk.f32.gmra.mrb[130].mxu1 %vm3511_vm9, %v6954_v19  ;;  %v8595_v19 = vpop.permute.xlu1 %8594 }
 0x669   : > { %5134 = vperm.xlu0 %8496, %v4972_v57   ;;  %8044 = vmatpush3.bf16.msra.mxu1 %v10518_v49  ;;  %v4723_v49 = vld [vmem:[%s12365_s5 + $0x110] sm:$0xff]  ;;  %v3387_v57 = vld [vmem:[%s12362_s2 + $0x48] sm:$0xff]  ;;  %v8596_v37 = vunpack.i.l.bf16 %v8595_v19 }
 0x66a   : > { %8046 = vmatprep.subr.bf16.mxu1 %v10526_v13  ;;  %7488 = vmatprep.mubr.msk.f32.mxu1 %vm3511_vm9, %v6955_v42  ;;  %v3388_v42 = vld [vmem:[%s12362_s2 + $0x50] sm:$0xff] }
 0x66b   : > { %4887 = vperm.xlu1 %8497, %v4721_v38   ;;  %v8597_v38 = vunpack.i.h.bf16 %v8595_v19  ;;  %v7081_v19 = vld [vmem:[%s12362_s2 + $0x330] sm:$0xff] }
 0x66c   : > { %7489 = vmatmul.mubr.msk.f32.gmra.mrb[132].mxu1 %vm3511_vm9, %v6956_v14  ;;  %v8069_v14 = vpack.c.bf16 %v8592_v60, %v8591_v2  ;;  %v7078_v60 = vld [vmem:[%s12362_s2 + $0x318] sm:$0xff]  ;;  %v7079_v2 = vld [vmem:[%s12362_s2 + $0x320] sm:$0xff] }
 0x66d   : > { %4892 = vperm.xlu0 %8496, %v4722_v32   ;;  %8048 = vmatpush3.bf16.msra.mxu1 %v10526_v13  ;;  %v8049_v13 = vpack.c.bf16 %v8567_v5, %v8566_v46  ;;  %v3389_v32 = vld [vmem:[%s12362_s2 + $0x58] sm:$0xff]  ;;  %v8073_v5 = vpack.c.bf16 %v8597_v38, %v8596_v37  ;;  %v3391_v46 = vld [vmem:[%s12362_s2 + $0x68] sm:$0xff]  ;;  %v7085_v37 = vld [vmem:[%s12362_s2 + $0x350] sm:$0xff] }
 0x66e   : > { %7552 = vmatprep.subr.mxu1 %v10529_v59  ;;  %7491 = vmatprep.mubr.msk.f32.mxu1 %vm3511_vm9, %v6957_v8  ;;  %v3390_v8 = vld [vmem:[%s12362_s2 + $0x60] sm:$0xff]  ;;  %v7084_v38 = vld [vmem:[%s12362_s2 + $0x348] sm:$0xff] }
 0x66f   : > { %4897 = vperm.xlu1 %8497, %v4723_v49   ;;  %v3392_v49 = vld [vmem:[%s12362_s2 + $0x70] sm:$0xff] }
 0x670   : > { %7492 = vmatmul.mubr.msk.f32.gmra.mrb[134].mxu1 %vm3511_vm9, %v6958_v48  ;;  %v4284_v48 = vpop.permute.xlu0 %4283 }
 0x671   : > { %5139 = vperm.xlu0 %8496, %v4973_v0   ;;  %7553 = vmatpush3.msra.mxu1 %v10529_v59  ;;  %v6962_v59 = vld [vmem:[%s12362_s2 + $0x1b8] sm:$0xff] }
 0x672   : > { %8050 = vmatprep.subr.bf16.mxu1 %v8049_v13  ;;  %7494 = vmatprep.mubr.msk.f32.mxu1 %vm3511_vm9, %v6959_v41  ;;  %v3393_v0 = vld [vmem:[%s12362_s2 + $0x78] sm:$0xff]  ;;  %v3394_v41 = vld [vmem:[%s12362_s2 + $0x80] sm:$0xff] }
 0x674   : > { %7495 = vmatmul.mubr.msk.f32.gmra.mrb[136].mxu1 %vm3511_vm9, %v6960_v3  ;;  %v3396_v3 = vld [vmem:[%s12362_s2 + $0x90] sm:$0xff] }
 0x675   : > { %5144 = vperm.xlu0 %8496, %v4974_v15   ;;  %7497 = vmatprep.mubr.msk.f32.mxu1 %vm3511_vm9, %v6961_v11  ;;  %v3397_v15 = vld [vmem:[%s12362_s2 + $0x98] sm:$0xff]  ;;  %v3398_v11 = vld [vmem:[%s12362_s2 + $0xa0] sm:$0xff] }
 0x678   : > { %7498 = vmatmul.mubr.msk.f32.gmra.mrb[138].mxu1 %vm3511_vm9, %v6962_v59  ;;  %v3399_v59 = vld [vmem:[%s12362_s2 + $0xa8] sm:$0xff] }
 0x679   : > { %7500 = vmatprep.mubr.msk.f32.mxu1 %vm3511_vm9, %v6963_v26  ;;  %v3400_v26 = vld [vmem:[%s12362_s2 + $0xb0] sm:$0xff] }
 0x67c   : > { %7501 = vmatmul.mubr.msk.f32.gmra.mrb[140].mxu1 %vm3511_vm9, %v6964_v29  ;;  %v3401_v29 = vld [vmem:[%s12362_s2 + $0xb8] sm:$0xff] }
 0x67d   : > { %7503 = vmatprep.mubr.msk.f32.mxu1 %vm3511_vm9, %v6965_v9  ;;  %v3402_v9 = vld [vmem:[%s12362_s2 + $0xc0] sm:$0xff] }
 0x680   : > { %7504 = vmatmul.mubr.msk.f32.gmra.mrb[142].mxu1 %vm3511_vm9, %v6966_v61  ;;  %v3403_v61 = vld [vmem:[%s12362_s2 + $0xc8] sm:$0xff] }
 0x681   : > { %7506 = vmatprep.mubr.msk.f32.mxu1 %vm3511_vm9, %v6967_v16  ;;  %v3404_v16 = vld [vmem:[%s12362_s2 + $0xd0] sm:$0xff] }
 0x684   : > { %7507 = vmatmul.mubr.msk.f32.gmra.mrb[144].mxu1 %vm3511_vm9, %v6968_v31  ;;  %v3405_v31 = vld [vmem:[%s12362_s2 + $0xd8] sm:$0xff] }
 0x685   : > { %7509 = vmatprep.mubr.msk.f32.mxu1 %vm3511_vm9, %v6969_v54  ;;  %v3406_v54 = vld [vmem:[%s12362_s2 + $0xe0] sm:$0xff] }
 0x688   : > { %7510 = vmatmul.mubr.msk.f32.gmra.mrb[146].mxu1 %vm3511_vm9, %v6970_v35  ;;  %v3407_v35 = vld [vmem:[%s12362_s2 + $0xe8] sm:$0xff] }
 0x689   : > { %7512 = vmatprep.mubr.msk.f32.mxu1 %vm3511_vm9, %v6971_v4  ;;  %v3408_v4 = vld [vmem:[%s12362_s2 + $0xf0] sm:$0xff] }
 0x68c   : > { %7513 = vmatmul.mubr.msk.f32.gmra.mrb[148].mxu1 %vm3511_vm9, %v6972_v40  ;;  %v3409_v40 = vld [vmem:[%s12362_s2 + $0xf8] sm:$0xff] }
 0x68d   : > { %7515 = vmatprep.mubr.msk.f32.mxu1 %vm3511_vm9, %v6973_v36  ;;  %v3410_v36 = vld [vmem:[%s12362_s2 + $0x100] sm:$0xff] }
 0x690   : > { %7516 = vmatmul.mubr.msk.f32.gmra.mrb[150].mxu1 %vm3511_vm9, %v6974_v52  ;;  %v3411_v52 = vld [vmem:[%s12362_s2 + $0x108] sm:$0xff] }
 0x691   : > { %7518 = vmatprep.mubr.msk.f32.mxu1 %vm3511_vm9, %v6975_v33  ;;  %v3412_v33 = vld [vmem:[%s12362_s2 + $0x110] sm:$0xff] }
 0x694   : > { %7519 = vmatmul.mubr.msk.f32.gmra.mrb[152].mxu1 %vm3511_vm9, %v6976_v17  ;;  %v3413_v17 = vld [vmem:[%s12362_s2 + $0x118] sm:$0xff] }
 0x695   : > { %7521 = vmatprep.mubr.msk.f32.mxu1 %vm3511_vm9, %v6977_v34  ;;  %v7051_v34 = vld [vmem:[%s12362_s2 + $0x240] sm:$0xff] }
 0x698   : > { %7522 = vmatmul.mubr.msk.f32.gmra.mrb[154].mxu1 %vm3511_vm9, %v6978_v23  ;;  %v7053_v23 = vld [vmem:[%s12362_s2 + $0x250] sm:$0xff] }
 0x699   : > { %7554 = vmatprep.mubr.msk.f32.mxu1 %vm3511_vm9, %v3378_v51  ;;  %v7054_v51 = vld [vmem:[%s12362_s2 + $0x258] sm:$0xff] }
 0x69c   : > { %7555 = vmatmul.mubr.msk.f32.vlgmr.msra.gmra.mrb[120].mxu1 %vm3511_vm9, %v3379_v55  ;;  %v7058_v55 = vld [vmem:[%s12362_s2 + $0x278] sm:$0xff] }
 0x69d   : > { %8052 = vmatpush3.bf16.msra.mxu1 %v8049_v13  ;;  %7557 = vmatprep.mubr.msk.f32.mxu1 %vm3511_vm9, %v3380_v45  ;;  %v3395_v13 = vld [vmem:[%s12362_s2 + $0x88] sm:$0xff]  ;;  %v7059_v45 = vld [vmem:[%s12362_s2 + $0x280] sm:$0xff] }
 0x69e   : > { %8054 = vmatprep.subr.bf16.mxu1 %v8053_v22 }
 0x6a0   : > { %7558 = vmatmul.mubr.msk.f32.gmra.mrb[122].mxu1 %vm3511_vm9, %v3381_v25  ;;  %v7064_v25 = vld [vmem:[%s12362_s2 + $0x2a8] sm:$0xff] }
 0x6a1   : > { %8056 = vmatpush3.bf16.msra.mxu1 %v8053_v22  ;;  %7560 = vmatprep.mubr.msk.f32.mxu1 %vm3511_vm9, %v3382_v28  ;;  %v7062_v22 = vld [vmem:[%s12362_s2 + $0x298] sm:$0xff]  ;;  %v7065_v28 = vld [vmem:[%s12362_s2 + $0x2b0] sm:$0xff] }
 0x6a2   : > { %8058 = vmatprep.subr.bf16.mxu1 %v8057_v27 }
 0x6a4   : > { %7561 = vmatmul.mubr.msk.f32.gmra.mrb[124].mxu1 %vm3511_vm9, %v3383_v7  ;;  %v7070_v7 = vld [vmem:[%s12362_s2 + $0x2d8] sm:$0xff] }
 0x6a5   : > { %8060 = vmatpush3.bf16.msra.mxu1 %v8057_v27  ;;  %7563 = vmatprep.mubr.msk.f32.mxu1 %vm3511_vm9, %v3384_v62  ;;  %v7068_v27 = vld [vmem:[%s12362_s2 + $0x2c8] sm:$0xff]  ;;  %v7071_v62 = vld [vmem:[%s12362_s2 + $0x2e0] sm:$0xff] }
 0x6a6   : > { %8062 = vmatprep.subr.bf16.mxu1 %v8061_v39 }
 0x6a8   : > { %7564 = vmatmul.mubr.msk.f32.gmra.mrb[126].mxu1 %vm3511_vm9, %v3385_v30  ;;  %v7076_v30 = vld [vmem:[%s12362_s2 + $0x308] sm:$0xff] }
 0x6a9   : > { %8064 = vmatpush3.bf16.msra.mxu1 %v8061_v39  ;;  %7566 = vmatprep.mubr.msk.f32.mxu1 %vm3511_vm9, %v3386_v43  ;;  %v7074_v39 = vld [vmem:[%s12362_s2 + $0x2f8] sm:$0xff]  ;;  %v7077_v43 = vld [vmem:[%s12362_s2 + $0x310] sm:$0xff] }
 0x6aa   : > { %8066 = vmatprep.subr.bf16.mxu1 %v8065_v1 }
 0x6ac   : > { %7567 = vmatmul.mubr.msk.f32.gmra.mrb[128].mxu1 %vm3511_vm9, %v3387_v57  ;;  %v7082_v57 = vld [vmem:[%s12362_s2 + $0x338] sm:$0xff] }
 0x6ad   : > { %8068 = vmatpush3.bf16.msra.mxu1 %v8065_v1  ;;  %7569 = vmatprep.mubr.msk.f32.mxu1 %vm3511_vm9, %v3388_v42  ;;  %v7080_v1 = vld [vmem:[%s12362_s2 + $0x328] sm:$0xff]  ;;  %v7083_v42 = vld [vmem:[%s12362_s2 + $0x340] sm:$0xff] }
 0x6ae   : > { %8070 = vmatprep.subr.bf16.mxu1 %v8069_v14 }
 0x6b0   : > { %7570 = vmatmul.mubr.msk.f32.gmra.mrb[130].mxu1 %vm3511_vm9, %v3389_v32  ;;  %v11195_v32 = vpop.permute.xlu0 %4732 }
 0x6b1   : > { %8072 = vmatpush3.bf16.msra.mxu1 %v8069_v14  ;;  %7572 = vmatprep.mubr.msk.f32.mxu1 %vm3511_vm9, %v3390_v8  ;;  %v7086_v14 = vld [vmem:[%s12362_s2 + $0x358] sm:$0xff] }
 0x6b2   : > { %8074 = vmatprep.subr.bf16.mxu1 %v8073_v5 }
 0x6b4   : > { %7573 = vmatmul.mubr.msk.f32.gmra.mrb[132].mxu1 %vm3511_vm9, %v3391_v46  ;;  %v11197_v8 = vpop.permute.xlu0 %4984 }
 0x6b5   : > { %8076 = vmatpush3.bf16.msra.mxu1 %v8073_v5  ;;  %7575 = vmatprep.mubr.msk.f32.mxu1 %vm3511_vm9, %v3392_v49  ;;  %v11199_v5 = vpop.permute.xlu1 %4727 }
 0x6b6   : > { %7636 = vmatprep.subr.mxu1 %v4284_v48 }
 0x6b8   : > { %7576 = vmatmul.mubr.msk.f32.gmra.mrb[134].mxu1 %vm3511_vm9, %v3393_v0  ;;  %v11201_v46 = vpop.permute.xlu0 %4742 }
 0x6b9   : > { %7637 = vmatpush3.msra.mxu1 %v4284_v48  ;;  %7578 = vmatprep.mubr.msk.f32.mxu1 %vm3511_vm9, %v3394_v41  ;;  %v11203_v49 = vpop.permute.xlu1 %4979 }
 0x6bc   : > { %7579 = vmatmul.mubr.msk.f32.gmra.mrb[136].mxu1 %vm3511_vm9, %v3395_v13  ;;  %v11205_v48 = vpop.permute.xlu0 %4994 }
 0x6bd   : > { %7581 = vmatprep.mubr.msk.f32.mxu1 %vm3511_vm9, %v3396_v3  ;;  %v11207_v0 = vpop.permute.xlu1 %4737 }
 0x6c0   : > { %7582 = vmatmul.mubr.msk.f32.gmra.mrb[138].mxu1 %vm3511_vm9, %v3397_v15  ;;  %v11209_v41 = vpop.permute.xlu0 %4752 }
 0x6c1   : > { %7584 = vmatprep.mubr.msk.f32.mxu1 %vm3511_vm9, %v3398_v11  ;;  %v11211_v13 = vpop.permute.xlu1 %4989 }
 0x6c4   : > { %7585 = vmatmul.mubr.msk.f32.gmra.mrb[140].mxu1 %vm3511_vm9, %v3399_v59  ;;  %v11213_v3 = vpop.permute.xlu0 %5004 }
 0x6c5   : > { %7587 = vmatprep.mubr.msk.f32.mxu1 %vm3511_vm9, %v3400_v26  ;;  %v11215_v15 = vpop.permute.xlu1 %4747 }
 0x6c8   : > { %7588 = vmatmul.mubr.msk.f32.gmra.mrb[142].mxu1 %vm3511_vm9, %v3401_v29  ;;  %v11217_v11 = vpop.permute.xlu0 %4762 }
 0x6c9   : > { %7590 = vmatprep.mubr.msk.f32.mxu1 %vm3511_vm9, %v3402_v9  ;;  %v11219_v59 = vpop.permute.xlu1 %4999 }
 0x6cc   : > { %7591 = vmatmul.mubr.msk.f32.gmra.mrb[144].mxu1 %vm3511_vm9, %v3403_v61  ;;  %v11221_v26 = vpop.permute.xlu0 %5014 }
 0x6cd   : > { %7593 = vmatprep.mubr.msk.f32.mxu1 %vm3511_vm9, %v3404_v16  ;;  %v11223_v29 = vpop.permute.xlu1 %4757 }
 0x6d0   : > { %7594 = vmatmul.mubr.msk.f32.gmra.mrb[146].mxu1 %vm3511_vm9, %v3405_v31  ;;  %v11225_v9 = vpop.permute.xlu0 %4772 }
 0x6d1   : > { %7596 = vmatprep.mubr.msk.f32.mxu1 %vm3511_vm9, %v3406_v54  ;;  %v11227_v61 = vpop.permute.xlu1 %5009 }
 0x6d4   : > { %7597 = vmatmul.mubr.msk.f32.gmra.mrb[148].mxu1 %vm3511_vm9, %v3407_v35  ;;  %v11229_v16 = vpop.permute.xlu0 %5024 }
 0x6d5   : > { %7599 = vmatprep.mubr.msk.f32.mxu1 %vm3511_vm9, %v3408_v4  ;;  %v11231_v31 = vpop.permute.xlu1 %4767 }
 0x6d8   : > { %7600 = vmatmul.mubr.msk.f32.gmra.mrb[150].mxu1 %vm3511_vm9, %v3409_v40  ;;  %v11233_v54 = vpop.permute.xlu0 %4782 }
 0x6d9   : > { %7602 = vmatprep.mubr.msk.f32.mxu1 %vm3511_vm9, %v3410_v36  ;;  %v11235_v35 = vpop.permute.xlu1 %5019 }
 0x6dc   : > { %7603 = vmatmul.mubr.msk.f32.gmra.mrb[152].mxu1 %vm3511_vm9, %v3411_v52  ;;  %v11237_v4 = vpop.permute.xlu0 %5034 }
 0x6dd   : > { %7605 = vmatprep.mubr.msk.f32.mxu1 %vm3511_vm9, %v3412_v33  ;;  %v11239_v40 = vpop.permute.xlu1 %4777 }
 0x6e0   : > { %7606 = vmatmul.mubr.msk.f32.gmra.mrb[154].mxu1 %vm3511_vm9, %v3413_v17  ;;  %v11241_v36 = vpop.permute.xlu0 %4792 }
 0x6e1   : > { %7638 = vmatprep.mubr.msk.f32.mxu1 %vm3511_vm9, %v7051_v34  ;;  %v11243_v52 = vpop.permute.xlu1 %5029 }
 0x6e4   : > { %7639 = vmatmul.mubr.msk.f32.vlgmr.msra.gmra.mrb[120].mxu1 %vm3511_vm9, %v7052_v24  ;;  %v11245_v33 = vpop.permute.xlu0 %5044  ;;  %v5409_v24 = vld [vmem:[%s12370_s10] sm:$0xff] }
 0x6e5   : > { %7641 = vmatprep.mubr.msk.f32.mxu1 %vm3511_vm9, %v7053_v23  ;;  %v11247_v17 = vpop.permute.xlu1 %4787  ;;  %v5410_v23 = vld [vmem:[%s12370_s10 + $0x8] sm:$0xff] }
 0x6e8   : > { %7642 = vmatmul.mubr.msk.f32.gmra.mrb[122].mxu1 %vm3511_vm9, %v7054_v51  ;;  %v11249_v34 = vpop.permute.xlu0 %4802 }
 0x6e9   : > { %7644 = vmatprep.mubr.msk.f32.mxu1 %vm3511_vm9, %v7055_v12  ;;  %v11257_v51 = vpop.permute.xlu1 %5039  ;;  %v8077_v12 = vpack.c.bf16 %v5410_v23, %v5409_v24 }
 0x6eb   : > { %8078 = vmatprep.subr.bf16.mxu0 %v8077_v12  ;;  %8205 = vmatprep.subr.bf16.mxu1 %v8077_v12 }
 0x6ec   : > { %7645 = vmatmul.mubr.msk.f32.gmra.mrb[124].mxu1 %vm3511_vm9, %v7056_v58  ;;  %8080 = vmatpush3.bf16.msra.mxu0 %v8077_v12  ;;  %v5411_v58 = vld [vmem:[%s12370_s10 + $0x10] sm:$0xff] }
 0x6ed   : > { %7647 = vmatprep.mubr.msk.f32.mxu1 %vm3511_vm9, %v7057_v53  ;;  %v5412_v53 = vld [vmem:[%s12370_s10 + $0x18] sm:$0xff]  ;;  %8210 = vmatpush3.bf16.msra.mxu1 %v8077_v12 }
 0x6f0   : > { %7648 = vmatmul.mubr.msk.f32.gmra.mrb[126].mxu1 %vm3511_vm9, %v7058_v55  ;;  %v5413_v55 = vld [vmem:[%s12370_s10 + $0x20] sm:$0xff] }
 0x6f1   : > { %7650 = vmatprep.mubr.msk.f32.mxu1 %vm3511_vm9, %v7059_v45  ;;  %v8081_v45 = vpack.c.bf16 %v5412_v53, %v5411_v58 }
 0x6f3   : > { %8082 = vmatprep.subr.bf16.mxu0 %v8081_v45  ;;  %8206 = vmatprep.subr.bf16.mxu1 %v8081_v45 }
 0x6f4   : > { %7651 = vmatmul.mubr.msk.f32.gmra.mrb[128].mxu1 %vm3511_vm9, %v7060_v6  ;;  %v5414_v6 = vld [vmem:[%s12370_s10 + $0x28] sm:$0xff]  ;;  %8084 = vmatpush3.bf16.msra.mxu0 %v8081_v45 }
 0x6f5   : > { %7653 = vmatprep.mubr.msk.f32.mxu1 %vm3511_vm9, %v7061_v21  ;;  %v11271_v21 = vpop.permute.xlu0 %5054  ;;  %8211 = vmatpush3.bf16.msra.mxu1 %v8081_v45 }
 0x6f8   : > { %7654 = vmatmul.mubr.msk.f32.gmra.mrb[130].mxu1 %vm3511_vm9, %v7062_v22  ;;  %v8085_v22 = vpack.c.bf16 %v5414_v6, %v5413_v55 }
 0x6f9   : > { %7656 = vmatprep.mubr.msk.f32.mxu1 %vm3511_vm9, %v7063_v20  ;;  %v5415_v20 = vld [vmem:[%s12370_s10 + $0x30] sm:$0xff] }
 0x6fa   : > { %8086 = vmatprep.subr.bf16.mxu0 %v8085_v22  ;;  %8207 = vmatprep.subr.bf16.mxu1 %v8085_v22 }
 0x6fb   : > { %8088 = vmatpush3.bf16.msra.mxu0 %v8085_v22  ;;  %8212 = vmatpush3.bf16.msra.mxu1 %v8085_v22 }
 0x6fc   : > { %7657 = vmatmul.mubr.msk.f32.gmra.mrb[132].mxu1 %vm3511_vm9, %v7064_v25  ;;  %v5416_v25 = vld [vmem:[%s12370_s10 + $0x38] sm:$0xff] }
 0x6fd   : > { %7659 = vmatprep.mubr.msk.f32.mxu1 %vm3511_vm9, %v7065_v28  ;;  %v11279_v28 = vpop.permute.xlu1 %4797 }
 0x700   : > { %7660 = vmatmul.mubr.msk.f32.gmra.mrb[134].mxu1 %vm3511_vm9, %v7066_v18  ;;  %v8089_v18 = vpack.c.bf16 %v5416_v25, %v5415_v20 }
 0x701   : > { %7662 = vmatprep.mubr.msk.f32.mxu1 %vm3511_vm9, %v7067_v56  ;;  %v11281_v56 = vpop.permute.xlu0 %4812 }
 0x702   : > { %8090 = vmatprep.subr.bf16.mxu0 %v8089_v18  ;;  %8208 = vmatprep.subr.bf16.mxu1 %v8089_v18 }
 0x703   : > { %8092 = vmatpush3.bf16.msra.mxu0 %v8089_v18  ;;  %8213 = vmatpush3.bf16.msra.mxu1 %v8089_v18 }
 0x704   : > { %7663 = vmatmul.mubr.msk.f32.gmra.mrb[136].mxu1 %vm3511_vm9, %v7068_v27  ;;  %v11283_v27 = vpop.permute.xlu1 %5049 }
 0x705   : > { %7665 = vmatprep.mubr.msk.f32.mxu1 %vm3511_vm9, %v7069_v44  ;;  %v11285_v44 = vpop.permute.xlu0 %5064 }
 0x708   : > { %7666 = vmatmul.mubr.msk.f32.gmra.mrb[138].mxu1 %vm3511_vm9, %v7070_v7  ;;  %v11287_v7 = vpop.permute.xlu1 %4807 }
 0x709   : > { %7668 = vmatprep.mubr.msk.f32.mxu1 %vm3511_vm9, %v7071_v62  ;;  %v11289_v62 = vpop.permute.xlu0 %4822 }
 0x70c   : > { %7669 = vmatmul.mubr.msk.f32.gmra.mrb[140].mxu1 %vm3511_vm9, %v7072_v10  ;;  %v11291_v10 = vpop.permute.xlu1 %5059 }
 0x70d   : > { %7671 = vmatprep.mubr.msk.f32.mxu1 %vm3511_vm9, %v7073_v63  ;;  %v11293_v63 = vpop.permute.xlu0 %5074 }
 0x710   : > { %7672 = vmatmul.mubr.msk.f32.gmra.mrb[142].mxu1 %vm3511_vm9, %v7074_v39  ;;  %v11295_v39 = vpop.permute.xlu1 %4817 }
 0x711   : > { %7674 = vmatprep.mubr.msk.f32.mxu1 %vm3511_vm9, %v7075_v50  ;;  %v11297_v50 = vpop.permute.xlu0 %4832 }
 0x714   : > { %7675 = vmatmul.mubr.msk.f32.gmra.mrb[144].mxu1 %vm3511_vm9, %v7076_v30  ;;  %v11299_v30 = vpop.permute.xlu1 %5069 }
 0x715   : > { %7677 = vmatprep.mubr.msk.f32.mxu1 %vm3511_vm9, %v7077_v43  ;;  %v11301_v43 = vpop.permute.xlu0 %5084 }
 0x718   : > { %7678 = vmatmul.mubr.msk.f32.gmra.mrb[146].mxu1 %vm3511_vm9, %v7078_v60  ;;  %v11303_v60 = vpop.permute.xlu1 %4827 }
 0x719   : > { %7680 = vmatprep.mubr.msk.f32.mxu1 %vm3511_vm9, %v7079_v2  ;;  %v5417_v2 = vld [vmem:[%s12370_s10 + $0x40] sm:$0x7f] }
 0x71a   : > { %7708 = vmatprep.subr.msk.mxu0 %vm5527_vm10, %v5417_v2  ;;  %8209 = vmatprep.subr.msk.mxu1 %vm5527_vm10, %v5417_v2 }
 0x71b   : > { %7709 = vmatpush3.msk.msra.mxu0 %vm5527_vm10, %v5417_v2  ;;  %8214 = vmatpush3.msk.msra.mxu1 %vm5527_vm10, %v5417_v2 }
 0x71c   : > { %7681 = vmatmul.mubr.msk.f32.gmra.mrb[148].mxu1 %vm3511_vm9, %v7080_v1  ;;  %v11308_v1 = vpop.permute.xlu0 %4842  ;;  %8093 = vmatprep.subr.bf16.mxu0 %v12540_v47 }
 0x71d   : > { %7683 = vmatprep.mubr.msk.f32.mxu1 %vm3511_vm9, %v7081_v19  ;;  %v11310_v19 = vpop.permute.xlu1 %5079 }
 0x720   : > { %7684 = vmatmul.mubr.msk.f32.gmra.mrb[150].mxu1 %vm3511_vm9, %v7082_v57 }
 0x721   : > { %7686 = vmatprep.mubr.msk.f32.mxu1 %vm3511_vm9, %v7083_v42  ;;  %v11317_v24 = vpop.permute.xlu1 %4837 }
 0x724   : > { %7687 = vmatmul.mubr.msk.f32.gmra.mrb[152].mxu1 %vm3511_vm9, %v7084_v38 }
 0x725   : > { %7689 = vmatprep.mubr.msk.f32.mxu1 %vm3511_vm9, %v7085_v37  ;;  %v11314_v37 = vpop.permute.xlu0 %5094  ;;  %v11343_v22 = vpop.permute.xlu1 %5089 }
 0x728   : > { %7690 = vmatmul.mubr.msk.f32.gmra.mrb[154].mxu1 %vm3511_vm9, %v7086_v14 }
 0x7b7   : > { %v7640_v57 = vpop.f32.mrb[120].mxu1 }
 0x7b8   : > { %v4906_v42 = vmul.f32 %v7640_v57, %v11195_v32  ;;  %v4474_v38 = vpop.f32.mrb[121].mxu1 }
 0x7b9   : > { %v4905_v14 = vmul.f32 %v11199_v5, %v4474_v38 }
 0x7ba   : > { %v11320_v23 = vadd.f32 %v11197_v8, %v4906_v42  ;;  %v11335_v8 = vpop.permute.xlu0 %4852 }
 0x7bb   : > { %v11323_v12 = vadd.f32 %v11203_v49, %v4905_v14  ;;  %v7643_v58 = vpop.f32.mrb[122].mxu1 }
 0x7bc   : > { %v5194_v53 = vmax.f32 %v11320_v23, 0.0  ;;  %v4908_v55 = vmul.f32 %v7643_v58, %v11201_v46  ;;  %v4484_v45 = vpop.f32.mrb[123].mxu1  ;;  %v11367_v58 = vpop.permute.xlu1 %4847 }
 0x7bd   : > { %v5193_v32 = vmax.f32 %v11323_v12, 0.0  ;;  %v4907_v6 = vmul.f32 %v11207_v0, %v4484_v45 }
 0x7be   : > { %v11330_v5 = vadd.f32 %v11205_v48, %v4908_v55  ;;  %5267 = vrot.lane.b32.xlu0 %v5194_v53, %s8641_s29  ;;  %v11363_v38 = vpop.permute.xlu0 %5104 }
 0x7bf   : > { %v11338_v49 = vadd.f32 %v11211_v13, %v4907_v6  ;;  %5265 = vrot.lane.b32.xlu1 %v5193_v32, %s8641_s29  ;;  %v7646_v46 = vpop.f32.mrb[124].mxu1 }
 0x7c0   : > { %v5196_v0 = vmax.f32 %v11330_v5, 0.0  ;;  %v4910_v48 = vmul.f32 %v7646_v46, %v11209_v41  ;;  %v4494_v20 = vpop.f32.mrb[125].mxu1 }
 0x7c1   : > { %v5195_v25 = vmax.f32 %v11338_v49, 0.0  ;;  %v4909_v18 = vmul.f32 %v11215_v15, %v4494_v20 }
 0x7c2   : > { %v11350_v2 = vadd.f32 %v11213_v3, %v4910_v48  ;;  %5271 = vrot.lane.b32.xlu0 %v5196_v0, %s8641_s29 }
 0x7c3   : > { %v11356_v13 = vadd.f32 %v11219_v59, %v4909_v18  ;;  %5269 = vrot.lane.b32.xlu1 %v5195_v25, %s8641_s29  ;;  %v7649_v41 = vpop.f32.mrb[126].mxu1  ;;  %v11399_v18 = vpop.permute.xlu1 %5099 }
 0x7c4   : > { %v5198_v57 = vmax.f32 %v11350_v2, 0.0  ;;  %v4912_v42 = vmul.f32 %v7649_v41, %v11217_v11  ;;  %v4504_v15 = vpop.f32.mrb[127].mxu1 }
 0x7c5   : > { %v5197_v3 = vmax.f32 %v11356_v13, 0.0  ;;  %v4911_v14 = vmul.f32 %v11223_v29, %v4504_v15 }
 0x7c6   : > { %v11370_v59 = vadd.f32 %v11221_v26, %v4912_v42  ;;  %5275 = vrot.lane.b32.xlu0 %v5198_v57, %s8641_s29 }
 0x7c7   : > { %v11376_v55 = vadd.f32 %v11227_v61, %v4911_v14  ;;  %5273 = vrot.lane.b32.xlu1 %v5197_v3, %s8641_s29  ;;  %v7652_v11 = vpop.f32.mrb[128].mxu1  ;;  %v11391_v61 = vpop.permute.xlu0 %4862 }
 0x7c8   : > { %v5200_v45 = vmax.f32 %v11370_v59, 0.0  ;;  %v4914_v29 = vmul.f32 %v7652_v11, %v11225_v9  ;;  %v4514_v6 = vpop.f32.mrb[129].mxu1 }
 0x7c9   : > { %v5199_v26 = vmax.f32 %v11376_v55, 0.0  ;;  %v4913_v46 = vmul.f32 %v11231_v31, %v4514_v6 }
 0x7ca   : > { %v11386_v48 = vadd.f32 %v11229_v16, %v4914_v29  ;;  %5279 = vrot.lane.b32.xlu0 %v5200_v45, %s8641_s29 }
 0x7cb   : > { %v11394_v20 = vadd.f32 %v11235_v35, %v4913_v46  ;;  %5277 = vrot.lane.b32.xlu1 %v5199_v26, %s8641_s29  ;;  %v7655_v9 = vpop.f32.mrb[130].mxu1  ;;  %v11419_v6 = vpop.permute.xlu0 %5114 }
 0x7cc   : > { %v5202_v31 = vmax.f32 %v11386_v48, 0.0  ;;  %v4916_v16 = vmul.f32 %v7655_v9, %v11233_v54  ;;  %v4524_v41 = vpop.f32.mrb[131].mxu1  ;;  %v11423_v9 = vpop.permute.xlu1 %4857 }
 0x7cd   : > { %v5201_v42 = vmax.f32 %v11394_v20, 0.0  ;;  %v4915_v15 = vmul.f32 %v11239_v40, %v4524_v41 }
 0x7ce   : > { %v11406_v14 = vadd.f32 %v11237_v4, %v4916_v16  ;;  %5283 = vrot.lane.b32.xlu0 %v5202_v31, %s8641_s29 }
 0x7cf   : > { %v11412_v35 = vadd.f32 %v11243_v52, %v4915_v15  ;;  %5281 = vrot.lane.b32.xlu1 %v5201_v42, %s8641_s29  ;;  %v7658_v54 = vpop.f32.mrb[132].mxu1 }
 0x7d0   : > { %v5204_v11 = vmax.f32 %v11406_v14, 0.0  ;;  %v4918_v29 = vmul.f32 %v7658_v54, %v11241_v36  ;;  %v4534_v40 = vpop.f32.mrb[133].mxu1 }
 0x7d1   : > { %v5203_v4 = vmax.f32 %v11412_v35, 0.0  ;;  %v4917_v46 = vmul.f32 %v11247_v17, %v4534_v40 }
 0x7d2   : > { %v11426_v52 = vadd.f32 %v11245_v33, %v4918_v29  ;;  %5287 = vrot.lane.b32.xlu0 %v5204_v11, %s8641_s29 }
 0x7d3   : > { %v11432_v16 = vadd.f32 %v11257_v51, %v4917_v46  ;;  %5285 = vrot.lane.b32.xlu1 %v5203_v4, %s8641_s29  ;;  %v7661_v36 = vpop.f32.mrb[134].mxu1  ;;  %v11447_v51 = vpop.permute.xlu0 %4872 }
 0x7d4   : > { %v12442_v41 = vmax.f32 %v11426_v52, 0.0  ;;  %v4920_v17 = vmul.f32 %v7661_v36, %v11249_v34  ;;  %v4544_v15 = vpop.f32.mrb[135].mxu1  ;;  %v11455_v46 = vpop.permute.xlu1 %5109 }
 0x7d5   : > { %v12443_v33 = vmax.f32 %v11432_v16, 0.0  ;;  %v4919_v54 = vmul.f32 %v11279_v28, %v4544_v15  ;;  %v12541_v48 = vmax.f32 %v11432_v16, 0.0 }
 0x7d6   : > { %v11442_v29 = vadd.f32 %v11271_v21, %v4920_v17  ;;  %5291 = vrot.lane.b32.xlu0 %v12442_v41, %s8641_s29 }
 0x7d7   : > { %v11450_v40 = vadd.f32 %v11283_v27, %v4919_v54  ;;  %5289 = vrot.lane.b32.xlu1 %v12443_v33, %s8641_s29  ;;  %v7664_v34 = vpop.f32.mrb[136].mxu1 }
 0x7d8   : > { %v12444_v28 = vmax.f32 %v11442_v29, 0.0  ;;  %v4922_v21 = vmul.f32 %v7664_v34, %v11281_v56  ;;  %v4554_v36 = vpop.f32.mrb[137].mxu1  ;;  %v4868_v33 = vpop.permute.xlu1 %4867 }
 0x7d9   : > { %v12457_v17 = vmax.f32 %v11450_v40, 0.0  ;;  %v4921_v15 = vmul.f32 %v11287_v7, %v4554_v36  ;;  %v5125_v36 = vpop.permute.xlu0 %5124  ;;  %v12543_v14 = vmax.f32 %v11450_v40, 0.0 }
 0x7da   : > { %v11462_v41 = vadd.f32 %v11285_v44, %v4922_v21  ;;  %5295 = vrot.lane.b32.xlu0 %v12444_v28, %s8641_s29 }
 0x7db   : > { %v11468_v27 = vadd.f32 %v11291_v10, %v4921_v15  ;;  %5293 = vrot.lane.b32.xlu1 %v12457_v17, %s8641_s29  ;;  %v7667_v56 = vpop.f32.mrb[138].mxu1 }
 0x7dc   : > { %v12445_v54 = vmax.f32 %v11462_v41, 0.0  ;;  %v4924_v34 = vmul.f32 %v7667_v56, %v11289_v62  ;;  %v4564_v7 = vpop.f32.mrb[139].mxu1 }
 0x7dd   : > { %v12456_v44 = vmax.f32 %v11468_v27, 0.0  ;;  %v4923_v21 = vmul.f32 %v11295_v39, %v4564_v7 }
 0x7de   : > { %v11478_v28 = vadd.f32 %v11293_v63, %v4924_v34  ;;  %5299 = vrot.lane.b32.xlu0 %v12445_v54, %s8641_s29 }
 0x7df   : > { %v11484_v10 = vadd.f32 %v11299_v30, %v4923_v21  ;;  %5297 = vrot.lane.b32.xlu1 %v12456_v44, %s8641_s29  ;;  %v7670_v62 = vpop.f32.mrb[140].mxu1  ;;  %v4883_v30 = vpop.permute.xlu0 %4882 }
 0x7e0   : > { %v12446_v15 = vmax.f32 %v11478_v28, 0.0  ;;  %v4926_v39 = vmul.f32 %v7670_v62, %v11297_v50  ;;  %v4574_v56 = vpop.f32.mrb[141].mxu1  ;;  %v5120_v62 = vpop.permute.xlu1 %5119 }
 0x7e1   : > { %v12447_v63 = vmax.f32 %v11484_v10, 0.0  ;;  %v4925_v34 = vmul.f32 %v11303_v60, %v4574_v56 }
 0x7e2   : > { %v11494_v7 = vadd.f32 %v11301_v43, %v4926_v39  ;;  %5303 = vrot.lane.b32.xlu0 %v12446_v15, %s8641_s29 }
 0x7e3   : > { %v11500_v21 = vadd.f32 %v11310_v19, %v4925_v34  ;;  %5301 = vrot.lane.b32.xlu1 %v12447_v63, %s8641_s29  ;;  %v7673_v50 = vpop.f32.mrb[142].mxu1 }
 0x7e4   : > { %v12448_v54 = vmax.f32 %v11494_v7, 0.0  ;;  %v4928_v60 = vmul.f32 %v7673_v50, %v11308_v1  ;;  %v4584_v43 = vpop.f32.mrb[143].mxu1  ;;  %v4878_v63 = vpop.permute.xlu1 %4877 }
 0x7e5   : > { %v12455_v39 = vmax.f32 %v11500_v21, 0.0  ;;  %v4927_v56 = vmul.f32 %v11317_v24, %v4584_v43  ;;  %v5135_v43 = vpop.permute.xlu0 %5134 }
 0x7e6   : > { %v11510_v15 = vadd.f32 %v11314_v37, %v4928_v60  ;;  %5307 = vrot.lane.b32.xlu0 %v12448_v54, %s8641_s29 }
 0x7e7   : > { %v11516_v19 = vadd.f32 %v11343_v22, %v4927_v56  ;;  %5305 = vrot.lane.b32.xlu1 %v12455_v39, %s8641_s29  ;;  %v7676_v1 = vpop.f32.mrb[144].mxu1 }
 0x7e8   : > { %v12449_v34 = vmax.f32 %v11510_v15, 0.0  ;;  %v4930_v50 = vmul.f32 %v7676_v1, %v11335_v8  ;;  %v4594_v24 = vpop.f32.mrb[145].mxu1 }
 0x7e9   : > { %v12450_v37 = vmax.f32 %v11516_v19, 0.0  ;;  %v4929_v60 = vmul.f32 %v11367_v58, %v4594_v24 }
 0x7ea   : > { %v11526_v54 = vadd.f32 %v11363_v38, %v4930_v50  ;;  %5311 = vrot.lane.b32.xlu0 %v12449_v34, %s8641_s29 }
 0x7eb   : > { %v11532_v22 = vadd.f32 %v11399_v18, %v4929_v60  ;;  %5309 = vrot.lane.b32.xlu1 %v12450_v37, %s8641_s29  ;;  %v7679_v8 = vpop.f32.mrb[146].mxu1  ;;  %v4893_v18 = vpop.permute.xlu0 %4892 }
 0x7ec   : > { %v12451_v56 = vmax.f32 %v11526_v54, 0.0  ;;  %v4932_v58 = vmul.f32 %v7679_v8, %v11391_v61  ;;  %v4604_v1 = vpop.f32.mrb[147].mxu1  ;;  %v5130_v8 = vpop.permute.xlu1 %5129 }
 0x7ed   : > { %v12454_v38 = vmax.f32 %v11532_v22, 0.0  ;;  %v4931_v50 = vmul.f32 %v11423_v9, %v4604_v1 }
 0x7ee   : > { %v11542_v24 = vadd.f32 %v11419_v6, %v4932_v58  ;;  %5315 = vrot.lane.b32.xlu0 %v12451_v56, %s8641_s29 }
 0x7ef   : > { %v11548_v60 = vadd.f32 %v11455_v46, %v4931_v50  ;;  %5313 = vrot.lane.b32.xlu1 %v12454_v38, %s8641_s29  ;;  %v7682_v61 = vpop.f32.mrb[148].mxu1  ;;  %v4724_v50 = vld [vmem:[%s12365_s5 + $0x118] sm:$0xff]  ;;  %v5140_v56 = vpop.permute.xlu0 %5139 }
 0x7f0   : > { %v12452_v34 = vmax.f32 %v11542_v24, 0.0  ;;  %v4934_v9 = vmul.f32 %v7682_v61, %v11447_v51  ;;  %v4614_v6 = vpop.f32.mrb[149].mxu1 }
 0x7f1   : > { %v12453_v58 = vmax.f32 %v11548_v60, 0.0  ;;  %v4933_v1 = vmul.f32 %v4868_v33, %v4614_v6 }
 0x7f2   : > { %v11556_v37 = vadd.f32 %v5125_v36, %v4934_v9  ;;  %5319 = vrot.lane.b32.xlu0 %v12452_v34, %s8641_s29  ;;  %v4888_v9 = vpop.permute.xlu1 %4887  ;;  %v4975_v34 = vld [vmem:[%s12366_s6 + $0x110] sm:$0xff] }
 0x7f3   : > { %5317 = vrot.lane.b32.xlu1 %v12453_v58, %s8641_s29  ;;  %v7685_v46 = vpop.f32.mrb[150].mxu1  ;;  %v11568_v33 = vadd.f32 %v5120_v62, %v4933_v1  ;;  %v4976_v1 = vld [vmem:[%s12366_s6 + $0x118] sm:$0xff] }
 0x7f4   : > { %v12458_v51 = vmax.f32 %v11556_v37, 0.0  ;;  %v4624_v61 = vpop.f32.mrb[151].mxu1  ;;  %v4936_v44 = vmul.f32 %v7685_v46, %v4883_v30 }
 0x7f5   : > { %v4935_v36 = vmul.f32 %v4878_v63, %v4624_v61  ;;  %v5221_v39 = vmax.f32 %v11568_v33, 0.0  ;;  %v5145_v63 = vpop.permute.xlu0 %5144 }
 0x7f6   : > { %4902 = vperm.xlu0 %8496, %v4724_v50   ;;  %v4898_v50 = vpop.permute.xlu1 %4897 }
 0x7f7   : > { %5323 = vrot.lane.b32.xlu1 %v12458_v51, %s8641_s29  ;;  %v7688_v6 = vpop.f32.mrb[152].mxu1  ;;  %v11577_v17 = vadd.f32 %v5130_v8, %v4935_v36 }
 0x7f8   : > { %v4938_v58 = vmul.f32 %v7688_v6, %v4893_v18  ;;  %v4634_v38 = vpop.f32.mrb[153].mxu1  ;;  %v11589_v6 = vadd.f32 %v5135_v43, %v4936_v44 }
 0x7f9   : > { %v5223_v30 = vmax.f32 %v11577_v17, 0.0 }
 0x7fa   : > { %5149 = vperm.xlu0 %8496, %v4975_v34   ;;  %v11587_v18 = vadd.f32 %v5145_v63, %v4938_v58  ;;  %v4937_v34 = vmul.f32 %v4888_v9, %v4634_v38  ;;  %v5224_v36 = vmax.f32 %v11589_v6, 0.0 }
 0x7fb   : > { %5321 = vrot.lane.b32.xlu1 %v5221_v39, %s8641_s29  ;;  %v11582_v62 = vpop.f32.mrb[154].mxu1 }
 0x7fc   : > { %v4644_v61 = vpop.f32.mrb[155].mxu1  ;;  %v5226_v46 = vmax.f32 %v11587_v18, 0.0  ;;  %v11599_v51 = vadd.f32 %v5140_v56, %v4937_v34 }
 0x7fd   : > { %v11592_v8 = vmul.f32 %v4898_v50, %v4644_v61 }
 0x7fe   : > { %5154 = vperm.xlu0 %8496, %v4976_v1   ;;  %v5225_v44 = vmax.f32 %v11599_v51, 0.0  ;;  %v5777_v51 = vld [vmem:[%s12371_s11 + $0x8] sm:$0xff] }
 0x7ff   : > { %5325 = vrot.lane.b32.xlu1 %v5223_v30, %s8641_s29 }
 0x802   : > { %5331 = vrot.lane.b32.xlu0 %v5226_v46, %s8641_s29 }
 0x803   : > { %5327 = vrot.lane.b32.xlu1 %v5224_v36, %s8641_s29 }
 0x807   : > { %5329 = vrot.lane.b32.xlu1 %v5225_v44, %s8641_s29 }
 0x830   : > { %v5268_v43 = vpop.permute.xlu0 %5267 }
 0x831   : > { %v5266_v38 = vpop.permute.xlu1 %5265  ;;  %v5374_v58 = vmax.f32 %v5194_v53, %v5268_v43 }
 0x832   : > { %v5373_v56 = vmax.f32 %v5193_v32, %v5266_v38 }
 0x834   : > { %7710 = vmatprep.mubr.msk.f32.mxu0 %vm5418_vm11, %v5373_v56  ;;  %v5272_v9 = vpop.permute.xlu0 %5271 }
 0x835   : > { %7711 = vmatmul.mubr.msk.f32.vlgmr.msra.gmra.mrb[60].mxu0 %vm5418_vm11, %v5374_v58  ;;  %v5270_v63 = vpop.permute.xlu1 %5269  ;;  %v5376_v50 = vmax.f32 %v5196_v0, %v5272_v9  ;;  %v12546_v9 = vmax.f32 %v11462_v41, 0.0  ;;  %v12549_v41 = vmax.f32 %v11500_v21, 0.0 }
 0x836   : > { %v5375_v1 = vmax.f32 %v5195_v25, %v5270_v63 }
 0x838   : > { %7713 = vmatprep.mubr.msk.f32.mxu0 %vm5418_vm11, %v5375_v1  ;;  %v5276_v61 = vpop.permute.xlu0 %5275 }
 0x839   : > { %7714 = vmatmul.mubr.msk.f32.gmra.mrb[62].mxu0 %vm5418_vm11, %v5376_v50  ;;  %v5274_v12 = vpop.permute.xlu1 %5273  ;;  %v5378_v53 = vmax.f32 %v5198_v57, %v5276_v61  ;;  %v12548_v61 = vmax.f32 %v11478_v28, 0.0  ;;  %v12551_v28 = vmax.f32 %v11516_v19, 0.0 }
 0x83a   : > { %v5377_v23 = vmax.f32 %v5197_v3, %v5274_v12 }
 0x83c   : > { %7716 = vmatprep.mubr.msk.f32.mxu0 %vm5418_vm11, %v5377_v23  ;;  %v5280_v32 = vpop.permute.xlu0 %5279 }
 0x83d   : > { %7717 = vmatmul.mubr.msk.f32.gmra.mrb[64].mxu0 %vm5418_vm11, %v5378_v53  ;;  %v5278_v49 = vpop.permute.xlu1 %5277  ;;  %v5380_v0 = vmax.f32 %v5200_v45, %v5280_v32  ;;  %v12550_v32 = vmax.f32 %v11494_v7, 0.0  ;;  %v12553_v7 = vmax.f32 %v11532_v22, 0.0 }
 0x83e   : > { %v5379_v5 = vmax.f32 %v5199_v26, %v5278_v49 }
 0x840   : > { %7719 = vmatprep.mubr.msk.f32.mxu0 %vm5418_vm11, %v5379_v5  ;;  %v5284_v25 = vpop.permute.xlu0 %5283 }
 0x841   : > { %7720 = vmatmul.mubr.msk.f32.gmra.mrb[66].mxu0 %vm5418_vm11, %v5380_v0  ;;  %v5282_v13 = vpop.permute.xlu1 %5281  ;;  %v5382_v57 = vmax.f32 %v5202_v31, %v5284_v25  ;;  %v12552_v25 = vmax.f32 %v11510_v15, 0.0  ;;  %v12555_v15 = vmax.f32 %v11548_v60, 0.0 }
 0x842   : > { %v5381_v2 = vmax.f32 %v5201_v42, %v5282_v13  ;;  %v12542_v42 = vmax.f32 %v11426_v52, 0.0  ;;  %v12545_v52 = vmax.f32 %v11468_v27, 0.0 }
 0x844   : > { %7722 = vmatprep.mubr.msk.f32.mxu0 %vm5418_vm11, %v5381_v2  ;;  %v5288_v3 = vpop.permute.xlu0 %5287 }
 0x845   : > { %7723 = vmatmul.mubr.msk.f32.gmra.mrb[68].mxu0 %vm5418_vm11, %v5382_v57  ;;  %v5286_v55 = vpop.permute.xlu1 %5285  ;;  %v5384_v45 = vmax.f32 %v5204_v11, %v5288_v3  ;;  %v12554_v3 = vmax.f32 %v11526_v54, 0.0 }
 0x846   : > { %v5383_v59 = vmax.f32 %v5203_v4, %v5286_v55  ;;  %v12544_v4 = vmax.f32 %v11442_v29, 0.0  ;;  %v12547_v29 = vmax.f32 %v11484_v10, 0.0 }
 0x848   : > { %7725 = vmatprep.mubr.msk.f32.mxu0 %vm5418_vm11, %v5383_v59  ;;  %v5292_v26 = vpop.permute.xlu0 %5291 }
 0x849   : > { %7726 = vmatmul.mubr.msk.f32.gmra.mrb[70].mxu0 %vm5418_vm11, %v5384_v45  ;;  %v5290_v20 = vpop.permute.xlu1 %5289  ;;  %v5386_v34 = vmax.f32 %v12542_v42, %v5292_v26  ;;  %v12556_v26 = vmax.f32 %v11542_v24, 0.0 }
 0x84a   : > { %v5385_v31 = vmax.f32 %v12541_v48, %v5290_v20 }
 0x84c   : > { %7728 = vmatprep.mubr.msk.f32.mxu0 %vm5418_vm11, %v5385_v31  ;;  %v5296_v43 = vpop.permute.xlu0 %5295  ;;  %v12557_v31 = vmax.f32 %v11556_v37, 0.0 }
 0x84d   : > { %7729 = vmatmul.mubr.msk.f32.gmra.mrb[72].mxu0 %vm5418_vm11, %v5386_v34  ;;  %v5294_v35 = vpop.permute.xlu1 %5293  ;;  %v5388_v38 = vmax.f32 %v12544_v4, %v5296_v43 }
 0x84e   : > { %v5387_v11 = vmax.f32 %v12543_v14, %v5294_v35 }
 0x850   : > { %7731 = vmatprep.mubr.msk.f32.mxu0 %vm5418_vm11, %v5387_v11  ;;  %v5300_v56 = vpop.permute.xlu0 %5299 }
 0x851   : > { %7732 = vmatmul.mubr.msk.f32.gmra.mrb[74].mxu0 %vm5418_vm11, %v5388_v38  ;;  %v5298_v16 = vpop.permute.xlu1 %5297  ;;  %v5390_v63 = vmax.f32 %v12546_v9, %v5300_v56 }
 0x852   : > { %v5389_v58 = vmax.f32 %v12545_v52, %v5298_v16 }
 0x854   : > { %7734 = vmatprep.mubr.msk.f32.mxu0 %vm5418_vm11, %v5389_v58  ;;  %v5304_v1 = vpop.permute.xlu0 %5303 }
 0x855   : > { %7735 = vmatmul.mubr.msk.f32.gmra.mrb[76].mxu0 %vm5418_vm11, %v5390_v63  ;;  %v5302_v40 = vpop.permute.xlu1 %5301  ;;  %v5392_v12 = vmax.f32 %v12548_v61, %v5304_v1 }
 0x856   : > { %v5391_v50 = vmax.f32 %v12547_v29, %v5302_v40 }
 0x858   : > { %7737 = vmatprep.mubr.msk.f32.mxu0 %vm5418_vm11, %v5391_v50  ;;  %v5308_v23 = vpop.permute.xlu0 %5307 }
 0x859   : > { %7738 = vmatmul.mubr.msk.f32.gmra.mrb[78].mxu0 %vm5418_vm11, %v5392_v12  ;;  %v5306_v27 = vpop.permute.xlu1 %5305  ;;  %v5394_v49 = vmax.f32 %v12550_v32, %v5308_v23 }
 0x85a   : > { %v5393_v53 = vmax.f32 %v12549_v41, %v5306_v27 }
 0x85c   : > { %7740 = vmatprep.mubr.msk.f32.mxu0 %vm5418_vm11, %v5393_v53  ;;  %v5312_v5 = vpop.permute.xlu0 %5311 }
 0x85d   : > { %7741 = vmatmul.mubr.msk.f32.gmra.mrb[80].mxu0 %vm5418_vm11, %v5394_v49  ;;  %v5310_v10 = vpop.permute.xlu1 %5309  ;;  %v5396_v13 = vmax.f32 %v12552_v25, %v5312_v5 }
 0x85e   : > { %v5395_v0 = vmax.f32 %v12551_v28, %v5310_v10 }
 0x860   : > { %7743 = vmatprep.mubr.msk.f32.mxu0 %vm5418_vm11, %v5395_v0  ;;  %v5316_v2 = vpop.permute.xlu0 %5315 }
 0x861   : > { %7744 = vmatmul.mubr.msk.f32.gmra.mrb[82].mxu0 %vm5418_vm11, %v5396_v13  ;;  %v5314_v21 = vpop.permute.xlu1 %5313  ;;  %v5398_v55 = vmax.f32 %v12554_v3, %v5316_v2 }
 0x862   : > { %v5397_v57 = vmax.f32 %v12553_v7, %v5314_v21 }
 0x864   : > { %7746 = vmatprep.mubr.msk.f32.mxu0 %vm5418_vm11, %v5397_v57  ;;  %v5320_v59 = vpop.permute.xlu0 %5319 }
 0x865   : > { %7747 = vmatmul.mubr.msk.f32.gmra.mrb[84].mxu0 %vm5418_vm11, %v5398_v55  ;;  %v5318_v19 = vpop.permute.xlu1 %5317  ;;  %v5400_v20 = vmax.f32 %v12556_v26, %v5320_v59 }
 0x866   : > { %v5399_v45 = vmax.f32 %v12555_v15, %v5318_v19 }
 0x868   : > { %7749 = vmatprep.mubr.msk.f32.mxu0 %vm5418_vm11, %v5399_v45 }
 0x869   : > { %7750 = vmatmul.mubr.msk.f32.gmra.mrb[86].mxu0 %vm5418_vm11, %v5400_v20  ;;  %v5324_v22 = vpop.permute.xlu1 %5323 }
 0x86a   : > { %v5402_v42 = vmax.f32 %v12557_v31, %v5324_v22 }
 0x86d   : > { %v5322_v48 = vpop.permute.xlu1 %5321 }
 0x86e   : > { %v5401_v54 = vmax.f32 %v5221_v39, %v5322_v48 }
 0x870   : > { %7752 = vmatprep.mubr.msk.f32.mxu0 %vm5418_vm11, %v5401_v54 }
 0x871   : > { %7753 = vmatmul.mubr.msk.f32.gmra.mrb[88].mxu0 %vm5418_vm11, %v5402_v42  ;;  %v5326_v60 = vpop.permute.xlu1 %5325 }
 0x872   : > { %v5403_v24 = vmax.f32 %v5223_v30, %v5326_v60 }
 0x874   : > { %7755 = vmatprep.mubr.msk.f32.mxu0 %vm5418_vm11, %v5403_v24 }
 0x875   : > { %v4903_v34 = vpop.permute.xlu0 %4902  ;;  %v5328_v43 = vpop.permute.xlu1 %5327 }
 0x876   : > { %v5404_v35 = vmax.f32 %v5224_v36, %v5328_v43  ;;  %v4940_v11 = vmul.f32 %v11582_v62, %v4903_v34 }
 0x878   : > { %7756 = vmatmul.mubr.msk.f32.gmra.mrb[90].mxu0 %vm5418_vm11, %v5404_v35 }
 0x879   : > { %v5150_v39 = vpop.permute.xlu0 %5149  ;;  %v5330_v37 = vpop.permute.xlu1 %5329  ;;  %5949 = vmatprep.mubr.f32.mxu0 %v5777_v51  ;;  %v5785_v51 = vld [vmem:[%s12371_s11 + $0x48] sm:$0xff] }
 0x87a   : > { %v5191_v33 = vadd.f32 %v5150_v39, %v11592_v8  ;;  %v5405_v14 = vmax.f32 %v5225_v44, %v5330_v37  ;;  %v5776_v37 = vld [vmem:[%s12371_s11] sm:$0xff] }
 0x87c   : > { %v5227_v17 = vmax.f32 %v5191_v33, 0.0  ;;  %7758 = vmatprep.mubr.msk.f32.mxu1 %vm5418_vm11, %v5405_v14  ;;  %v5780_v33 = vld [vmem:[%s12371_s11 + $0x20] sm:$0xff]  ;;  %v5778_v14 = vld [vmem:[%s12371_s11 + $0x10] sm:$0xff] }
 0x87d   : > { %v5155_v30 = vpop.permute.xlu0 %5154 }
 0x87e   : > { %v5192_v4 = vadd.f32 %v5155_v30, %v4940_v11  ;;  %5333 = vrot.lane.b32.xlu1 %v5227_v17, %s8641_s29  ;;  %v5779_v11 = vld [vmem:[%s12371_s11 + $0x18] sm:$0xff] }
 0x880   : > { %v5228_v6 = vmax.f32 %v5192_v4, 0.0  ;;  %v5782_v4 = vld [vmem:[%s12371_s11 + $0x30] sm:$0xff] }
 0x881   : > { %v5332_v36 = vpop.permute.xlu0 %5331 }
 0x882   : > { %v5406_v38 = vmax.f32 %v5226_v46, %v5332_v36  ;;  %5335 = vrot.lane.b32.xlu0 %v5228_v6, %s8641_s29 }
 0x884   : > { %7759 = vmatmul.mubr.msk.f32.vlgmr.msra.gmra.mrb[156].mxu1 %vm5418_vm11, %v5406_v38  ;;  %v5786_v38 = vld [vmem:[%s12371_s11 + $0x50] sm:$0xff] }
 0x8f0   : > { %v5334_v62 = vpop.permute.xlu1 %5333 }
 0x8f1   : > { %v5407_v8 = vmax.f32 %v5227_v17, %v5334_v62  ;;  %v5783_v17 = vld [vmem:[%s12371_s11 + $0x38] sm:$0xff]  ;;  %v5789_v62 = vld [vmem:[%s12371_s11 + $0x68] sm:$0xff] }
 0x8f3   : > { %7761 = vmatprep.mubr.msk.f32.mxu1 %vm5418_vm11, %v5407_v8  ;;  %v5788_v8 = vld [vmem:[%s12371_s11 + $0x60] sm:$0xff] }
 0x8f4   : > { %v5336_v44 = vpop.permute.xlu0 %5335 }
 0x8f5   : > { %v5408_v56 = vmax.f32 %v5228_v6, %v5336_v44  ;;  %v5792_v44 = vld [vmem:[%s12371_s11 + $0x80] sm:$0xff] }
 0x8f7   : > { %7762 = vmatmul.mubr.msk.f32.gmra.mrb[158].mxu1 %vm5418_vm11, %v5408_v56  ;;  %v5791_v56 = vld [vmem:[%s12371_s11 + $0x78] sm:$0xff] }
 0x8f8   : > { %7772 = vmatprep.mubr.msk.f32.mxu1 %vm5830_vm12, %v5778_v14 }
 0x908   : > { %v7712_v16 = vpop.f32.mrb[60].mxu0 }
 0x909   : > { %v5597_v18 = vpop.f32.mrb[61].mxu0 }
 0x90a   : > { %v11722_v46 = vpack.c.bf16 %v7712_v16, %v5597_v18  ;;  %v5795_v16 = vld [vmem:[%s12371_s11 + $0x98] sm:$0xff]  ;;  %v5794_v18 = vld [vmem:[%s12371_s11 + $0x90] sm:$0xff] }
 0x90c   : > { %v7715_v52 = vpop.f32.mrb[62].mxu0  ;;  %8095 = vmatpush1.bf16.msra.mxu0 %v11722_v46 }
 0x90d   : > { %v5607_v58 = vpop.f32.mrb[63].mxu0  ;;  %8096 = vmatprep.subr.bf16.mxu0 %v12540_v47 }
 0x90e   : > { %v11726_v9 = vpack.c.bf16 %v7715_v52, %v5607_v58  ;;  %v5797_v52 = vld [vmem:[%s12371_s11 + $0xa8] sm:$0xff] }
 0x90f   : > { %v5801_v58 = vld [vmem:[%s12371_s11 + $0xc8] sm:$0xff] }
 0x910   : > { %v7718_v63 = vpop.f32.mrb[64].mxu0  ;;  %8098 = vmatpush1.bf16.msra.mxu0 %v11726_v9 }
 0x911   : > { %v5617_v1 = vpop.f32.mrb[65].mxu0  ;;  %8099 = vmatprep.subr.bf16.mxu0 %v12540_v47 }
 0x912   : > { %v11730_v40 = vpack.c.bf16 %v7718_v63, %v5617_v1  ;;  %v5804_v63 = vld [vmem:[%s12371_s11 + $0xe0] sm:$0xff]  ;;  %v5803_v1 = vld [vmem:[%s12371_s11 + $0xd8] sm:$0xff] }
 0x914   : > { %v7721_v29 = vpop.f32.mrb[66].mxu0  ;;  %8101 = vmatpush1.bf16.msra.mxu0 %v11730_v40 }
 0x915   : > { %v5627_v50 = vpop.f32.mrb[67].mxu0  ;;  %8102 = vmatprep.subr.bf16.mxu0 %v12540_v47 }
 0x916   : > { %v11734_v61 = vpack.c.bf16 %v7721_v29, %v5627_v50  ;;  %v5806_v29 = vld [vmem:[%s12371_s11 + $0xf0] sm:$0xff] }
 0x917   : > { %v5810_v50 = vld [vmem:[%s12371_s11 + $0x110] sm:$0xff] }
 0x918   : > { %v7724_v12 = vpop.f32.mrb[68].mxu0  ;;  %8104 = vmatpush1.bf16.msra.mxu0 %v11734_v61 }
 0x919   : > { %v5637_v23 = vpop.f32.mrb[69].mxu0  ;;  %8105 = vmatprep.subr.bf16.mxu0 %v12540_v47 }
 0x91a   : > { %v11738_v27 = vpack.c.bf16 %v7724_v12, %v5637_v23  ;;  %v5813_v12 = vld [vmem:[%s12371_s11 + $0x128] sm:$0xff]  ;;  %v5812_v23 = vld [vmem:[%s12371_s11 + $0x120] sm:$0xff] }
 0x91c   : > { %v7727_v41 = vpop.f32.mrb[70].mxu0  ;;  %8107 = vmatpush1.bf16.msra.mxu0 %v11738_v27 }
 0x91d   : > { %v5647_v53 = vpop.f32.mrb[71].mxu0  ;;  %8108 = vmatprep.subr.bf16.mxu0 %v12540_v47 }
 0x91e   : > { %v11742_v32 = vpack.c.bf16 %v7727_v41, %v5647_v53  ;;  %v5815_v41 = vld [vmem:[%s12371_s11 + $0x138] sm:$0xff] }
 0x91f   : > { %v5819_v53 = vld [vmem:[%s12371_s11 + $0x158] sm:$0xff] }
 0x920   : > { %v7730_v49 = vpop.f32.mrb[72].mxu0  ;;  %8110 = vmatpush1.bf16.msra.mxu0 %v11742_v32 }
 0x921   : > { %v5657_v5 = vpop.f32.mrb[73].mxu0  ;;  %8111 = vmatprep.subr.bf16.mxu0 %v12540_v47 }
 0x922   : > { %v11746_v10 = vpack.c.bf16 %v7730_v49, %v5657_v5  ;;  %v5822_v49 = vld [vmem:[%s12371_s11 + $0x170] sm:$0xff]  ;;  %v5821_v5 = vld [vmem:[%s12371_s11 + $0x168] sm:$0xff] }
 0x924   : > { %v7733_v28 = vpop.f32.mrb[74].mxu0  ;;  %8113 = vmatpush1.bf16.msra.mxu0 %v11746_v10 }
 0x925   : > { %v5667_v0 = vpop.f32.mrb[75].mxu0  ;;  %8114 = vmatprep.subr.bf16.mxu0 %v12540_v47 }
 0x926   : > { %v11750_v25 = vpack.c.bf16 %v7733_v28, %v5667_v0  ;;  %v5824_v28 = vld [vmem:[%s12371_s11 + $0x180] sm:$0xff] }
 0x927   : > { %v5828_v0 = vld [vmem:[%s12371_s11 + $0x1a0] sm:$0xff] }
 0x928   : > { %v7736_v13 = vpop.f32.mrb[76].mxu0  ;;  %8116 = vmatpush1.bf16.msra.mxu0 %v11750_v25 }
 0x929   : > { %v5677_v2 = vpop.f32.mrb[77].mxu0  ;;  %8117 = vmatprep.subr.bf16.mxu0 %v12540_v47 }
 0x92a   : > { %v11754_v21 = vpack.c.bf16 %v7736_v13, %v5677_v2  ;;  %v6195_v13 = vld [vmem:[%s12372_s12] sm:$0xff] }
 0x92b   : > { %v6199_v2 = vld [vmem:[%s12372_s12 + $0x20] sm:$0xff] }
 0x92c   : > { %v7739_v7 = vpop.f32.mrb[78].mxu0  ;;  %8119 = vmatpush1.bf16.msra.mxu0 %v11754_v21 }
 0x92d   : > { %v5687_v57 = vpop.f32.mrb[79].mxu0  ;;  %8120 = vmatprep.subr.bf16.mxu0 %v12540_v47 }
 0x92e   : > { %v11758_v3 = vpack.c.bf16 %v7739_v7, %v5687_v57  ;;  %v6202_v7 = vld [vmem:[%s12372_s12 + $0x38] sm:$0xff]  ;;  %v6201_v57 = vld [vmem:[%s12372_s12 + $0x30] sm:$0xff] }
 0x930   : > { %v7742_v55 = vpop.f32.mrb[80].mxu0  ;;  %8122 = vmatpush1.bf16.msra.mxu0 %v11758_v3 }
 0x931   : > { %v5697_v59 = vpop.f32.mrb[81].mxu0  ;;  %8123 = vmatprep.subr.bf16.mxu0 %v12540_v47 }
 0x932   : > { %v11762_v19 = vpack.c.bf16 %v7742_v55, %v5697_v59  ;;  %v6204_v55 = vld [vmem:[%s12372_s12 + $0x48] sm:$0xff] }
 0x933   : > { %v6208_v59 = vld [vmem:[%s12372_s12 + $0x68] sm:$0xff] }
 0x934   : > { %v7745_v15 = vpop.f32.mrb[82].mxu0  ;;  %8125 = vmatpush1.bf16.msra.mxu0 %v11762_v19 }
 0x935   : > { %v5707_v45 = vpop.f32.mrb[83].mxu0  ;;  %8126 = vmatprep.subr.bf16.mxu0 %v12540_v47 }
 0x936   : > { %v11766_v26 = vpack.c.bf16 %v7745_v15, %v5707_v45  ;;  %v6211_v15 = vld [vmem:[%s12372_s12 + $0x80] sm:$0xff]  ;;  %v6210_v45 = vld [vmem:[%s12372_s12 + $0x78] sm:$0xff] }
 0x938   : > { %v7748_v20 = vpop.f32.mrb[84].mxu0  ;;  %8128 = vmatpush1.bf16.msra.mxu0 %v11766_v26 }
 0x939   : > { %v5717_v22 = vpop.f32.mrb[85].mxu0  ;;  %8129 = vmatprep.subr.bf16.mxu0 %v12540_v47 }
 0x93a   : > { %v11770_v48 = vpack.c.bf16 %v7748_v20, %v5717_v22  ;;  %v6213_v20 = vld [vmem:[%s12372_s12 + $0x90] sm:$0xff] }
 0x93b   : > { %v6217_v22 = vld [vmem:[%s12372_s12 + $0xb0] sm:$0xff] }
 0x93c   : > { %v7751_v54 = vpop.f32.mrb[86].mxu0  ;;  %8131 = vmatpush1.bf16.msra.mxu0 %v11770_v48 }
 0x93d   : > { %v5727_v31 = vpop.f32.mrb[87].mxu0  ;;  %8132 = vmatprep.subr.bf16.mxu0 %v12540_v47 }
 0x93e   : > { %v11774_v42 = vpack.c.bf16 %v7751_v54, %v5727_v31  ;;  %v6220_v54 = vld [vmem:[%s12372_s12 + $0xc8] sm:$0xff]  ;;  %v6219_v31 = vld [vmem:[%s12372_s12 + $0xc0] sm:$0xff] }
 0x940   : > { %8134 = vmatpush1.bf16.msra.mxu0 %v11774_v42 }
 0x941   : > { %8135 = vmatprep.subr.bf16.mxu0 %v12540_v47 }
 0x944   : > { %v7754_v60 = vpop.f32.mrb[88].mxu0 }
 0x945   : > { %v5737_v24 = vpop.f32.mrb[89].mxu0 }
 0x946   : > { %v11778_v34 = vpack.c.bf16 %v7754_v60, %v5737_v24  ;;  %v6222_v60 = vld [vmem:[%s12372_s12 + $0xd8] sm:$0xff] }
 0x947   : > { %v6226_v24 = vld [vmem:[%s12372_s12 + $0xf8] sm:$0xff] }
 0x948   : > { %8137 = vmatpush1.bf16.msra.mxu0 %v11778_v34 }
 0x949   : > { %8138 = vmatprep.subr.bf16.mxu0 %v12540_v47 }
 0x94b   : > { %v7757_v43 = vpop.f32.mrb[90].mxu0 }
 0x94c   : > { %v5747_v35 = vpop.f32.mrb[91].mxu0 }
 0x94d   : > { %v11782_v39 = vpack.c.bf16 %v7757_v43, %v5747_v35  ;;  %v6229_v43 = vld [vmem:[%s12372_s12 + $0x110] sm:$0xff]  ;;  %v6228_v35 = vld [vmem:[%s12372_s12 + $0x108] sm:$0xff] }
 0x94f   : > { %8140 = vmatpush1.bf16.msra.mxu0 %v11782_v39 }
 0x950   : > { %8149 = vmatprep.subr.bf16.mxu0 %v12540_v47 }
 0x952   : > { %5950 = vmatmul.mubr.f32.vlgmr.msra.gmra.mrb[92].mxu0 %v5776_v37  ;;  %v6231_v37 = vld [vmem:[%s12372_s12 + $0x120] sm:$0xff] }
 0x953   : > { %8151 = vmatpush1.bf16.msra.mxu0 %v11722_v46  ;;  %5954 = vmatprep.mubr.f32.mxu0 %v5780_v33  ;;  %v5798_v46 = vld [vmem:[%s12371_s11 + $0xb0] sm:$0xff]  ;;  %v6235_v33 = vld [vmem:[%s12372_s12 + $0x140] sm:$0xff] }
 0x954   : > { %8152 = vmatprep.subr.bf16.mxu0 %v12540_v47 }
 0x956   : > { %5955 = vmatmul.mubr.f32.gmra.mrb[94].mxu0 %v5779_v11 }
 0x957   : > { %v7760_v30 = vpop.f32.mrb[156].mxu1  ;;  %8154 = vmatpush1.bf16.msra.mxu0 %v11726_v9  ;;  %5959 = vmatprep.mubr.f32.mxu0 %v5783_v17  ;;  %v5800_v9 = vld [vmem:[%s12371_s11 + $0xc0] sm:$0xff]  ;;  %v6234_v17 = vld [vmem:[%s12372_s12 + $0x138] sm:$0xff] }
 0x958   : > { %v5757_v6 = vpop.f32.mrb[157].mxu1  ;;  %8155 = vmatprep.subr.bf16.mxu0 %v12540_v47 }
 0x959   : > { %v11809_v36 = vpack.c.bf16 %v7760_v30, %v5757_v6  ;;  %v5781_v6 = vld [vmem:[%s12371_s11 + $0x28] sm:$0xff] }
 0x95a   : > { %5960 = vmatmul.mubr.f32.gmra.mrb[96].mxu0 %v5782_v4  ;;  %v6238_v4 = vld [vmem:[%s12372_s12 + $0x158] sm:$0xff] }
 0x95b   : > { %8142 = vmatprep.subr.bf16.mxu1 %v11809_v36  ;;  %8157 = vmatpush1.bf16.msra.mxu0 %v11730_v40  ;;  %v5807_v40 = vld [vmem:[%s12371_s11 + $0xf8] sm:$0xff] }
 0x95c   : > { %8144 = vmatpush3.bf16.msra.mxu1 %v11809_v36  ;;  %8158 = vmatprep.subr.bf16.mxu0 %v12540_v47 }
 0x95d   : > { %5964 = vmatprep.mubr.f32.mxu0 %v5786_v38  ;;  %v6237_v38 = vld [vmem:[%s12372_s12 + $0x150] sm:$0xff] }
 0x95e   : > { %5965 = vmatmul.mubr.f32.gmra.mrb[98].mxu0 %v5785_v51  ;;  %v5784_v51 = vld [vmem:[%s12371_s11 + $0x40] sm:$0xff] }
 0x95f   : > { %8160 = vmatpush1.bf16.msra.mxu0 %v11734_v61  ;;  %5969 = vmatprep.mubr.f32.mxu0 %v5789_v62  ;;  %v5809_v61 = vld [vmem:[%s12371_s11 + $0x108] sm:$0xff]  ;;  %v6241_v62 = vld [vmem:[%s12372_s12 + $0x170] sm:$0xff] }
 0x960   : > { %8161 = vmatprep.subr.bf16.mxu0 %v12540_v47 }
 0x962   : > { %5970 = vmatmul.mubr.f32.gmra.mrb[100].mxu0 %v5788_v8  ;;  %v5787_v8 = vld [vmem:[%s12371_s11 + $0x58] sm:$0xff] }
 0x963   : > { %8163 = vmatpush1.bf16.msra.mxu0 %v11738_v27  ;;  %5974 = vmatprep.mubr.f32.mxu0 %v5792_v44  ;;  %v5816_v27 = vld [vmem:[%s12371_s11 + $0x140] sm:$0xff]  ;;  %v6240_v44 = vld [vmem:[%s12372_s12 + $0x168] sm:$0xff] }
 0x964   : > { %8164 = vmatprep.subr.bf16.mxu0 %v12540_v47 }
 0x966   : > { %5975 = vmatmul.mubr.f32.gmra.mrb[102].mxu0 %v5791_v56  ;;  %v5790_v56 = vld [vmem:[%s12371_s11 + $0x70] sm:$0xff] }
 0x967   : > { %8166 = vmatpush1.bf16.msra.mxu0 %v11742_v32  ;;  %5979 = vmatprep.mubr.f32.mxu0 %v5795_v16  ;;  %v5818_v32 = vld [vmem:[%s12371_s11 + $0x150] sm:$0xff]  ;;  %v5793_v16 = vld [vmem:[%s12371_s11 + $0x88] sm:$0xff] }
 0x968   : > { %8167 = vmatprep.subr.bf16.mxu0 %v12540_v47 }
 0x96a   : > { %5980 = vmatmul.mubr.f32.gmra.mrb[104].mxu0 %v5794_v18  ;;  %v6243_v18 = vld [vmem:[%s12372_s12 + $0x180] sm:$0xff] }
 0x96b   : > { %8169 = vmatpush1.bf16.msra.mxu0 %v11746_v10  ;;  %5984 = vmatprep.mubr.f32.mxu0 %v5798_v46  ;;  %v5825_v10 = vld [vmem:[%s12371_s11 + $0x188] sm:$0xff]  ;;  %v5796_v46 = vld [vmem:[%s12371_s11 + $0xa0] sm:$0xff] }
 0x96c   : > { %8170 = vmatprep.subr.bf16.mxu0 %v12540_v47 }
 0x96e   : > { %5985 = vmatmul.mubr.f32.gmra.mrb[106].mxu0 %v5797_v52  ;;  %v6247_v52 = vld [vmem:[%s12372_s12 + $0x1a0] sm:$0xff] }
 0x96f   : > { %8172 = vmatpush1.bf16.msra.mxu0 %v11750_v25  ;;  %5989 = vmatprep.mubr.f32.mxu0 %v5801_v58  ;;  %v6196_v25 = vld [vmem:[%s12372_s12 + $0x8] sm:$0xff]  ;;  %v5799_v58 = vld [vmem:[%s12371_s11 + $0xb8] sm:$0xff] }
 0x970   : > { %8173 = vmatprep.subr.bf16.mxu0 %v12540_v47 }
 0x972   : > { %5990 = vmatmul.mubr.f32.gmra.mrb[108].mxu0 %v5800_v9  ;;  %v6246_v9 = vld [vmem:[%s12372_s12 + $0x198] sm:$0xff] }
 0x973   : > { %8175 = vmatpush1.bf16.msra.mxu0 %v11754_v21  ;;  %5994 = vmatprep.mubr.f32.mxu0 %v5804_v63  ;;  %v6198_v21 = vld [vmem:[%s12372_s12 + $0x18] sm:$0xff]  ;;  %v5802_v63 = vld [vmem:[%s12371_s11 + $0xd0] sm:$0xff] }
 0x974   : > { %8176 = vmatprep.subr.bf16.mxu0 %v12540_v47 }
 0x976   : > { %5995 = vmatmul.mubr.f32.gmra.mrb[110].mxu0 %v5803_v1  ;;  %v5805_v1 = vld [vmem:[%s12371_s11 + $0xe8] sm:$0xff] }
 0x977   : > { %8178 = vmatpush1.bf16.msra.mxu0 %v11758_v3  ;;  %5999 = vmatprep.mubr.f32.mxu0 %v5807_v40  ;;  %v6205_v3 = vld [vmem:[%s12372_s12 + $0x50] sm:$0xff]  ;;  %v5808_v40 = vld [vmem:[%s12371_s11 + $0x100] sm:$0xff] }
 0x978   : > { %8179 = vmatprep.subr.bf16.mxu0 %v12540_v47 }
 0x97a   : > { %6000 = vmatmul.mubr.f32.gmra.mrb[112].mxu0 %v5806_v29  ;;  %v5811_v29 = vld [vmem:[%s12371_s11 + $0x118] sm:$0xff] }
 0x97b   : > { %8181 = vmatpush1.bf16.msra.mxu0 %v11762_v19  ;;  %6004 = vmatprep.mubr.f32.mxu0 %v5810_v50  ;;  %v6207_v19 = vld [vmem:[%s12372_s12 + $0x60] sm:$0xff]  ;;  %v5814_v50 = vld [vmem:[%s12371_s11 + $0x130] sm:$0xff] }
 0x97c   : > { %8182 = vmatprep.subr.bf16.mxu0 %v12540_v47 }
 0x97e   : > { %6005 = vmatmul.mubr.f32.gmra.mrb[114].mxu0 %v5809_v61  ;;  %v5817_v61 = vld [vmem:[%s12371_s11 + $0x148] sm:$0xff] }
 0x97f   : > { %8184 = vmatpush1.bf16.msra.mxu0 %v11766_v26  ;;  %6009 = vmatprep.mubr.f32.mxu0 %v5813_v12  ;;  %v6214_v26 = vld [vmem:[%s12372_s12 + $0x98] sm:$0xff]  ;;  %v5820_v12 = vld [vmem:[%s12371_s11 + $0x160] sm:$0xff] }
 0x980   : > { %8185 = vmatprep.subr.bf16.mxu0 %v12540_v47 }
 0x982   : > { %6010 = vmatmul.mubr.f32.gmra.mrb[116].mxu0 %v5812_v23  ;;  %v5823_v23 = vld [vmem:[%s12371_s11 + $0x178] sm:$0xff] }
 0x983   : > { %8187 = vmatpush1.bf16.msra.mxu0 %v11770_v48  ;;  %6014 = vmatprep.mubr.f32.mxu0 %v5816_v27  ;;  %v6216_v48 = vld [vmem:[%s12372_s12 + $0xa8] sm:$0xff]  ;;  %v5826_v27 = vld [vmem:[%s12371_s11 + $0x190] sm:$0xff] }
 0x984   : > { %8188 = vmatprep.subr.bf16.mxu0 %v12540_v47 }
 0x986   : > { %6015 = vmatmul.mubr.f32.gmra.mrb[118].mxu0 %v5815_v41  ;;  %v5829_v41 = vld [vmem:[%s12371_s11 + $0x1a8] sm:$0xff] }
 0x987   : > { %8190 = vmatpush1.bf16.msra.mxu0 %v11774_v42  ;;  %6019 = vmatprep.mubr.f32.mxu0 %v5819_v53  ;;  %v6223_v42 = vld [vmem:[%s12372_s12 + $0xe0] sm:$0xff]  ;;  %v6197_v53 = vld [vmem:[%s12372_s12 + $0x10] sm:$0xff] }
 0x988   : > { %8191 = vmatprep.subr.bf16.mxu0 %v12540_v47 }
 0x98a   : > { %6020 = vmatmul.mubr.f32.gmra.mrb[120].mxu0 %v5818_v32  ;;  %v6200_v32 = vld [vmem:[%s12372_s12 + $0x28] sm:$0xff] }
 0x98b   : > { %8193 = vmatpush1.bf16.msra.mxu0 %v11778_v34  ;;  %6024 = vmatprep.mubr.f32.mxu0 %v5822_v49  ;;  %v6225_v34 = vld [vmem:[%s12372_s12 + $0xf0] sm:$0xff]  ;;  %v6203_v49 = vld [vmem:[%s12372_s12 + $0x40] sm:$0xff] }
 0x98c   : > { %8194 = vmatprep.subr.bf16.mxu0 %v12540_v47  ;;  %v5827_v47 = vld [vmem:[%s12371_s11 + $0x198] sm:$0xff] }
 0x98e   : > { %6025 = vmatmul.mubr.f32.gmra.mrb[122].mxu0 %v5821_v5  ;;  %v6206_v5 = vld [vmem:[%s12372_s12 + $0x58] sm:$0xff] }
 0x98f   : > { %8196 = vmatpush1.bf16.msra.mxu0 %v11782_v39  ;;  %6029 = vmatprep.mubr.f32.mxu0 %v5825_v10  ;;  %v6232_v39 = vld [vmem:[%s12372_s12 + $0x128] sm:$0xff]  ;;  %v6209_v10 = vld [vmem:[%s12372_s12 + $0x70] sm:$0xff] }
 0x992   : > { %6030 = vmatmul.mubr.f32.gmra.mrb[124].mxu0 %v5824_v28  ;;  %v6212_v28 = vld [vmem:[%s12372_s12 + $0x88] sm:$0xff] }
 0x993   : > { %6034 = vmatprep.mubr.f32.mxu0 %v5828_v0  ;;  %v6215_v0 = vld [vmem:[%s12372_s12 + $0xa0] sm:$0xff] }
 0x996   : > { %6035 = vmatmul.mubr.f32.gmra.mrb[126].mxu0 %v5827_v47  ;;  %v6218_v47 = vld [vmem:[%s12372_s12 + $0xb8] sm:$0xff] }
 0x997   : > { %6367 = vmatprep.mubr.f32.mxu0 %v6196_v25  ;;  %v6221_v25 = vld [vmem:[%s12372_s12 + $0xd0] sm:$0xff] }
 0x99a   : > { %6368 = vmatmul.mubr.f32.vlgmr.msra.gmra.mrb[128].mxu0 %v6195_v13  ;;  %v6224_v13 = vld [vmem:[%s12372_s12 + $0xe8] sm:$0xff] }
 0x99b   : > { %6372 = vmatprep.mubr.f32.mxu0 %v6199_v2  ;;  %v6227_v2 = vld [vmem:[%s12372_s12 + $0x100] sm:$0xff] }
 0x99e   : > { %6373 = vmatmul.mubr.f32.gmra.mrb[130].mxu0 %v6198_v21  ;;  %v6230_v21 = vld [vmem:[%s12372_s12 + $0x118] sm:$0xff] }
 0x99f   : > { %6377 = vmatprep.mubr.f32.mxu0 %v6202_v7  ;;  %v6233_v7 = vld [vmem:[%s12372_s12 + $0x130] sm:$0xff] }
 0x9a2   : > { %6378 = vmatmul.mubr.f32.gmra.mrb[132].mxu0 %v6201_v57  ;;  %v6236_v57 = vld [vmem:[%s12372_s12 + $0x148] sm:$0xff] }
 0x9a3   : > { %6382 = vmatprep.mubr.f32.mxu0 %v6205_v3  ;;  %v6239_v3 = vld [vmem:[%s12372_s12 + $0x160] sm:$0xff] }
 0x9a6   : > { %6383 = vmatmul.mubr.f32.gmra.mrb[134].mxu0 %v6204_v55  ;;  %v6242_v55 = vld [vmem:[%s12372_s12 + $0x178] sm:$0xff] }
 0x9a7   : > { %6387 = vmatprep.mubr.f32.mxu0 %v6208_v59  ;;  %v6245_v59 = vld [vmem:[%s12372_s12 + $0x190] sm:$0xff] }
 0x9aa   : > { %6388 = vmatmul.mubr.f32.gmra.mrb[136].mxu0 %v6207_v19  ;;  %v6248_v19 = vld [vmem:[%s12372_s12 + $0x1a8] sm:$0xff] }
 0x9ab   : > { %6392 = vmatprep.mubr.f32.mxu0 %v6211_v15 }
 0x9ae   : > { %6393 = vmatmul.mubr.f32.gmra.mrb[138].mxu0 %v6210_v45 }
 0x9af   : > { %6397 = vmatprep.mubr.f32.mxu0 %v6214_v26 }
 0x9b2   : > { %6398 = vmatmul.mubr.f32.gmra.mrb[140].mxu0 %v6213_v20 }
 0x9b3   : > { %6402 = vmatprep.mubr.f32.mxu0 %v6217_v22 }
 0x9b6   : > { %6403 = vmatmul.mubr.f32.gmra.mrb[142].mxu0 %v6216_v48 }
 0x9b7   : > { %6407 = vmatprep.mubr.f32.mxu0 %v6220_v54 }
 0x9ba   : > { %6408 = vmatmul.mubr.f32.gmra.mrb[144].mxu0 %v6219_v31 }
 0x9bb   : > { %6412 = vmatprep.mubr.f32.mxu0 %v6223_v42 }
 0x9be   : > { %6413 = vmatmul.mubr.f32.gmra.mrb[146].mxu0 %v6222_v60 }
 0x9bf   : > { %6417 = vmatprep.mubr.f32.mxu0 %v6226_v24 }
 0x9c2   : > { %6418 = vmatmul.mubr.f32.gmra.mrb[148].mxu0 %v6225_v34 }
 0x9c3   : > { %6422 = vmatprep.mubr.f32.mxu0 %v6229_v43 }
 0x9c6   : > { %6423 = vmatmul.mubr.f32.gmra.mrb[150].mxu0 %v6228_v35 }
 0x9c7   : > { %6427 = vmatprep.mubr.f32.mxu0 %v6232_v39 }
 0x9ca   : > { %v7763_v14 = vpop.f32.mrb[158].mxu1  ;;  %6428 = vmatmul.mubr.f32.gmra.mrb[152].mxu0 %v6231_v37 }
 0x9cb   : > { %v5767_v11 = vpop.f32.mrb[159].mxu1  ;;  %6432 = vmatprep.mubr.f32.mxu0 %v6235_v33 }
 0x9cc   : > { %v8145_v30 = vpack.c.bf16 %v7763_v14, %v5767_v11 }
 0x9ce   : > { %8146 = vmatprep.subr.bf16.mxu1 %v8145_v30  ;;  %6433 = vmatmul.mubr.f32.gmra.mrb[154].mxu0 %v6234_v17 }
 0x9cf   : > { %8148 = vmatpush3.bf16.msra.mxu1 %v8145_v30  ;;  %6437 = vmatprep.mubr.f32.mxu0 %v6238_v4 }
 0x9d0   : > { %8198 = vmatprep.subr.bf16.mxu1 %v11809_v36 }
 0x9d2   : > { %7773 = vmatmul.mubr.msk.f32.vlgmr.msra.gmra.mrb[160].mxu1 %vm5830_vm12, %v5781_v6  ;;  %6438 = vmatmul.mubr.f32.gmra.mrb[156].mxu0 %v6237_v38 }
 0x9d3   : > { %8200 = vmatpush3.bf16.msra.mxu1 %v11809_v36  ;;  %7775 = vmatprep.mubr.msk.f32.mxu1 %vm5830_vm12, %v5784_v51  ;;  %v6244_v36 = vld [vmem:[%s12372_s12 + $0x188] sm:$0xff] }
 0x9d4   : > { %8202 = vmatprep.subr.bf16.mxu1 %v8145_v30  ;;  %6442 = vmatprep.mubr.f32.mxu0 %v6241_v62 }
 0x9d6   : > { %7776 = vmatmul.mubr.msk.f32.gmra.mrb[162].mxu1 %vm5830_vm12, %v5787_v8  ;;  %6443 = vmatmul.mubr.f32.gmra.mrb[158].mxu0 %v6240_v44 }
 0x9d7   : > { %8204 = vmatpush3.bf16.msra.mxu1 %v8145_v30  ;;  %7778 = vmatprep.mubr.msk.f32.mxu1 %vm5830_vm12, %v5790_v56 }
 0x9d8   : > { %6447 = vmatprep.mubr.f32.mxu0 %v6244_v36 }
 0x9da   : > { %7779 = vmatmul.mubr.msk.f32.gmra.mrb[164].mxu1 %vm5830_vm12, %v5793_v16  ;;  %6448 = vmatmul.mubr.f32.gmra.mrb[160].mxu0 %v6243_v18 }
 0x9db   : > { %7781 = vmatprep.mubr.msk.f32.mxu1 %vm5830_vm12, %v5796_v46  ;;  %6452 = vmatprep.mubr.f32.mxu0 %v6247_v52 }
 0x9de   : > { %7782 = vmatmul.mubr.msk.f32.gmra.mrb[166].mxu1 %vm5830_vm12, %v5799_v58  ;;  %6453 = vmatmul.mubr.f32.gmra.mrb[162].mxu0 %v6246_v9 }
 0x9df   : > { %7784 = vmatprep.mubr.msk.f32.mxu1 %vm5830_vm12, %v5802_v63 }
 0x9e2   : > { %7785 = vmatmul.mubr.msk.f32.gmra.mrb[168].mxu1 %vm5830_vm12, %v5805_v1 }
 0x9e3   : > { %7787 = vmatprep.mubr.msk.f32.mxu1 %vm5830_vm12, %v5808_v40 }
 0x9e6   : > { %7788 = vmatmul.mubr.msk.f32.gmra.mrb[170].mxu1 %vm5830_vm12, %v5811_v29 }
 0x9e7   : > { %7790 = vmatprep.mubr.msk.f32.mxu1 %vm5830_vm12, %v5814_v50 }
 0x9ea   : > { %7791 = vmatmul.mubr.msk.f32.gmra.mrb[172].mxu1 %vm5830_vm12, %v5817_v61 }
 0x9eb   : > { %7793 = vmatprep.mubr.msk.f32.mxu1 %vm5830_vm12, %v5820_v12 }
 0x9ee   : > { %7794 = vmatmul.mubr.msk.f32.gmra.mrb[174].mxu1 %vm5830_vm12, %v5823_v23 }
 0x9ef   : > { %7796 = vmatprep.mubr.msk.f32.mxu1 %vm5830_vm12, %v5826_v27 }
 0x9f2   : > { %7797 = vmatmul.mubr.msk.f32.gmra.mrb[176].mxu1 %vm5830_vm12, %v5829_v41 }
 0x9f3   : > { %7807 = vmatprep.mubr.msk.f32.mxu1 %vm5830_vm12, %v6197_v53 }
 0x9f6   : > { %7808 = vmatmul.mubr.msk.f32.vlgmr.msra.gmra.mrb[178].mxu1 %vm5830_vm12, %v6200_v32 }
 0x9f7   : > { %7810 = vmatprep.mubr.msk.f32.mxu1 %vm5830_vm12, %v6203_v49 }
 0x9fa   : > { %7811 = vmatmul.mubr.msk.f32.gmra.mrb[180].mxu1 %vm5830_vm12, %v6206_v5 }
 0x9fb   : > { %7813 = vmatprep.mubr.msk.f32.mxu1 %vm5830_vm12, %v6209_v10 }
 0x9fe   : > { %7814 = vmatmul.mubr.msk.f32.gmra.mrb[182].mxu1 %vm5830_vm12, %v6212_v28 }
 0x9ff   : > { %7816 = vmatprep.mubr.msk.f32.mxu1 %vm5830_vm12, %v6215_v0 }
 0xa02   : > { %7817 = vmatmul.mubr.msk.f32.gmra.mrb[184].mxu1 %vm5830_vm12, %v6218_v47 }
 0xa03   : > { %7819 = vmatprep.mubr.msk.f32.mxu1 %vm5830_vm12, %v6221_v25 }
 0xa06   : > { %7820 = vmatmul.mubr.msk.f32.gmra.mrb[186].mxu1 %vm5830_vm12, %v6224_v13 }
 0xa07   : > { %7822 = vmatprep.mubr.msk.f32.mxu1 %vm5830_vm12, %v6227_v2 }
 0xa0a   : > { %7823 = vmatmul.mubr.msk.f32.gmra.mrb[188].mxu1 %vm5830_vm12, %v6230_v21 }
 0xa0b   : > { %7825 = vmatprep.mubr.msk.f32.mxu1 %vm5830_vm12, %v6233_v7 }
 0xa0e   : > { %7826 = vmatmul.mubr.msk.f32.gmra.mrb[190].mxu1 %vm5830_vm12, %v6236_v57 }
 0xa0f   : > { %7828 = vmatprep.mubr.msk.f32.mxu1 %vm5830_vm12, %v6239_v3 }
 0xa12   : > { %7829 = vmatmul.mubr.msk.f32.gmra.mrb[192].mxu1 %vm5830_vm12, %v6242_v55 }
 0xa13   : > { %7831 = vmatprep.mubr.msk.f32.mxu1 %vm5830_vm12, %v6245_v59 }
 0xa16   : > { %7832 = vmatmul.mubr.msk.f32.gmra.mrb[194].mxu1 %vm5830_vm12, %v6248_v19 }
 0xa25   : > { %v12180_v15 = vpop.f32.mrb[92].mxu0 }
 0xa26   : > { %v5953_v45 = vpop.f32.mrb[93].mxu0 }
 0xa29   : > { %v12182_v26 = vpop.f32.mrb[94].mxu0 }
 0xa2a   : > { %v5958_v20 = vpop.f32.mrb[95].mxu0 }
 0xa2d   : > { %v12184_v22 = vpop.f32.mrb[96].mxu0 }
 0xa2e   : > { %v5963_v48 = vpop.f32.mrb[97].mxu0 }
 0xa31   : > { %v12186_v54 = vpop.f32.mrb[98].mxu0 }
 0xa32   : > { %v5968_v31 = vpop.f32.mrb[99].mxu0 }
 0xa35   : > { %v12188_v42 = vpop.f32.mrb[100].mxu0 }
 0xa36   : > { %v5973_v60 = vpop.f32.mrb[101].mxu0 }
 0xa39   : > { %v12190_v24 = vpop.f32.mrb[102].mxu0 }
 0xa3a   : > { %v5978_v34 = vpop.f32.mrb[103].mxu0 }
 0xa3d   : > { %v12192_v43 = vpop.f32.mrb[104].mxu0 }
 0xa3e   : > { %v5983_v35 = vpop.f32.mrb[105].mxu0 }
 0xa41   : > { %v12194_v39 = vpop.f32.mrb[106].mxu0 }
 0xa42   : > { %v5988_v37 = vpop.f32.mrb[107].mxu0 }
 0xa45   : > { %v12196_v33 = vpop.f32.mrb[108].mxu0 }
 0xa46   : > { %v5993_v14 = vpop.f32.mrb[109].mxu0 }
 0xa49   : > { %v12198_v11 = vpop.f32.mrb[110].mxu0 }
 0xa4a   : > { %v5998_v17 = vpop.f32.mrb[111].mxu0 }
 0xa4d   : > { %v12200_v30 = vpop.f32.mrb[112].mxu0 }
 0xa4e   : > { %v6003_v4 = vpop.f32.mrb[113].mxu0 }
 0xa51   : > { %v12202_v6 = vpop.f32.mrb[114].mxu0 }
 0xa52   : > { %v6008_v38 = vpop.f32.mrb[115].mxu0 }
 0xa55   : > { %v12204_v51 = vpop.f32.mrb[116].mxu0 }
 0xa56   : > { %v6013_v62 = vpop.f32.mrb[117].mxu0 }
 0xa59   : > { %v12206_v8 = vpop.f32.mrb[118].mxu0 }
 0xa5a   : > { %v6018_v44 = vpop.f32.mrb[119].mxu0 }
 0xa5d   : > { %v12208_v56 = vpop.f32.mrb[120].mxu0 }
 0xa5e   : > { %v6023_v36 = vpop.f32.mrb[121].mxu0 }
 0xa61   : > { %v12210_v16 = vpop.f32.mrb[122].mxu0 }
 0xa62   : > { %v6028_v18 = vpop.f32.mrb[123].mxu0 }
 0xa65   : > { %v12212_v46 = vpop.f32.mrb[124].mxu0 }
 0xa66   : > { %v6033_v52 = vpop.f32.mrb[125].mxu0 }
 0xa69   : > { %v12214_v58 = vpop.f32.mrb[126].mxu0 }
 0xa6a   : > { %v6038_v9 = vpop.f32.mrb[127].mxu0 }
 0xa6d   : > { %v12216_v63 = vpop.f32.mrb[128].mxu0 }
 0xa6e   : > { %v6371_v1 = vpop.f32.mrb[129].mxu0 }
 0xa71   : > { %v12218_v40 = vpop.f32.mrb[130].mxu0 }
 0xa72   : > { %v6376_v29 = vpop.f32.mrb[131].mxu0 }
 0xa75   : > { %v12220_v50 = vpop.f32.mrb[132].mxu0 }
 0xa76   : > { %v6381_v61 = vpop.f32.mrb[133].mxu0 }
 0xa79   : > { %v12222_v12 = vpop.f32.mrb[134].mxu0 }
 0xa7a   : > { %v6386_v23 = vpop.f32.mrb[135].mxu0 }
 0xa7d   : > { %v12224_v27 = vpop.f32.mrb[136].mxu0 }
 0xa7e   : > { %v6391_v41 = vpop.f32.mrb[137].mxu0 }
 0xa81   : > { %v12226_v53 = vpop.f32.mrb[138].mxu0 }
 0xa82   : > { %v6396_v32 = vpop.f32.mrb[139].mxu0 }
 0xa85   : > { %v12228_v49 = vpop.f32.mrb[140].mxu0 }
 0xa86   : > { %v6401_v5 = vpop.f32.mrb[141].mxu0 }
 0xa89   : > { %v12230_v10 = vpop.f32.mrb[142].mxu0 }
 0xa8a   : > { %v6406_v28 = vpop.f32.mrb[143].mxu0 }
 0xa8d   : > { %v12232_v0 = vpop.f32.mrb[144].mxu0 }
 0xa8e   : > { %v6411_v47 = vpop.f32.mrb[145].mxu0 }
 0xa91   : > { %v12234_v25 = vpop.f32.mrb[146].mxu0 }
 0xa92   : > { %v6416_v13 = vpop.f32.mrb[147].mxu0 }
 0xa95   : > { %v12236_v2 = vpop.f32.mrb[148].mxu0 }
 0xa96   : > { %v6421_v21 = vpop.f32.mrb[149].mxu0 }
 0xa99   : > { %v12238_v7 = vpop.f32.mrb[150].mxu0 }
 0xa9a   : > { %v6426_v57 = vpop.f32.mrb[151].mxu0 }
 0xa9d   : > { %v12240_v3 = vpop.f32.mrb[152].mxu0 }
 0xa9e   : > { %v6431_v55 = vpop.f32.mrb[153].mxu0 }
 0xaa1   : > { %v12242_v59 = vpop.f32.mrb[154].mxu0 }
 0xaa2   : > { %v6436_v19 = vpop.f32.mrb[155].mxu0 }
 0xaa5   : > { %v7774_v45 = vpop.f32.mrb[160].mxu1  ;;  %v12244_v20 = vpop.f32.mrb[156].mxu0 }
 0xaa6   : > { %v6112_v48 = vadd.f32 %v7774_v45, %v12182_v26  ;;  %v6106_v31 = vpop.f32.mrb[161].mxu1  ;;  %v6441_v60 = vpop.f32.mrb[157].mxu0 }
 0xaa7   : > { %v6107_v34 = vadd.f32 %v6106_v31, %v12180_v15 }
 0xaa9   : > { %v7777_v35 = vpop.f32.mrb[162].mxu1  ;;  %v12248_v37 = vpop.f32.mrb[158].mxu0 }
 0xaaa   : > { %v6122_v14 = vadd.f32 %v7777_v35, %v12186_v54  ;;  %v6116_v17 = vpop.f32.mrb[163].mxu1  ;;  %v6446_v4 = vpop.f32.mrb[159].mxu0 }
 0xaab   : > { %v6117_v38 = vadd.f32 %v6116_v17, %v12184_v22 }
 0xaad   : > { %v7780_v62 = vpop.f32.mrb[164].mxu1  ;;  %v12252_v44 = vpop.f32.mrb[160].mxu0 }
 0xaae   : > { %v6132_v36 = vadd.f32 %v7780_v62, %v12190_v24  ;;  %v6126_v18 = vpop.f32.mrb[165].mxu1  ;;  %v6451_v26 = vpop.f32.mrb[161].mxu0 }
 0xaaf   : > { %v6127_v52 = vadd.f32 %v6126_v18, %v12188_v42 }
 0xab1   : > { %v7783_v9 = vpop.f32.mrb[166].mxu1  ;;  %v12256_v15 = vpop.f32.mrb[162].mxu0 }
 0xab2   : > { %v6142_v1 = vadd.f32 %v7783_v9, %v12194_v39  ;;  %v6136_v29 = vpop.f32.mrb[167].mxu1  ;;  %v6456_v54 = vpop.f32.mrb[163].mxu0 }
 0xab3   : > { %v6137_v61 = vadd.f32 %v6136_v29, %v12192_v43 }
 0xab5   : > { %v7786_v23 = vpop.f32.mrb[168].mxu1 }
 0xab6   : > { %v6152_v22 = vadd.f32 %v7786_v23, %v12198_v11  ;;  %v6146_v41 = vpop.f32.mrb[169].mxu1 }
 0xab7   : > { %v12262_v32 = vadd.f32 %v6146_v41, %v12196_v33 }
 0xab9   : > { %v7789_v24 = vpop.f32.mrb[170].mxu1 }
 0xaba   : > { %v12265_v42 = vadd.f32 %v7789_v24, %v12202_v6  ;;  %v6156_v5 = vpop.f32.mrb[171].mxu1 }
 0xabb   : > { %v12268_v28 = vadd.f32 %v6156_v5, %v12200_v30 }
 0xabd   : > { %v7792_v39 = vpop.f32.mrb[172].mxu1 }
 0xabe   : > { %v12271_v47 = vadd.f32 %v7792_v39, %v12206_v8  ;;  %v6166_v43 = vpop.f32.mrb[173].mxu1 }
 0xabf   : > { %v12274_v11 = vadd.f32 %v6166_v43, %v12204_v51 }
 0xac1   : > { %v7795_v13 = vpop.f32.mrb[174].mxu1 }
 0xac2   : > { %v12277_v33 = vadd.f32 %v7795_v13, %v12210_v16  ;;  %v6176_v21 = vpop.f32.mrb[175].mxu1 }
 0xac3   : > { %v12280_v6 = vadd.f32 %v6176_v21, %v12208_v56 }
 0xac5   : > { %v7798_v57 = vpop.f32.mrb[176].mxu1 }
 0xac6   : > { %v12283_v30 = vadd.f32 %v7798_v57, %v12214_v58  ;;  %v6186_v55 = vpop.f32.mrb[177].mxu1 }
 0xac7   : > { %v12287_v8 = vadd.f32 %v6186_v55, %v12212_v46 }
 0xac9   : > { %v7809_v19 = vpop.f32.mrb[178].mxu1 }
 0xaca   : > { %v6530_v51 = vadd.f32 %v7809_v19, %v12218_v40  ;;  %v6524_v45 = vpop.f32.mrb[179].mxu1 }
 0xacb   : > { %v6525_v56 = vadd.f32 %v6524_v45, %v12216_v63 }
 0xacc   : > { %v6614_v16 = vmax.f32 %v6112_v48, %v6530_v51 }
 0xacd   : > { %v6613_v58 = vmax.f32 %v6107_v34, %v6525_v56  ;;  %v7812_v46 = vpop.f32.mrb[180].mxu1 }
 0xace   : > { %6633 = vst.msk [vmem:[%s12293_s28 + $0x8] sm:$0xff] %vm6631_vm13, %v6614_v16  ;;  %v6540_v40 = vadd.f32 %v7812_v46, %v12222_v12  ;;  %v6534_v31 = vpop.f32.mrb[181].mxu1 }
 0xacf   : > { %6632 = vst.msk [vmem:[%s12293_s28] sm:$0xff] %vm6631_vm13, %v6613_v58  ;;  %v6535_v60 = vadd.f32 %v6534_v31, %v12220_v50 }
 0xad0   : > { %v6616_v35 = vmax.f32 %v6122_v14, %v6540_v40 }
 0xad1   : > { %v6615_v17 = vmax.f32 %v6117_v38, %v6535_v60  ;;  %v7815_v4 = vpop.f32.mrb[182].mxu1 }
 0xad2   : > { %6635 = vst.msk [vmem:[%s12293_s28 + $0x18] sm:$0xff] %vm6631_vm13, %v6616_v35  ;;  %v6550_v63 = vadd.f32 %v7815_v4, %v12226_v53  ;;  %v6544_v48 = vpop.f32.mrb[183].mxu1 }
 0xad3   : > { %6634 = vst.msk [vmem:[%s12293_s28 + $0x10] sm:$0xff] %vm6631_vm13, %v6615_v17  ;;  %v6545_v12 = vadd.f32 %v6544_v48, %v12224_v27 }
 0xad4   : > { %v6618_v34 = vmax.f32 %v6132_v36, %v6550_v63 }
 0xad5   : > { %v6617_v62 = vmax.f32 %v6127_v52, %v6545_v12  ;;  %v7818_v18 = vpop.f32.mrb[184].mxu1 }
 0xad6   : > { %6637 = vst.msk [vmem:[%s12293_s28 + $0x28] sm:$0xff] %vm6631_vm13, %v6618_v34  ;;  %v6560_v50 = vadd.f32 %v7818_v18, %v12230_v10  ;;  %v6554_v14 = vpop.f32.mrb[185].mxu1 }
 0xad7   : > { %6636 = vst.msk [vmem:[%s12293_s28 + $0x20] sm:$0xff] %vm6631_vm13, %v6617_v62  ;;  %v6555_v53 = vadd.f32 %v6554_v14, %v12228_v49 }
 0xad8   : > { %v6620_v38 = vmax.f32 %v6142_v1, %v6560_v50 }
 0xad9   : > { %v6619_v26 = vmax.f32 %v6137_v61, %v6555_v53  ;;  %v7821_v9 = vpop.f32.mrb[186].mxu1 }
 0xada   : > { %6639 = vst.msk [vmem:[%s12293_s28 + $0x38] sm:$0xff] %vm6631_vm13, %v6620_v38  ;;  %v6570_v27 = vadd.f32 %v7821_v9, %v12234_v25  ;;  %v6564_v36 = vpop.f32.mrb[187].mxu1 }
 0xadb   : > { %6638 = vst.msk [vmem:[%s12293_s28 + $0x30] sm:$0xff] %vm6631_vm13, %v6619_v26  ;;  %v6565_v10 = vadd.f32 %v6564_v36, %v12232_v0 }
 0xadc   : > { %v6622_v52 = vmax.f32 %v6152_v22, %v6570_v27 }
 0xadd   : > { %v6621_v29 = vmax.f32 %v12262_v32, %v6565_v10  ;;  %v7824_v54 = vpop.f32.mrb[188].mxu1 }
 0xade   : > { %6641 = vst.msk [vmem:[%s12293_s28 + $0x48] sm:$0xff] %vm6631_vm13, %v6622_v52  ;;  %v6580_v49 = vadd.f32 %v7824_v54, %v12238_v7  ;;  %v6574_v1 = vpop.f32.mrb[189].mxu1 }
 0xadf   : > { %6640 = vst.msk [vmem:[%s12293_s28 + $0x40] sm:$0xff] %vm6631_vm13, %v6621_v29  ;;  %v6575_v25 = vadd.f32 %v6574_v1, %v12236_v2 }
 0xae0   : > { %v6624_v61 = vmax.f32 %v12265_v42, %v6580_v49 }
 0xae1   : > { %v6623_v23 = vmax.f32 %v12268_v28, %v6575_v25  ;;  %v7827_v0 = vpop.f32.mrb[190].mxu1 }
 0xae2   : > { %6643 = vst.msk [vmem:[%s12293_s28 + $0x58] sm:$0xff] %vm6631_vm13, %v6624_v61  ;;  %v6590_v22 = vadd.f32 %v7827_v0, %v12242_v59  ;;  %v6584_v41 = vpop.f32.mrb[191].mxu1 }
 0xae3   : > { %6642 = vst.msk [vmem:[%s12293_s28 + $0x50] sm:$0xff] %vm6631_vm13, %v6623_v23  ;;  %v6585_v7 = vadd.f32 %v6584_v41, %v12240_v3 }
 0xae4   : > { %v6626_v32 = vmax.f32 %v12271_v47, %v6590_v22 }
 0xae5   : > { %v6625_v2 = vmax.f32 %v12274_v11, %v6585_v7  ;;  %v7830_v24 = vpop.f32.mrb[192].mxu1 }
 0xae6   : > { %6645 = vst.msk [vmem:[%s12293_s28 + $0x68] sm:$0xff] %vm6631_vm13, %v6626_v32  ;;  %v6600_v42 = vadd.f32 %v7830_v24, %v12248_v37  ;;  %v6594_v5 = vpop.f32.mrb[193].mxu1 }
 0xae7   : > { %6644 = vst.msk [vmem:[%s12293_s28 + $0x60] sm:$0xff] %vm6631_vm13, %v6625_v2  ;;  %v6595_v59 = vadd.f32 %v6594_v5, %v12244_v20 }
 0xae8   : > { %v6628_v28 = vmax.f32 %v12277_v33, %v6600_v42 }
 0xae9   : > { %v6627_v3 = vmax.f32 %v12280_v6, %v6595_v59  ;;  %v7833_v39 = vpop.f32.mrb[194].mxu1 }
 0xaea   : > { %6647 = vst.msk [vmem:[%s12293_s28 + $0x78] sm:$0xff] %vm6631_vm13, %v6628_v28  ;;  %v6610_v47 = vadd.f32 %v7833_v39, %v12256_v15  ;;  %v6604_v43 = vpop.f32.mrb[195].mxu1 }
 0xaeb   : > { %6646 = vst.msk [vmem:[%s12293_s28 + $0x70] sm:$0xff] %vm6631_vm13, %v6627_v3  ;;  %v6605_v11 = vadd.f32 %v6604_v43, %v12252_v44 }
 0xaec   : > { %v6630_v37 = vmax.f32 %v12283_v30, %v6610_v47 }
 0xaed   : > { %v6629_v13 = vmax.f32 %v12287_v8, %v6605_v11 }
 0xaee   : > { %6649 = vst.msk [vmem:[%s12293_s28 + $0x88] sm:$0xff] %vm6631_vm13, %v6630_v37 }
 0xaef   : > { %6648 = vst.msk [vmem:[%s12293_s28 + $0x80] sm:$0xff] %vm6631_vm13, %v6629_v13 }
 0xaf0 PF: > { %s24_s25 = sadd.s32 1, %s8636_s25  }
 0xaf1   : > { %p21_p3 = scmp.ge.s32.totalorder %s24_s25, 4  }
 0xaf3   :  { %23 = sbr.rel (!%p21_p3) target bundleno = 1 (0x1), region = 111 }
 0xafa   :  { %6671 = vsyncpa [#allocation3], 1 }
 0xafb   :  { %6673 = vsyncpa [#allocation3 + $0x1], 1 }

</bundles_post_ra>
